<compile_context>
chip_gen: v7x
topology: tpu7x:2x2x1
jax: 0.10.0
libtpu: 0.0.40
codegen_flags: <defaults>
</compile_context>

<pallas_src>
import numpy as np
import jax
import jax.numpy as jnp
from jax import lax
from jax.experimental import pallas as pl
from jax.experimental.pallas import tpu as pltpu

KSIZE = 5
NTAPS = KSIZE * KSIZE
PAD = 2                    # "same" padding for the 5x5 convs
C_IN = 128
C_MID = 64
C_OUT = 1
C2PAD = 8                  # conv2 output lanes stored (column 0 is the logit)
BN_EPS = 1e-5
MAX_BAND = 256             # output rows per tap-accumulation band
VMEM_LIMIT_BYTES = 48 * 1024 * 1024


# ----------------------------------------------------------------------------
# Static geometry / layout helpers (all Python ints / numpy constants).
# ----------------------------------------------------------------------------
def _geometry(H, W, nb):
    Hp, Wp = H + 2 * PAD, W + 2 * PAD
    L1 = Hp * Wp + 2 * PAD            # per-image flat length incl. tap overhang
    BIGL = nb * L1                    # flat length of one grid step (nb images)
    M_BIG = (nb - 1) * L1 + H * Wp    # accumulator rows per grid step
    S0 = PAD * Wp + PAD               # flat offset of output pixel (0, 0)
    return Hp, Wp, L1, BIGL, M_BIG, S0


def _pick_images_per_step(n, m_per_image):
    """Group images so the matmul M dim reaches ~256, but keep >=2 grid steps."""
    if n <= 1:
        return 1
    target = max(1, -(-256 // m_per_image))       # ceil(256 / m)
    cap = min(target, max(1, n // 2))             # leave >=2 steps for 2 TCs
    best = 1
    for d in range(1, cap + 1):
        if n % d == 0:
            best = d
    return best


def _real_pixel_mask(H, W, Wp, L1, nb, m_big):
    """mask[p]=1 iff accumulator row p is a real output pixel (not padding)."""
    r = np.arange(L1)
    m1 = ((r // Wp) < H) & ((r % Wp) < W)
    m = np.tile(m1, nb)[:m_big].astype(np.float32)
    return m.reshape(m_big, 1)


def _tap_interior_table(H, W):
    """T[i,j,t]=1 iff tap t of output pixel (i,j) reads a real (non-pad) pixel."""
    ii, jj = np.meshgrid(np.arange(H), np.arange(W), indexing="ij")
    T = np.zeros((H, W, NTAPS), np.float32)
    for t in range(NTAPS):
        dh, dw = t // KSIZE, t % KSIZE
        si, sj = ii + dh - PAD, jj + dw - PAD
        T[:, :, t] = ((si >= 0) & (si < H) & (sj >= 0) & (sj < W))
    return T


# ----------------------------------------------------------------------------
# Shared in-kernel helper: 5x5 "same" conv over the flat zero-padded layout as
# 25 zero-copy shifted-slab bf16 MXU matmuls (f32 accumulation, in vregs).
# ----------------------------------------------------------------------------
def _conv_taps(src_ref, w_ref, m0, mb, wp, cout):
    acc = jnp.zeros((mb, cout), jnp.float32)
    for t in range(NTAPS):
        off = (t // KSIZE) * wp + (t % KSIZE)
        acc = acc + jnp.dot(src_ref[0, m0 + off: m0 + off + mb, :],
                            w_ref[t],
                            preferred_element_type=jnp.float32)
    return acc


# ----------------------------------------------------------------------------
# Kernel 1: conv1 + bias + ReLU (+ pad-mask) + per-step BN partial statistics.
# Emits h1 already in the flat zero-padded layout conv2 consumes.
# ----------------------------------------------------------------------------
def _make_conv1_kernel(Wp, M_BIG, S0, BIGL, band):
    tail0 = S0 + M_BIG

    def kernel(x_ref, w_ref, b_ref, mask_ref, h_ref, stats_ref):
        # Zero only the leading/trailing halo rows of the padded-layout output.
        h_ref[0, 0:S0, :] = jnp.zeros((S0, C_MID), h_ref.dtype)
        h_ref[0, tail0:BIGL, :] = jnp.zeros((BIGL - tail0, C_MID), h_ref.dtype)

        s_acc = jnp.zeros((1, C_MID), jnp.float32)
        q_acc = jnp.zeros((1, C_MID), jnp.float32)
        for m0 in range(0, M_BIG, band):
            mb = min(band, M_BIG - m0)
            acc = _conv_taps(x_ref, w_ref, m0, mb, Wp, C_MID)
            # bias + ReLU, then zero the interspersed pad columns via the mask
            y = jnp.maximum(acc + b_ref[...], 0.0) * mask_ref[m0:m0 + mb, :]
            h_ref[0, S0 + m0: S0 + m0 + mb, :] = y.astype(h_ref.dtype)
            s_acc = s_acc + jnp.sum(y, axis=0, keepdims=True)
            q_acc = q_acc + jnp.sum(y * y, axis=0, keepdims=True)

        # Lane-dense (1,128) packed partial stats: [sum | sum of squares].
        stats_ref[...] = jnp.concatenate([s_acc, q_acc],
                                         axis=-1).reshape(1, 1, 2 * C_MID)

    return kernel


def _conv1_call(xg, w_taps, b1, mask, G, BIGL, M_BIG, Wp, S0, band):
    kern = _make_conv1_kernel(Wp, M_BIG, S0, BIGL, band)
    return pl.pallas_call(
        kern,
        out_shape=(
            jax.ShapeDtypeStruct((G, BIGL, C_MID), jnp.bfloat16),
            jax.ShapeDtypeStruct((G, 1, 2 * C_MID), jnp.float32),
        ),
        grid_spec=pltpu.PrefetchScalarGridSpec(
            num_scalar_prefetch=0,
            grid=(G,),
            in_specs=[
                pl.BlockSpec((1, BIGL, C_IN), lambda g: (g, 0, 0)),
                pl.BlockSpec((NTAPS, C_IN, C_MID), lambda g: (0, 0, 0)),
                pl.BlockSpec((1, C_MID), lambda g: (0, 0)),
                pl.BlockSpec((M_BIG, 1), lambda g: (0, 0)),
            ],
            out_specs=(
                pl.BlockSpec((1, BIGL, C_MID), lambda g: (g, 0, 0)),
                pl.BlockSpec((1, 1, 2 * C_MID), lambda g: (g, 0, 0)),
            ),
        ),
        compiler_params=pltpu.CompilerParams(
            dimension_semantics=("parallel",),
            vmem_limit_bytes=VMEM_LIMIT_BYTES),
    )(xg, w_taps, b1, mask)


# ----------------------------------------------------------------------------
# Kernel 2: conv2 with BN-scale folded into the weights.  Stores the raw
# (M, 8) f32 accumulator (column 0 real); bias map + sigmoid run in the
# wrapper on the compact real data only.
# ----------------------------------------------------------------------------
def _make_conv2_kernel(Wp, M_BIG, band):
    def kernel(h_ref, w_ref, o_ref):
        for m0 in range(0, M_BIG, band):
            mb = min(band, M_BIG - m0)
            acc = _conv_taps(h_ref, w_ref, m0, mb, Wp, C2PAD)
            o_ref[0, m0:m0 + mb, :] = acc

    return kernel


def _conv2_call(h1, w2s, G, BIGL, M_BIG, Wp, band):
    kern = _make_conv2_kernel(Wp, M_BIG, band)
    return pl.pallas_call(
        kern,
        out_shape=jax.ShapeDtypeStruct((G, M_BIG, C2PAD), jnp.float32),
        grid_spec=pltpu.PrefetchScalarGridSpec(
            num_scalar_prefetch=0,
            grid=(G,),
            in_specs=[
                pl.BlockSpec((1, BIGL, C_MID), lambda g: (g, 0, 0)),
                pl.BlockSpec((NTAPS, C_MID, C2PAD), lambda g: (0, 0, 0)),
            ],
            out_specs=pl.BlockSpec((1, M_BIG, C2PAD), lambda g: (g, 0, 0)),
        ),
        compiler_params=pltpu.CompilerParams(
            dimension_semantics=("parallel",),
            vmem_limit_bytes=VMEM_LIMIT_BYTES),
    )(h1, w2s)


# ----------------------------------------------------------------------------
# Full forward pass (matches the PyTorch Discriminator with BatchNorm2d in
# training mode, i.e. biased batch statistics over (N, H, W)).
# ----------------------------------------------------------------------------
def discriminator_forward(x_nchw, params):
    w1, b1, gamma, beta, w2, b2 = params
    N, C, H, W = x_nchw.shape
    assert C == C_IN

    Hp, Wp = H + 2 * PAD, W + 2 * PAD
    nb = _pick_images_per_step(N, H * Wp)
    G = N // nb
    _, _, L1, BIGL, M_BIG, S0 = _geometry(H, W, nb)
    band = min(MAX_BAND, M_BIG)

    # ---- layout plumbing (one fused XLA copy): NCHW -> flat padded NHWC bf16
    x = jnp.transpose(x_nchw, (0, 2, 3, 1)).astype(jnp.bfloat16)
    x = jnp.pad(x, ((0, 0), (PAD, PAD), (PAD, PAD), (0, 0)))
    x = x.reshape(N, Hp * Wp, C_IN)
    x = jnp.pad(x, ((0, 0), (0, 2 * PAD), (0, 0)))          # tap overhang rows
    xg = x.reshape(G, BIGL, C_IN)

    # weights repacked as (25, Cin, Cout) bf16 taps
    w1_taps = jnp.transpose(w1, (2, 3, 1, 0)).reshape(
        NTAPS, C_IN, C_MID).astype(jnp.bfloat16)
    b1v = b1.reshape(1, C_MID).astype(jnp.float32)
    mask = jnp.asarray(_real_pixel_mask(H, W, Wp, L1, nb, M_BIG))

    # --- Kernel 1: Conv1 + bias + ReLU, per-step BN stat partials ---
    h1, stats = _conv1_call(xg, w1_taps, b1v, mask, G, BIGL, M_BIG, Wp, S0, band)

    # --- BatchNorm2d(64) batch statistics (tiny JAX reduction over steps) ---
    m_tot = N * H * W
    csum = jnp.sum(stats[:, 0, :C_MID], axis=0)
    csq = jnp.sum(stats[:, 0, C_MID:], axis=0)
    mean = csum / m_tot
    var = jnp.maximum(csq / m_tot - mean * mean, 0.0)
    inv_std = lax.rsqrt(var + BN_EPS)
    scale = (gamma * inv_std).astype(jnp.float32)
    shift = (beta - mean * gamma * inv_std).astype(jnp.float32)

    # --- Fold BN affine into conv2: scale -> weights, shift -> bias map ---
    w2_t = jnp.transpose(w2, (2, 3, 1, 0)).reshape(
        NTAPS, C_MID, C_OUT).astype(jnp.float32)
    w2_scaled = w2_t * scale.reshape(1, C_MID, 1)
    w2_pad = jnp.pad(w2_scaled,
                     ((0, 0), (0, 0), (0, C2PAD - C_OUT))).astype(jnp.bfloat16)
    s_vec = jnp.einsum("tc,c->t", w2_t[:, :, 0], shift)       # (25,)
    T = jnp.asarray(_tap_interior_table(H, W))                 # (H, W, 25) const
    bias_map = b2[0] + jnp.tensordot(T, s_vec, axes=[[2], [0]])  # (H, W)

    # --- Kernel 2: Conv2 (BN-scaled weights), raw logits column ---
    y2 = _conv2_call(h1, w2_pad, G, BIGL, M_BIG, Wp, band)     # (G, M_BIG, 8)

    # --- extract real pixels, add bias map, sigmoid in f32 (wrapper side) ---
    o0 = y2[:, :, 0]                                           # (G, M_BIG)
    o0 = jnp.pad(o0, ((0, 0), (0, BIGL - M_BIG)))
    o0 = o0.reshape(G, nb, L1)[:, :, :H * Wp]
    o0 = o0.reshape(G, nb, H, Wp)[:, :, :, :W]                 # (G, nb, H, W)
    logits = o0.reshape(N, H, W) + bias_map[None, :, :]
    return jax.nn.sigmoid(logits).reshape(N, C_OUT, H, W)


# ----------------------------------------------------------------------------
# Pure-JAX reference (for sanity check).
# ----------------------------------------------------------------------------
def discriminator_reference(x_nchw, params):
    w1, b1, gamma, beta, w2, b2 = params
    x = x_nchw.astype(jnp.float32)
    dn = jax.lax.conv_dimension_numbers(x.shape, w1.shape,
                                        ("NCHW", "OIHW", "NCHW"))
    h = jax.lax.conv_general_dilated(x, w1, (1, 1),
                                     [(PAD, PAD), (PAD, PAD)],
                                     dimension_numbers=dn)
    h = h + b1.reshape(1, C_MID, 1, 1)
    h = jnp.maximum(h, 0.0)
    mean = jnp.mean(h, axis=(0, 2, 3), keepdims=True)
    var = jnp.mean((h - mean) ** 2, axis=(0, 2, 3), keepdims=True)
    h = (h - mean) / jnp.sqrt(var + BN_EPS)
    h = h * gamma.reshape(1, C_MID, 1, 1) + beta.reshape(1, C_MID, 1, 1)
    dn2 = jax.lax.conv_dimension_numbers(h.shape, w2.shape,
                                         ("NCHW", "OIHW", "NCHW"))
    o = jax.lax.conv_general_dilated(h, w2, (1, 1),
                                     [(PAD, PAD), (PAD, PAD)],
                                     dimension_numbers=dn2)
    o = o + b2.reshape(1, C_OUT, 1, 1)
    return jax.nn.sigmoid(o)


if __name__ == "__main__":
    key = jax.random.PRNGKey(0)
    k_x, k_w1, k_b1, k_g, k_be, k_w2, k_b2 = jax.random.split(key, 7)

    # Small shapes: batch=2, channels=128 (fixed by the module), spatial=8x8.
    N, H, W = 2, 8, 8
    x = jax.random.normal(k_x, (N, C_IN, H, W), dtype=jnp.float32)

    params = (
        jax.random.normal(k_w1, (C_MID, C_IN, KSIZE, KSIZE), jnp.float32) * 0.05,
        jax.random.normal(k_b1, (C_MID,), jnp.float32) * 0.05,
        1.0 + 0.1 * jax.random.normal(k_g, (C_MID,), jnp.float32),   # BN gamma
        0.1 * jax.random.normal(k_be, (C_MID,), jnp.float32),        # BN beta
        jax.random.normal(k_w2, (C_OUT, C_MID, KSIZE, KSIZE), jnp.float32) * 0.05,
        jax.random.normal(k_b2, (C_OUT,), jnp.float32) * 0.05,
    )

    fwd = jax.jit(discriminator_forward)
    out = jax.block_until_ready(fwd(x, params))
    ref = jax.block_until_ready(discriminator_reference(x, params))

    assert out.shape == (N, C_OUT, H, W), out.shape
    assert bool(jnp.all(jnp.isfinite(out)))
    assert bool(jnp.all((out > 0.0) & (out < 1.0)))
    err = float(jnp.max(jnp.abs(out - ref)))
    assert bool(jnp.allclose(out, ref, atol=2e-2, rtol=2e-2)), err

    print("KERNEL_OK")
</pallas_src>

<mosaic_0001>
module attributes {stable_mosaic.version = 11 : i64} {
  func.func @kernel(%arg0: i32, %arg1: memref<1x148x128xbf16, #tpu.memory_space<vmem>>, %arg2: memref<25x128x64xbf16, #tpu.memory_space<vmem>>, %arg3: memref<1x64xf32, #tpu.memory_space<vmem>>, %arg4: memref<96x1xf32, #tpu.memory_space<vmem>>, %arg5: memref<1x148x64xbf16, #tpu.memory_space<vmem>>, %arg6: memref<1x1x128xf32, #tpu.memory_space<vmem>>) attributes {dimension_semantics = [#tpu.dimension_semantics<parallel>], iteration_bounds = array<i64: 2>, scalar_prefetch = 0 : i64, scratch_operands = 0 : i64, tpu.core_type = #tpu.core_type<tc>, window_params = [{transform_indices = @transform_0, window_bounds = array<i64: 1, 148, 128>}, {pipeline_mode = #tpu.pipeline_mode<synchronous>, transform_indices = @transform_1, window_bounds = array<i64: 25, 128, 64>}, {pipeline_mode = #tpu.pipeline_mode<synchronous>, transform_indices = @transform_2, window_bounds = array<i64: 1, 64>}, {pipeline_mode = #tpu.pipeline_mode<synchronous>, transform_indices = @transform_3, window_bounds = array<i64: 96, 1>}, {transform_indices = @transform_4, window_bounds = array<i64: 1, 148, 64>}, {transform_indices = @transform_5, window_bounds = array<i64: 1, 1, 128>}]} {
    %cst = arith.constant 0.000000e+00 : bf16
    %0 = vector.broadcast %cst : bf16 to vector<26x64xbf16>
    %c0 = arith.constant 0 : index
    %c0_0 = arith.constant 0 : index
    %c0_1 = arith.constant 0 : index
    %1 = vector.load %arg5[%c0, %c0_0, %c0_1] : memref<1x148x64xbf16, #tpu.memory_space<vmem>>, vector<1x26x64xbf16>
    %2 = vector.shape_cast %1 : vector<1x26x64xbf16> to vector<26x64xbf16>
    %3 = vector.shape_cast %0 : vector<26x64xbf16> to vector<1x26x64xbf16>
    tpu.vector_store %arg5[%c0, %c0_0, %c0_1], %3 {strides = array<i32>} : memref<1x148x64xbf16, #tpu.memory_space<vmem>>, vector<1x26x64xbf16>,
    %cst_2 = arith.constant 0.000000e+00 : bf16
    %4 = vector.broadcast %cst_2 : bf16 to vector<26x64xbf16>
    %c0_3 = arith.constant 0 : index
    %c122 = arith.constant 122 : index
    %c0_4 = arith.constant 0 : index
    %5 = vector.load %arg5[%c0_3, %c122, %c0_4] : memref<1x148x64xbf16, #tpu.memory_space<vmem>>, vector<1x26x64xbf16>
    %6 = vector.shape_cast %5 : vector<1x26x64xbf16> to vector<26x64xbf16>
    %7 = vector.shape_cast %4 : vector<26x64xbf16> to vector<1x26x64xbf16>
    tpu.vector_store %arg5[%c0_3, %c122, %c0_4], %7 {strides = array<i32>} : memref<1x148x64xbf16, #tpu.memory_space<vmem>>, vector<1x26x64xbf16>,
    %cst_5 = arith.constant 0.000000e+00 : f32
    %8 = vector.broadcast %cst_5 : f32 to vector<1x64xf32>
    %cst_6 = arith.constant 0.000000e+00 : f32
    %9 = vector.broadcast %cst_6 : f32 to vector<1x64xf32>
    %cst_7 = arith.constant 0.000000e+00 : f32
    %10 = vector.broadcast %cst_7 : f32 to vector<96x64xf32>
    %c0_8 = arith.constant 0 : index
    %c0_9 = arith.constant 0 : index
    %c0_10 = arith.constant 0 : index
    %11 = vector.load %arg1[%c0_8, %c0_9, %c0_10] : memref<1x148x128xbf16, #tpu.memory_space<vmem>>, vector<1x96x128xbf16>
    %12 = vector.shape_cast %11 : vector<1x96x128xbf16> to vector<96x128xbf16>
    %c0_11 = arith.constant 0 : index
    %c0_12 = arith.constant 0 : index
    %c0_13 = arith.constant 0 : index
    %13 = vector.load %arg2[%c0_11, %c0_12, %c0_13] : memref<25x128x64xbf16, #tpu.memory_space<vmem>>, vector<1x128x64xbf16>
    %14 = vector.shape_cast %13 : vector<1x128x64xbf16> to vector<128x64xbf16>
    %cst_14 = arith.constant dense<0.000000e+00> : vector<96x64xf32>
    %15 = tpu.matmul %12, %14, %cst_14 {dimension_numbers = #tpu.dot_dimension_numbers<[1], [0], [0], [1], [0, 0, 1, 1], [], []>} : vector<96x128xbf16>, vector<128x64xbf16>, vector<96x64xf32> -> vector<96x64xf32>
    %16 = arith.addf %10, %15 : vector<96x64xf32>
    %c0_15 = arith.constant 0 : index
    %c1 = arith.constant 1 : index
    %c0_16 = arith.constant 0 : index
    %17 = vector.load %arg1[%c0_15, %c1, %c0_16] : memref<1x148x128xbf16, #tpu.memory_space<vmem>>, vector<1x96x128xbf16>
    %18 = vector.shape_cast %17 : vector<1x96x128xbf16> to vector<96x128xbf16>
    %c1_17 = arith.constant 1 : index
    %c0_18 = arith.constant 0 : index
    %c0_19 = arith.constant 0 : index
    %19 = vector.load %arg2[%c1_17, %c0_18, %c0_19] : memref<25x128x64xbf16, #tpu.memory_space<vmem>>, vector<1x128x64xbf16>
    %20 = vector.shape_cast %19 : vector<1x128x64xbf16> to vector<128x64xbf16>
    %cst_20 = arith.constant dense<0.000000e+00> : vector<96x64xf32>
    %21 = tpu.matmul %18, %20, %cst_20 {dimension_numbers = #tpu.dot_dimension_numbers<[1], [0], [0], [1], [0, 0, 1, 1], [], []>} : vector<96x128xbf16>, vector<128x64xbf16>, vector<96x64xf32> -> vector<96x64xf32>
    %22 = arith.addf %16, %21 : vector<96x64xf32>
    %c0_21 = arith.constant 0 : index
    %c2 = arith.constant 2 : index
    %c0_22 = arith.constant 0 : index
    %23 = vector.load %arg1[%c0_21, %c2, %c0_22] : memref<1x148x128xbf16, #tpu.memory_space<vmem>>, vector<1x96x128xbf16>
    %24 = vector.shape_cast %23 : vector<1x96x128xbf16> to vector<96x128xbf16>
    %c2_23 = arith.constant 2 : index
    %c0_24 = arith.constant 0 : index
    %c0_25 = arith.constant 0 : index
    %25 = vector.load %arg2[%c2_23, %c0_24, %c0_25] : memref<25x128x64xbf16, #tpu.memory_space<vmem>>, vector<1x128x64xbf16>
    %26 = vector.shape_cast %25 : vector<1x128x64xbf16> to vector<128x64xbf16>
    %cst_26 = arith.constant dense<0.000000e+00> : vector<96x64xf32>
    %27 = tpu.matmul %24, %26, %cst_26 {dimension_numbers = #tpu.dot_dimension_numbers<[1], [0], [0], [1], [0, 0, 1, 1], [], []>} : vector<96x128xbf16>, vector<128x64xbf16>, vector<96x64xf32> -> vector<96x64xf32>
    %28 = arith.addf %22, %27 : vector<96x64xf32>
    %c0_27 = arith.constant 0 : index
    %c3 = arith.constant 3 : index
    %c0_28 = arith.constant 0 : index
    %29 = vector.load %arg1[%c0_27, %c3, %c0_28] : memref<1x148x128xbf16, #tpu.memory_space<vmem>>, vector<1x96x128xbf16>
    %30 = vector.shape_cast %29 : vector<1x96x128xbf16> to vector<96x128xbf16>
    %c3_29 = arith.constant 3 : index
    %c0_30 = arith.constant 0 : index
    %c0_31 = arith.constant 0 : index
    %31 = vector.load %arg2[%c3_29, %c0_30, %c0_31] : memref<25x128x64xbf16, #tpu.memory_space<vmem>>, vector<1x128x64xbf16>
    %32 = vector.shape_cast %31 : vector<1x128x64xbf16> to vector<128x64xbf16>
    %cst_32 = arith.constant dense<0.000000e+00> : vector<96x64xf32>
    %33 = tpu.matmul %30, %32, %cst_32 {dimension_numbers = #tpu.dot_dimension_numbers<[1], [0], [0], [1], [0, 0, 1, 1], [], []>} : vector<96x128xbf16>, vector<128x64xbf16>, vector<96x64xf32> -> vector<96x64xf32>
    %34 = arith.addf %28, %33 : vector<96x64xf32>
    %c0_33 = arith.constant 0 : index
    %c4 = arith.constant 4 : index
    %c0_34 = arith.constant 0 : index
    %35 = vector.load %arg1[%c0_33, %c4, %c0_34] : memref<1x148x128xbf16, #tpu.memory_space<vmem>>, vector<1x96x128xbf16>
    %36 = vector.shape_cast %35 : vector<1x96x128xbf16> to vector<96x128xbf16>
    %c4_35 = arith.constant 4 : index
    %c0_36 = arith.constant 0 : index
    %c0_37 = arith.constant 0 : index
    %37 = vector.load %arg2[%c4_35, %c0_36, %c0_37] : memref<25x128x64xbf16, #tpu.memory_space<vmem>>, vector<1x128x64xbf16>
    %38 = vector.shape_cast %37 : vector<1x128x64xbf16> to vector<128x64xbf16>
    %cst_38 = arith.constant dense<0.000000e+00> : vector<96x64xf32>
    %39 = tpu.matmul %36, %38, %cst_38 {dimension_numbers = #tpu.dot_dimension_numbers<[1], [0], [0], [1], [0, 0, 1, 1], [], []>} : vector<96x128xbf16>, vector<128x64xbf16>, vector<96x64xf32> -> vector<96x64xf32>
    %40 = arith.addf %34, %39 : vector<96x64xf32>
    %c0_39 = arith.constant 0 : index
    %c12 = arith.constant 12 : index
    %c0_40 = arith.constant 0 : index
    %41 = vector.load %arg1[%c0_39, %c12, %c0_40] : memref<1x148x128xbf16, #tpu.memory_space<vmem>>, vector<1x96x128xbf16>
    %42 = vector.shape_cast %41 : vector<1x96x128xbf16> to vector<96x128xbf16>
    %c5 = arith.constant 5 : index
    %c0_41 = arith.constant 0 : index
    %c0_42 = arith.constant 0 : index
    %43 = vector.load %arg2[%c5, %c0_41, %c0_42] : memref<25x128x64xbf16, #tpu.memory_space<vmem>>, vector<1x128x64xbf16>
    %44 = vector.shape_cast %43 : vector<1x128x64xbf16> to vector<128x64xbf16>
    %cst_43 = arith.constant dense<0.000000e+00> : vector<96x64xf32>
    %45 = tpu.matmul %42, %44, %cst_43 {dimension_numbers = #tpu.dot_dimension_numbers<[1], [0], [0], [1], [0, 0, 1, 1], [], []>} : vector<96x128xbf16>, vector<128x64xbf16>, vector<96x64xf32> -> vector<96x64xf32>
    %46 = arith.addf %40, %45 : vector<96x64xf32>
    %c0_44 = arith.constant 0 : index
    %c13 = arith.constant 13 : index
    %c0_45 = arith.constant 0 : index
    %47 = vector.load %arg1[%c0_44, %c13, %c0_45] : memref<1x148x128xbf16, #tpu.memory_space<vmem>>, vector<1x96x128xbf16>
    %48 = vector.shape_cast %47 : vector<1x96x128xbf16> to vector<96x128xbf16>
    %c6 = arith.constant 6 : index
    %c0_46 = arith.constant 0 : index
    %c0_47 = arith.constant 0 : index
    %49 = vector.load %arg2[%c6, %c0_46, %c0_47] : memref<25x128x64xbf16, #tpu.memory_space<vmem>>, vector<1x128x64xbf16>
    %50 = vector.shape_cast %49 : vector<1x128x64xbf16> to vector<128x64xbf16>
    %cst_48 = arith.constant dense<0.000000e+00> : vector<96x64xf32>
    %51 = tpu.matmul %48, %50, %cst_48 {dimension_numbers = #tpu.dot_dimension_numbers<[1], [0], [0], [1], [0, 0, 1, 1], [], []>} : vector<96x128xbf16>, vector<128x64xbf16>, vector<96x64xf32> -> vector<96x64xf32>
    %52 = arith.addf %46, %51 : vector<96x64xf32>
    %c0_49 = arith.constant 0 : index
    %c14 = arith.constant 14 : index
    %c0_50 = arith.constant 0 : index
    %53 = vector.load %arg1[%c0_49, %c14, %c0_50] : memref<1x148x128xbf16, #tpu.memory_space<vmem>>, vector<1x96x128xbf16>
    %54 = vector.shape_cast %53 : vector<1x96x128xbf16> to vector<96x128xbf16>
    %c7 = arith.constant 7 : index
    %c0_51 = arith.constant 0 : index
    %c0_52 = arith.constant 0 : index
    %55 = vector.load %arg2[%c7, %c0_51, %c0_52] : memref<25x128x64xbf16, #tpu.memory_space<vmem>>, vector<1x128x64xbf16>
    %56 = vector.shape_cast %55 : vector<1x128x64xbf16> to vector<128x64xbf16>
    %cst_53 = arith.constant dense<0.000000e+00> : vector<96x64xf32>
    %57 = tpu.matmul %54, %56, %cst_53 {dimension_numbers = #tpu.dot_dimension_numbers<[1], [0], [0], [1], [0, 0, 1, 1], [], []>} : vector<96x128xbf16>, vector<128x64xbf16>, vector<96x64xf32> -> vector<96x64xf32>
    %58 = arith.addf %52, %57 : vector<96x64xf32>
    %c0_54 = arith.constant 0 : index
    %c15 = arith.constant 15 : index
    %c0_55 = arith.constant 0 : index
    %59 = vector.load %arg1[%c0_54, %c15, %c0_55] : memref<1x148x128xbf16, #tpu.memory_space<vmem>>, vector<1x96x128xbf16>
    %60 = vector.shape_cast %59 : vector<1x96x128xbf16> to vector<96x128xbf16>
    %c8 = arith.constant 8 : index
    %c0_56 = arith.constant 0 : index
    %c0_57 = arith.constant 0 : index
    %61 = vector.load %arg2[%c8, %c0_56, %c0_57] : memref<25x128x64xbf16, #tpu.memory_space<vmem>>, vector<1x128x64xbf16>
    %62 = vector.shape_cast %61 : vector<1x128x64xbf16> to vector<128x64xbf16>
    %cst_58 = arith.constant dense<0.000000e+00> : vector<96x64xf32>
    %63 = tpu.matmul %60, %62, %cst_58 {dimension_numbers = #tpu.dot_dimension_numbers<[1], [0], [0], [1], [0, 0, 1, 1], [], []>} : vector<96x128xbf16>, vector<128x64xbf16>, vector<96x64xf32> -> vector<96x64xf32>
    %64 = arith.addf %58, %63 : vector<96x64xf32>
    %c0_59 = arith.constant 0 : index
    %c16 = arith.constant 16 : index
    %c0_60 = arith.constant 0 : index
    %65 = vector.load %arg1[%c0_59, %c16, %c0_60] : memref<1x148x128xbf16, #tpu.memory_space<vmem>>, vector<1x96x128xbf16>
    %66 = vector.shape_cast %65 : vector<1x96x128xbf16> to vector<96x128xbf16>
    %c9 = arith.constant 9 : index
    %c0_61 = arith.constant 0 : index
    %c0_62 = arith.constant 0 : index
    %67 = vector.load %arg2[%c9, %c0_61, %c0_62] : memref<25x128x64xbf16, #tpu.memory_space<vmem>>, vector<1x128x64xbf16>
    %68 = vector.shape_cast %67 : vector<1x128x64xbf16> to vector<128x64xbf16>
    %cst_63 = arith.constant dense<0.000000e+00> : vector<96x64xf32>
    %69 = tpu.matmul %66, %68, %cst_63 {dimension_numbers = #tpu.dot_dimension_numbers<[1], [0], [0], [1], [0, 0, 1, 1], [], []>} : vector<96x128xbf16>, vector<128x64xbf16>, vector<96x64xf32> -> vector<96x64xf32>
    %70 = arith.addf %64, %69 : vector<96x64xf32>
    %c0_64 = arith.constant 0 : index
    %c24 = arith.constant 24 : index
    %c0_65 = arith.constant 0 : index
    %71 = vector.load %arg1[%c0_64, %c24, %c0_65] : memref<1x148x128xbf16, #tpu.memory_space<vmem>>, vector<1x96x128xbf16>
    %72 = vector.shape_cast %71 : vector<1x96x128xbf16> to vector<96x128xbf16>
    %c10 = arith.constant 10 : index
    %c0_66 = arith.constant 0 : index
    %c0_67 = arith.constant 0 : index
    %73 = vector.load %arg2[%c10, %c0_66, %c0_67] : memref<25x128x64xbf16, #tpu.memory_space<vmem>>, vector<1x128x64xbf16>
    %74 = vector.shape_cast %73 : vector<1x128x64xbf16> to vector<128x64xbf16>
    %cst_68 = arith.constant dense<0.000000e+00> : vector<96x64xf32>
    %75 = tpu.matmul %72, %74, %cst_68 {dimension_numbers = #tpu.dot_dimension_numbers<[1], [0], [0], [1], [0, 0, 1, 1], [], []>} : vector<96x128xbf16>, vector<128x64xbf16>, vector<96x64xf32> -> vector<96x64xf32>
    %76 = arith.addf %70, %75 : vector<96x64xf32>
    %c0_69 = arith.constant 0 : index
    %c25 = arith.constant 25 : index
    %c0_70 = arith.constant 0 : index
    %77 = vector.load %arg1[%c0_69, %c25, %c0_70] : memref<1x148x128xbf16, #tpu.memory_space<vmem>>, vector<1x96x128xbf16>
    %78 = vector.shape_cast %77 : vector<1x96x128xbf16> to vector<96x128xbf16>
    %c11 = arith.constant 11 : index
    %c0_71 = arith.constant 0 : index
    %c0_72 = arith.constant 0 : index
    %79 = vector.load %arg2[%c11, %c0_71, %c0_72] : memref<25x128x64xbf16, #tpu.memory_space<vmem>>, vector<1x128x64xbf16>
    %80 = vector.shape_cast %79 : vector<1x128x64xbf16> to vector<128x64xbf16>
    %cst_73 = arith.constant dense<0.000000e+00> : vector<96x64xf32>
    %81 = tpu.matmul %78, %80, %cst_73 {dimension_numbers = #tpu.dot_dimension_numbers<[1], [0], [0], [1], [0, 0, 1, 1], [], []>} : vector<96x128xbf16>, vector<128x64xbf16>, vector<96x64xf32> -> vector<96x64xf32>
    %82 = arith.addf %76, %81 : vector<96x64xf32>
    %c0_74 = arith.constant 0 : index
    %c26 = arith.constant 26 : index
    %c0_75 = arith.constant 0 : index
    %83 = vector.load %arg1[%c0_74, %c26, %c0_75] : memref<1x148x128xbf16, #tpu.memory_space<vmem>>, vector<1x96x128xbf16>
    %84 = vector.shape_cast %83 : vector<1x96x128xbf16> to vector<96x128xbf16>
    %c12_76 = arith.constant 12 : index
    %c0_77 = arith.constant 0 : index
    %c0_78 = arith.constant 0 : index
    %85 = vector.load %arg2[%c12_76, %c0_77, %c0_78] : memref<25x128x64xbf16, #tpu.memory_space<vmem>>, vector<1x128x64xbf16>
    %86 = vector.shape_cast %85 : vector<1x128x64xbf16> to vector<128x64xbf16>
    %cst_79 = arith.constant dense<0.000000e+00> : vector<96x64xf32>
    %87 = tpu.matmul %84, %86, %cst_79 {dimension_numbers = #tpu.dot_dimension_numbers<[1], [0], [0], [1], [0, 0, 1, 1], [], []>} : vector<96x128xbf16>, vector<128x64xbf16>, vector<96x64xf32> -> vector<96x64xf32>
    %88 = arith.addf %82, %87 : vector<96x64xf32>
    %c0_80 = arith.constant 0 : index
    %c27 = arith.constant 27 : index
    %c0_81 = arith.constant 0 : index
    %89 = vector.load %arg1[%c0_80, %c27, %c0_81] : memref<1x148x128xbf16, #tpu.memory_space<vmem>>, vector<1x96x128xbf16>
    %90 = vector.shape_cast %89 : vector<1x96x128xbf16> to vector<96x128xbf16>
    %c13_82 = arith.constant 13 : index
    %c0_83 = arith.constant 0 : index
    %c0_84 = arith.constant 0 : index
    %91 = vector.load %arg2[%c13_82, %c0_83, %c0_84] : memref<25x128x64xbf16, #tpu.memory_space<vmem>>, vector<1x128x64xbf16>
    %92 = vector.shape_cast %91 : vector<1x128x64xbf16> to vector<128x64xbf16>
    %cst_85 = arith.constant dense<0.000000e+00> : vector<96x64xf32>
    %93 = tpu.matmul %90, %92, %cst_85 {dimension_numbers = #tpu.dot_dimension_numbers<[1], [0], [0], [1], [0, 0, 1, 1], [], []>} : vector<96x128xbf16>, vector<128x64xbf16>, vector<96x64xf32> -> vector<96x64xf32>
    %94 = arith.addf %88, %93 : vector<96x64xf32>
    %c0_86 = arith.constant 0 : index
    %c28 = arith.constant 28 : index
    %c0_87 = arith.constant 0 : index
    %95 = vector.load %arg1[%c0_86, %c28, %c0_87] : memref<1x148x128xbf16, #tpu.memory_space<vmem>>, vector<1x96x128xbf16>
    %96 = vector.shape_cast %95 : vector<1x96x128xbf16> to vector<96x128xbf16>
    %c14_88 = arith.constant 14 : index
    %c0_89 = arith.constant 0 : index
    %c0_90 = arith.constant 0 : index
    %97 = vector.load %arg2[%c14_88, %c0_89, %c0_90] : memref<25x128x64xbf16, #tpu.memory_space<vmem>>, vector<1x128x64xbf16>
    %98 = vector.shape_cast %97 : vector<1x128x64xbf16> to vector<128x64xbf16>
    %cst_91 = arith.constant dense<0.000000e+00> : vector<96x64xf32>
    %99 = tpu.matmul %96, %98, %cst_91 {dimension_numbers = #tpu.dot_dimension_numbers<[1], [0], [0], [1], [0, 0, 1, 1], [], []>} : vector<96x128xbf16>, vector<128x64xbf16>, vector<96x64xf32> -> vector<96x64xf32>
    %100 = arith.addf %94, %99 : vector<96x64xf32>
    %c0_92 = arith.constant 0 : index
    %c36 = arith.constant 36 : index
    %c0_93 = arith.constant 0 : index
    %101 = vector.load %arg1[%c0_92, %c36, %c0_93] : memref<1x148x128xbf16, #tpu.memory_space<vmem>>, vector<1x96x128xbf16>
    %102 = vector.shape_cast %101 : vector<1x96x128xbf16> to vector<96x128xbf16>
    %c15_94 = arith.constant 15 : index
    %c0_95 = arith.constant 0 : index
    %c0_96 = arith.constant 0 : index
    %103 = vector.load %arg2[%c15_94, %c0_95, %c0_96] : memref<25x128x64xbf16, #tpu.memory_space<vmem>>, vector<1x128x64xbf16>
    %104 = vector.shape_cast %103 : vector<1x128x64xbf16> to vector<128x64xbf16>
    %cst_97 = arith.constant dense<0.000000e+00> : vector<96x64xf32>
    %105 = tpu.matmul %102, %104, %cst_97 {dimension_numbers = #tpu.dot_dimension_numbers<[1], [0], [0], [1], [0, 0, 1, 1], [], []>} : vector<96x128xbf16>, vector<128x64xbf16>, vector<96x64xf32> -> vector<96x64xf32>
    %106 = arith.addf %100, %105 : vector<96x64xf32>
    %c0_98 = arith.constant 0 : index
    %c37 = arith.constant 37 : index
    %c0_99 = arith.constant 0 : index
    %107 = vector.load %arg1[%c0_98, %c37, %c0_99] : memref<1x148x128xbf16, #tpu.memory_space<vmem>>, vector<1x96x128xbf16>
    %108 = vector.shape_cast %107 : vector<1x96x128xbf16> to vector<96x128xbf16>
    %c16_100 = arith.constant 16 : index
    %c0_101 = arith.constant 0 : index
    %c0_102 = arith.constant 0 : index
    %109 = vector.load %arg2[%c16_100, %c0_101, %c0_102] : memref<25x128x64xbf16, #tpu.memory_space<vmem>>, vector<1x128x64xbf16>
    %110 = vector.shape_cast %109 : vector<1x128x64xbf16> to vector<128x64xbf16>
    %cst_103 = arith.constant dense<0.000000e+00> : vector<96x64xf32>
    %111 = tpu.matmul %108, %110, %cst_103 {dimension_numbers = #tpu.dot_dimension_numbers<[1], [0], [0], [1], [0, 0, 1, 1], [], []>} : vector<96x128xbf16>, vector<128x64xbf16>, vector<96x64xf32> -> vector<96x64xf32>
    %112 = arith.addf %106, %111 : vector<96x64xf32>
    %c0_104 = arith.constant 0 : index
    %c38 = arith.constant 38 : index
    %c0_105 = arith.constant 0 : index
    %113 = vector.load %arg1[%c0_104, %c38, %c0_105] : memref<1x148x128xbf16, #tpu.memory_space<vmem>>, vector<1x96x128xbf16>
    %114 = vector.shape_cast %113 : vector<1x96x128xbf16> to vector<96x128xbf16>
    %c17 = arith.constant 17 : index
    %c0_106 = arith.constant 0 : index
    %c0_107 = arith.constant 0 : index
    %115 = vector.load %arg2[%c17, %c0_106, %c0_107] : memref<25x128x64xbf16, #tpu.memory_space<vmem>>, vector<1x128x64xbf16>
    %116 = vector.shape_cast %115 : vector<1x128x64xbf16> to vector<128x64xbf16>
    %cst_108 = arith.constant dense<0.000000e+00> : vector<96x64xf32>
    %117 = tpu.matmul %114, %116, %cst_108 {dimension_numbers = #tpu.dot_dimension_numbers<[1], [0], [0], [1], [0, 0, 1, 1], [], []>} : vector<96x128xbf16>, vector<128x64xbf16>, vector<96x64xf32> -> vector<96x64xf32>
    %118 = arith.addf %112, %117 : vector<96x64xf32>
    %c0_109 = arith.constant 0 : index
    %c39 = arith.constant 39 : index
    %c0_110 = arith.constant 0 : index
    %119 = vector.load %arg1[%c0_109, %c39, %c0_110] : memref<1x148x128xbf16, #tpu.memory_space<vmem>>, vector<1x96x128xbf16>
    %120 = vector.shape_cast %119 : vector<1x96x128xbf16> to vector<96x128xbf16>
    %c18 = arith.constant 18 : index
    %c0_111 = arith.constant 0 : index
    %c0_112 = arith.constant 0 : index
    %121 = vector.load %arg2[%c18, %c0_111, %c0_112] : memref<25x128x64xbf16, #tpu.memory_space<vmem>>, vector<1x128x64xbf16>
    %122 = vector.shape_cast %121 : vector<1x128x64xbf16> to vector<128x64xbf16>
    %cst_113 = arith.constant dense<0.000000e+00> : vector<96x64xf32>
    %123 = tpu.matmul %120, %122, %cst_113 {dimension_numbers = #tpu.dot_dimension_numbers<[1], [0], [0], [1], [0, 0, 1, 1], [], []>} : vector<96x128xbf16>, vector<128x64xbf16>, vector<96x64xf32> -> vector<96x64xf32>
    %124 = arith.addf %118, %123 : vector<96x64xf32>
    %c0_114 = arith.constant 0 : index
    %c40 = arith.constant 40 : index
    %c0_115 = arith.constant 0 : index
    %125 = vector.load %arg1[%c0_114, %c40, %c0_115] : memref<1x148x128xbf16, #tpu.memory_space<vmem>>, vector<1x96x128xbf16>
    %126 = vector.shape_cast %125 : vector<1x96x128xbf16> to vector<96x128xbf16>
    %c19 = arith.constant 19 : index
    %c0_116 = arith.constant 0 : index
    %c0_117 = arith.constant 0 : index
    %127 = vector.load %arg2[%c19, %c0_116, %c0_117] : memref<25x128x64xbf16, #tpu.memory_space<vmem>>, vector<1x128x64xbf16>
    %128 = vector.shape_cast %127 : vector<1x128x64xbf16> to vector<128x64xbf16>
    %cst_118 = arith.constant dense<0.000000e+00> : vector<96x64xf32>
    %129 = tpu.matmul %126, %128, %cst_118 {dimension_numbers = #tpu.dot_dimension_numbers<[1], [0], [0], [1], [0, 0, 1, 1], [], []>} : vector<96x128xbf16>, vector<128x64xbf16>, vector<96x64xf32> -> vector<96x64xf32>
    %130 = arith.addf %124, %129 : vector<96x64xf32>
    %c0_119 = arith.constant 0 : index
    %c48 = arith.constant 48 : index
    %c0_120 = arith.constant 0 : index
    %131 = vector.load %arg1[%c0_119, %c48, %c0_120] : memref<1x148x128xbf16, #tpu.memory_space<vmem>>, vector<1x96x128xbf16>
    %132 = vector.shape_cast %131 : vector<1x96x128xbf16> to vector<96x128xbf16>
    %c20 = arith.constant 20 : index
    %c0_121 = arith.constant 0 : index
    %c0_122 = arith.constant 0 : index
    %133 = vector.load %arg2[%c20, %c0_121, %c0_122] : memref<25x128x64xbf16, #tpu.memory_space<vmem>>, vector<1x128x64xbf16>
    %134 = vector.shape_cast %133 : vector<1x128x64xbf16> to vector<128x64xbf16>
    %cst_123 = arith.constant dense<0.000000e+00> : vector<96x64xf32>
    %135 = tpu.matmul %132, %134, %cst_123 {dimension_numbers = #tpu.dot_dimension_numbers<[1], [0], [0], [1], [0, 0, 1, 1], [], []>} : vector<96x128xbf16>, vector<128x64xbf16>, vector<96x64xf32> -> vector<96x64xf32>
    %136 = arith.addf %130, %135 : vector<96x64xf32>
    %c0_124 = arith.constant 0 : index
    %c49 = arith.constant 49 : index
    %c0_125 = arith.constant 0 : index
    %137 = vector.load %arg1[%c0_124, %c49, %c0_125] : memref<1x148x128xbf16, #tpu.memory_space<vmem>>, vector<1x96x128xbf16>
    %138 = vector.shape_cast %137 : vector<1x96x128xbf16> to vector<96x128xbf16>
    %c21 = arith.constant 21 : index
    %c0_126 = arith.constant 0 : index
    %c0_127 = arith.constant 0 : index
    %139 = vector.load %arg2[%c21, %c0_126, %c0_127] : memref<25x128x64xbf16, #tpu.memory_space<vmem>>, vector<1x128x64xbf16>
    %140 = vector.shape_cast %139 : vector<1x128x64xbf16> to vector<128x64xbf16>
    %cst_128 = arith.constant dense<0.000000e+00> : vector<96x64xf32>
    %141 = tpu.matmul %138, %140, %cst_128 {dimension_numbers = #tpu.dot_dimension_numbers<[1], [0], [0], [1], [0, 0, 1, 1], [], []>} : vector<96x128xbf16>, vector<128x64xbf16>, vector<96x64xf32> -> vector<96x64xf32>
    %142 = arith.addf %136, %141 : vector<96x64xf32>
    %c0_129 = arith.constant 0 : index
    %c50 = arith.constant 50 : index
    %c0_130 = arith.constant 0 : index
    %143 = vector.load %arg1[%c0_129, %c50, %c0_130] : memref<1x148x128xbf16, #tpu.memory_space<vmem>>, vector<1x96x128xbf16>
    %144 = vector.shape_cast %143 : vector<1x96x128xbf16> to vector<96x128xbf16>
    %c22 = arith.constant 22 : index
    %c0_131 = arith.constant 0 : index
    %c0_132 = arith.constant 0 : index
    %145 = vector.load %arg2[%c22, %c0_131, %c0_132] : memref<25x128x64xbf16, #tpu.memory_space<vmem>>, vector<1x128x64xbf16>
    %146 = vector.shape_cast %145 : vector<1x128x64xbf16> to vector<128x64xbf16>
    %cst_133 = arith.constant dense<0.000000e+00> : vector<96x64xf32>
    %147 = tpu.matmul %144, %146, %cst_133 {dimension_numbers = #tpu.dot_dimension_numbers<[1], [0], [0], [1], [0, 0, 1, 1], [], []>} : vector<96x128xbf16>, vector<128x64xbf16>, vector<96x64xf32> -> vector<96x64xf32>
    %148 = arith.addf %142, %147 : vector<96x64xf32>
    %c0_134 = arith.constant 0 : index
    %c51 = arith.constant 51 : index
    %c0_135 = arith.constant 0 : index
    %149 = vector.load %arg1[%c0_134, %c51, %c0_135] : memref<1x148x128xbf16, #tpu.memory_space<vmem>>, vector<1x96x128xbf16>
    %150 = vector.shape_cast %149 : vector<1x96x128xbf16> to vector<96x128xbf16>
    %c23 = arith.constant 23 : index
    %c0_136 = arith.constant 0 : index
    %c0_137 = arith.constant 0 : index
    %151 = vector.load %arg2[%c23, %c0_136, %c0_137] : memref<25x128x64xbf16, #tpu.memory_space<vmem>>, vector<1x128x64xbf16>
    %152 = vector.shape_cast %151 : vector<1x128x64xbf16> to vector<128x64xbf16>
    %cst_138 = arith.constant dense<0.000000e+00> : vector<96x64xf32>
    %153 = tpu.matmul %150, %152, %cst_138 {dimension_numbers = #tpu.dot_dimension_numbers<[1], [0], [0], [1], [0, 0, 1, 1], [], []>} : vector<96x128xbf16>, vector<128x64xbf16>, vector<96x64xf32> -> vector<96x64xf32>
    %154 = arith.addf %148, %153 : vector<96x64xf32>
    %c0_139 = arith.constant 0 : index
    %c52 = arith.constant 52 : index
    %c0_140 = arith.constant 0 : index
    %155 = vector.load %arg1[%c0_139, %c52, %c0_140] : memref<1x148x128xbf16, #tpu.memory_space<vmem>>, vector<1x96x128xbf16>
    %156 = vector.shape_cast %155 : vector<1x96x128xbf16> to vector<96x128xbf16>
    %c24_141 = arith.constant 24 : index
    %c0_142 = arith.constant 0 : index
    %c0_143 = arith.constant 0 : index
    %157 = vector.load %arg2[%c24_141, %c0_142, %c0_143] : memref<25x128x64xbf16, #tpu.memory_space<vmem>>, vector<1x128x64xbf16>
    %158 = vector.shape_cast %157 : vector<1x128x64xbf16> to vector<128x64xbf16>
    %cst_144 = arith.constant dense<0.000000e+00> : vector<96x64xf32>
    %159 = tpu.matmul %156, %158, %cst_144 {dimension_numbers = #tpu.dot_dimension_numbers<[1], [0], [0], [1], [0, 0, 1, 1], [], []>} : vector<96x128xbf16>, vector<128x64xbf16>, vector<96x64xf32> -> vector<96x64xf32>
    %160 = arith.addf %154, %159 : vector<96x64xf32>
    %c0_145 = arith.constant 0 : index
    %c0_146 = arith.constant 0 : index
    %161 = vector.load %arg3[%c0_145, %c0_146] : memref<1x64xf32, #tpu.memory_space<vmem>>, vector<1x64xf32>
    %162 = vector.broadcast %161 : vector<1x64xf32> to vector<96x64xf32>
    %163 = arith.addf %160, %162 : vector<96x64xf32>
    %cst_147 = arith.constant 0.000000e+00 : f32
    %164 = vector.broadcast %cst_147 : f32 to vector<96x64xf32>
    %165 = arith.maximumf %163, %164 : vector<96x64xf32>
    %c0_148 = arith.constant 0 : index
    %c0_149 = arith.constant 0 : index
    %166 = vector.load %arg4[%c0_148, %c0_149] : memref<96x1xf32, #tpu.memory_space<vmem>>, vector<96x1xf32>
    %167 = vector.broadcast %166 : vector<96x1xf32> to vector<96x64xf32>
    %168 = arith.mulf %165, %167 : vector<96x64xf32>
    %169 = arith.truncf %168 : vector<96x64xf32> to vector<96x64xbf16>
    %c0_150 = arith.constant 0 : index
    %c26_151 = arith.constant 26 : index
    %c0_152 = arith.constant 0 : index
    %170 = vector.load %arg5[%c0_150, %c26_151, %c0_152] : memref<1x148x64xbf16, #tpu.memory_space<vmem>>, vector<1x96x64xbf16>
    %171 = vector.shape_cast %170 : vector<1x96x64xbf16> to vector<96x64xbf16>
    %172 = vector.shape_cast %169 : vector<96x64xbf16> to vector<1x96x64xbf16>
    tpu.vector_store %arg5[%c0_150, %c26_151, %c0_152], %172 {strides = array<i32>} : memref<1x148x64xbf16, #tpu.memory_space<vmem>>, vector<1x96x64xbf16>,
    %cst_153 = arith.constant dense<0.000000e+00> : vector<64xf32>
    %173 = vector.multi_reduction <add>, %168, %cst_153 [0] : vector<96x64xf32> to vector<64xf32>
    %174 = vector.shape_cast %173 : vector<64xf32> to vector<1x64xf32>
    %175 = arith.addf %8, %174 : vector<1x64xf32>
    %176 = arith.mulf %168, %168 : vector<96x64xf32>
    %cst_154 = arith.constant dense<0.000000e+00> : vector<64xf32>
    %177 = vector.multi_reduction <add>, %176, %cst_154 [0] : vector<96x64xf32> to vector<64xf32>
    %178 = vector.shape_cast %177 : vector<64xf32> to vector<1x64xf32>
    %179 = arith.addf %9, %178 : vector<1x64xf32>
    %180 = tpu.concatenate %175, %179 in 1 : vector<1x64xf32>, vector<1x64xf32> -> vector<1x128xf32>
    %181 = vector.shape_cast %180 : vector<1x128xf32> to vector<1x1x128xf32>
    %c0_155 = arith.constant 0 : index
    %c0_156 = arith.constant 0 : index
    %c0_157 = arith.constant 0 : index
    %182 = vector.load %arg6[%c0_155, %c0_156, %c0_157] : memref<1x1x128xf32, #tpu.memory_space<vmem>>, vector<1x1x128xf32>
    tpu.vector_store %arg6[%c0_155, %c0_156, %c0_157], %181 {strides = array<i32>} : memref<1x1x128xf32, #tpu.memory_space<vmem>>, vector<1x1x128xf32>,
    return
  }
  func.func @transform_0(%arg0: i32) -> (i32, i32, i32) {
    %c0_i32 = arith.constant 0 : i32
    %c0_i32_0 = arith.constant 0 : i32
    %c0_i32_1 = arith.constant 0 : i32
    return %arg0, %c0_i32, %c0_i32_0 : i32, i32, i32
  }
  func.func @transform_1(%arg0: i32) -> (i32, i32, i32) {
    %c0_i32 = arith.constant 0 : i32
    %c0_i32_0 = arith.constant 0 : i32
    %c0_i32_1 = arith.constant 0 : i32
    %c0_i32_2 = arith.constant 0 : i32
    return %c0_i32, %c0_i32_0, %c0_i32_1 : i32, i32, i32
  }
  func.func @transform_2(%arg0: i32) -> (i32, i32) {
    %c0_i32 = arith.constant 0 : i32
    %c0_i32_0 = arith.constant 0 : i32
    %c0_i32_1 = arith.constant 0 : i32
    return %c0_i32, %c0_i32_0 : i32, i32
  }
  func.func @transform_3(%arg0: i32) -> (i32, i32) {
    %c0_i32 = arith.constant 0 : i32
    %c0_i32_0 = arith.constant 0 : i32
    %c0_i32_1 = arith.constant 0 : i32
    return %c0_i32, %c0_i32_0 : i32, i32
  }
  func.func @transform_4(%arg0: i32) -> (i32, i32, i32) {
    %c0_i32 = arith.constant 0 : i32
    %c0_i32_0 = arith.constant 0 : i32
    %c0_i32_1 = arith.constant 0 : i32
    return %arg0, %c0_i32, %c0_i32_0 : i32, i32, i32
  }
  func.func @transform_5(%arg0: i32) -> (i32, i32, i32) {
    %c0_i32 = arith.constant 0 : i32
    %c0_i32_0 = arith.constant 0 : i32
    %c0_i32_1 = arith.constant 0 : i32
    return %arg0, %c0_i32, %c0_i32_0 : i32, i32, i32
  }
}

module attributes {stable_mosaic.version = 11 : i64} {
  func.func @kernel(%arg0: i32, %arg1: memref<1x148x64xbf16, #tpu.memory_space<vmem>>, %arg2: memref<25x64x8xbf16, #tpu.memory_space<vmem>>, %arg3: memref<1x96x8xf32, #tpu.memory_space<vmem>>) attributes {dimension_semantics = [#tpu.dimension_semantics<parallel>], iteration_bounds = array<i64: 2>, scalar_prefetch = 0 : i64, scratch_operands = 0 : i64, tpu.core_type = #tpu.core_type<tc>, window_params = [{transform_indices = @transform_0, window_bounds = array<i64: 1, 148, 64>}, {pipeline_mode = #tpu.pipeline_mode<synchronous>, transform_indices = @transform_1, window_bounds = array<i64: 25, 64, 8>}, {transform_indices = @transform_2, window_bounds = array<i64: 1, 96, 8>}]} {
    %cst = arith.constant 0.000000e+00 : f32
    %0 = vector.broadcast %cst : f32 to vector<96x8xf32>
    %c0 = arith.constant 0 : index
    %c0_0 = arith.constant 0 : index
    %c0_1 = arith.constant 0 : index
    %1 = vector.load %arg1[%c0, %c0_0, %c0_1] : memref<1x148x64xbf16, #tpu.memory_space<vmem>>, vector<1x96x64xbf16>
    %2 = vector.shape_cast %1 : vector<1x96x64xbf16> to vector<96x64xbf16>
    %c0_2 = arith.constant 0 : index
    %c0_3 = arith.constant 0 : index
    %c0_4 = arith.constant 0 : index
    %3 = vector.load %arg2[%c0_2, %c0_3, %c0_4] : memref<25x64x8xbf16, #tpu.memory_space<vmem>>, vector<1x64x8xbf16>
    %4 = vector.shape_cast %3 : vector<1x64x8xbf16> to vector<64x8xbf16>
    %cst_5 = arith.constant dense<0.000000e+00> : vector<96x8xf32>
    %5 = tpu.matmul %2, %4, %cst_5 {dimension_numbers = #tpu.dot_dimension_numbers<[1], [0], [0], [1], [0, 0, 1, 1], [], []>} : vector<96x64xbf16>, vector<64x8xbf16>, vector<96x8xf32> -> vector<96x8xf32>
    %6 = arith.addf %0, %5 : vector<96x8xf32>
    %c0_6 = arith.constant 0 : index
    %c1 = arith.constant 1 : index
    %c0_7 = arith.constant 0 : index
    %7 = vector.load %arg1[%c0_6, %c1, %c0_7] : memref<1x148x64xbf16, #tpu.memory_space<vmem>>, vector<1x96x64xbf16>
    %8 = vector.shape_cast %7 : vector<1x96x64xbf16> to vector<96x64xbf16>
    %c1_8 = arith.constant 1 : index
    %c0_9 = arith.constant 0 : index
    %c0_10 = arith.constant 0 : index
    %9 = vector.load %arg2[%c1_8, %c0_9, %c0_10] : memref<25x64x8xbf16, #tpu.memory_space<vmem>>, vector<1x64x8xbf16>
    %10 = vector.shape_cast %9 : vector<1x64x8xbf16> to vector<64x8xbf16>
    %cst_11 = arith.constant dense<0.000000e+00> : vector<96x8xf32>
    %11 = tpu.matmul %8, %10, %cst_11 {dimension_numbers = #tpu.dot_dimension_numbers<[1], [0], [0], [1], [0, 0, 1, 1], [], []>} : vector<96x64xbf16>, vector<64x8xbf16>, vector<96x8xf32> -> vector<96x8xf32>
    %12 = arith.addf %6, %11 : vector<96x8xf32>
    %c0_12 = arith.constant 0 : index
    %c2 = arith.constant 2 : index
    %c0_13 = arith.constant 0 : index
    %13 = vector.load %arg1[%c0_12, %c2, %c0_13] : memref<1x148x64xbf16, #tpu.memory_space<vmem>>, vector<1x96x64xbf16>
    %14 = vector.shape_cast %13 : vector<1x96x64xbf16> to vector<96x64xbf16>
    %c2_14 = arith.constant 2 : index
    %c0_15 = arith.constant 0 : index
    %c0_16 = arith.constant 0 : index
    %15 = vector.load %arg2[%c2_14, %c0_15, %c0_16] : memref<25x64x8xbf16, #tpu.memory_space<vmem>>, vector<1x64x8xbf16>
    %16 = vector.shape_cast %15 : vector<1x64x8xbf16> to vector<64x8xbf16>
    %cst_17 = arith.constant dense<0.000000e+00> : vector<96x8xf32>
    %17 = tpu.matmul %14, %16, %cst_17 {dimension_numbers = #tpu.dot_dimension_numbers<[1], [0], [0], [1], [0, 0, 1, 1], [], []>} : vector<96x64xbf16>, vector<64x8xbf16>, vector<96x8xf32> -> vector<96x8xf32>
    %18 = arith.addf %12, %17 : vector<96x8xf32>
    %c0_18 = arith.constant 0 : index
    %c3 = arith.constant 3 : index
    %c0_19 = arith.constant 0 : index
    %19 = vector.load %arg1[%c0_18, %c3, %c0_19] : memref<1x148x64xbf16, #tpu.memory_space<vmem>>, vector<1x96x64xbf16>
    %20 = vector.shape_cast %19 : vector<1x96x64xbf16> to vector<96x64xbf16>
    %c3_20 = arith.constant 3 : index
    %c0_21 = arith.constant 0 : index
    %c0_22 = arith.constant 0 : index
    %21 = vector.load %arg2[%c3_20, %c0_21, %c0_22] : memref<25x64x8xbf16, #tpu.memory_space<vmem>>, vector<1x64x8xbf16>
    %22 = vector.shape_cast %21 : vector<1x64x8xbf16> to vector<64x8xbf16>
    %cst_23 = arith.constant dense<0.000000e+00> : vector<96x8xf32>
    %23 = tpu.matmul %20, %22, %cst_23 {dimension_numbers = #tpu.dot_dimension_numbers<[1], [0], [0], [1], [0, 0, 1, 1], [], []>} : vector<96x64xbf16>, vector<64x8xbf16>, vector<96x8xf32> -> vector<96x8xf32>
    %24 = arith.addf %18, %23 : vector<96x8xf32>
    %c0_24 = arith.constant 0 : index
    %c4 = arith.constant 4 : index
    %c0_25 = arith.constant 0 : index
    %25 = vector.load %arg1[%c0_24, %c4, %c0_25] : memref<1x148x64xbf16, #tpu.memory_space<vmem>>, vector<1x96x64xbf16>
    %26 = vector.shape_cast %25 : vector<1x96x64xbf16> to vector<96x64xbf16>
    %c4_26 = arith.constant 4 : index
    %c0_27 = arith.constant 0 : index
    %c0_28 = arith.constant 0 : index
    %27 = vector.load %arg2[%c4_26, %c0_27, %c0_28] : memref<25x64x8xbf16, #tpu.memory_space<vmem>>, vector<1x64x8xbf16>
    %28 = vector.shape_cast %27 : vector<1x64x8xbf16> to vector<64x8xbf16>
    %cst_29 = arith.constant dense<0.000000e+00> : vector<96x8xf32>
    %29 = tpu.matmul %26, %28, %cst_29 {dimension_numbers = #tpu.dot_dimension_numbers<[1], [0], [0], [1], [0, 0, 1, 1], [], []>} : vector<96x64xbf16>, vector<64x8xbf16>, vector<96x8xf32> -> vector<96x8xf32>
    %30 = arith.addf %24, %29 : vector<96x8xf32>
    %c0_30 = arith.constant 0 : index
    %c12 = arith.constant 12 : index
    %c0_31 = arith.constant 0 : index
    %31 = vector.load %arg1[%c0_30, %c12, %c0_31] : memref<1x148x64xbf16, #tpu.memory_space<vmem>>, vector<1x96x64xbf16>
    %32 = vector.shape_cast %31 : vector<1x96x64xbf16> to vector<96x64xbf16>
    %c5 = arith.constant 5 : index
    %c0_32 = arith.constant 0 : index
    %c0_33 = arith.constant 0 : index
    %33 = vector.load %arg2[%c5, %c0_32, %c0_33] : memref<25x64x8xbf16, #tpu.memory_space<vmem>>, vector<1x64x8xbf16>
    %34 = vector.shape_cast %33 : vector<1x64x8xbf16> to vector<64x8xbf16>
    %cst_34 = arith.constant dense<0.000000e+00> : vector<96x8xf32>
    %35 = tpu.matmul %32, %34, %cst_34 {dimension_numbers = #tpu.dot_dimension_numbers<[1], [0], [0], [1], [0, 0, 1, 1], [], []>} : vector<96x64xbf16>, vector<64x8xbf16>, vector<96x8xf32> -> vector<96x8xf32>
    %36 = arith.addf %30, %35 : vector<96x8xf32>
    %c0_35 = arith.constant 0 : index
    %c13 = arith.constant 13 : index
    %c0_36 = arith.constant 0 : index
    %37 = vector.load %arg1[%c0_35, %c13, %c0_36] : memref<1x148x64xbf16, #tpu.memory_space<vmem>>, vector<1x96x64xbf16>
    %38 = vector.shape_cast %37 : vector<1x96x64xbf16> to vector<96x64xbf16>
    %c6 = arith.constant 6 : index
    %c0_37 = arith.constant 0 : index
    %c0_38 = arith.constant 0 : index
    %39 = vector.load %arg2[%c6, %c0_37, %c0_38] : memref<25x64x8xbf16, #tpu.memory_space<vmem>>, vector<1x64x8xbf16>
    %40 = vector.shape_cast %39 : vector<1x64x8xbf16> to vector<64x8xbf16>
    %cst_39 = arith.constant dense<0.000000e+00> : vector<96x8xf32>
    %41 = tpu.matmul %38, %40, %cst_39 {dimension_numbers = #tpu.dot_dimension_numbers<[1], [0], [0], [1], [0, 0, 1, 1], [], []>} : vector<96x64xbf16>, vector<64x8xbf16>, vector<96x8xf32> -> vector<96x8xf32>
    %42 = arith.addf %36, %41 : vector<96x8xf32>
    %c0_40 = arith.constant 0 : index
    %c14 = arith.constant 14 : index
    %c0_41 = arith.constant 0 : index
    %43 = vector.load %arg1[%c0_40, %c14, %c0_41] : memref<1x148x64xbf16, #tpu.memory_space<vmem>>, vector<1x96x64xbf16>
    %44 = vector.shape_cast %43 : vector<1x96x64xbf16> to vector<96x64xbf16>
    %c7 = arith.constant 7 : index
    %c0_42 = arith.constant 0 : index
    %c0_43 = arith.constant 0 : index
    %45 = vector.load %arg2[%c7, %c0_42, %c0_43] : memref<25x64x8xbf16, #tpu.memory_space<vmem>>, vector<1x64x8xbf16>
    %46 = vector.shape_cast %45 : vector<1x64x8xbf16> to vector<64x8xbf16>
    %cst_44 = arith.constant dense<0.000000e+00> : vector<96x8xf32>
    %47 = tpu.matmul %44, %46, %cst_44 {dimension_numbers = #tpu.dot_dimension_numbers<[1], [0], [0], [1], [0, 0, 1, 1], [], []>} : vector<96x64xbf16>, vector<64x8xbf16>, vector<96x8xf32> -> vector<96x8xf32>
    %48 = arith.addf %42, %47 : vector<96x8xf32>
    %c0_45 = arith.constant 0 : index
    %c15 = arith.constant 15 : index
    %c0_46 = arith.constant 0 : index
    %49 = vector.load %arg1[%c0_45, %c15, %c0_46] : memref<1x148x64xbf16, #tpu.memory_space<vmem>>, vector<1x96x64xbf16>
    %50 = vector.shape_cast %49 : vector<1x96x64xbf16> to vector<96x64xbf16>
    %c8 = arith.constant 8 : index
    %c0_47 = arith.constant 0 : index
    %c0_48 = arith.constant 0 : index
    %51 = vector.load %arg2[%c8, %c0_47, %c0_48] : memref<25x64x8xbf16, #tpu.memory_space<vmem>>, vector<1x64x8xbf16>
    %52 = vector.shape_cast %51 : vector<1x64x8xbf16> to vector<64x8xbf16>
    %cst_49 = arith.constant dense<0.000000e+00> : vector<96x8xf32>
    %53 = tpu.matmul %50, %52, %cst_49 {dimension_numbers = #tpu.dot_dimension_numbers<[1], [0], [0], [1], [0, 0, 1, 1], [], []>} : vector<96x64xbf16>, vector<64x8xbf16>, vector<96x8xf32> -> vector<96x8xf32>
    %54 = arith.addf %48, %53 : vector<96x8xf32>
    %c0_50 = arith.constant 0 : index
    %c16 = arith.constant 16 : index
    %c0_51 = arith.constant 0 : index
    %55 = vector.load %arg1[%c0_50, %c16, %c0_51] : memref<1x148x64xbf16, #tpu.memory_space<vmem>>, vector<1x96x64xbf16>
    %56 = vector.shape_cast %55 : vector<1x96x64xbf16> to vector<96x64xbf16>
    %c9 = arith.constant 9 : index
    %c0_52 = arith.constant 0 : index
    %c0_53 = arith.constant 0 : index
    %57 = vector.load %arg2[%c9, %c0_52, %c0_53] : memref<25x64x8xbf16, #tpu.memory_space<vmem>>, vector<1x64x8xbf16>
    %58 = vector.shape_cast %57 : vector<1x64x8xbf16> to vector<64x8xbf16>
    %cst_54 = arith.constant dense<0.000000e+00> : vector<96x8xf32>
    %59 = tpu.matmul %56, %58, %cst_54 {dimension_numbers = #tpu.dot_dimension_numbers<[1], [0], [0], [1], [0, 0, 1, 1], [], []>} : vector<96x64xbf16>, vector<64x8xbf16>, vector<96x8xf32> -> vector<96x8xf32>
    %60 = arith.addf %54, %59 : vector<96x8xf32>
    %c0_55 = arith.constant 0 : index
    %c24 = arith.constant 24 : index
    %c0_56 = arith.constant 0 : index
    %61 = vector.load %arg1[%c0_55, %c24, %c0_56] : memref<1x148x64xbf16, #tpu.memory_space<vmem>>, vector<1x96x64xbf16>
    %62 = vector.shape_cast %61 : vector<1x96x64xbf16> to vector<96x64xbf16>
    %c10 = arith.constant 10 : index
    %c0_57 = arith.constant 0 : index
    %c0_58 = arith.constant 0 : index
    %63 = vector.load %arg2[%c10, %c0_57, %c0_58] : memref<25x64x8xbf16, #tpu.memory_space<vmem>>, vector<1x64x8xbf16>
    %64 = vector.shape_cast %63 : vector<1x64x8xbf16> to vector<64x8xbf16>
    %cst_59 = arith.constant dense<0.000000e+00> : vector<96x8xf32>
    %65 = tpu.matmul %62, %64, %cst_59 {dimension_numbers = #tpu.dot_dimension_numbers<[1], [0], [0], [1], [0, 0, 1, 1], [], []>} : vector<96x64xbf16>, vector<64x8xbf16>, vector<96x8xf32> -> vector<96x8xf32>
    %66 = arith.addf %60, %65 : vector<96x8xf32>
    %c0_60 = arith.constant 0 : index
    %c25 = arith.constant 25 : index
    %c0_61 = arith.constant 0 : index
    %67 = vector.load %arg1[%c0_60, %c25, %c0_61] : memref<1x148x64xbf16, #tpu.memory_space<vmem>>, vector<1x96x64xbf16>
    %68 = vector.shape_cast %67 : vector<1x96x64xbf16> to vector<96x64xbf16>
    %c11 = arith.constant 11 : index
    %c0_62 = arith.constant 0 : index
    %c0_63 = arith.constant 0 : index
    %69 = vector.load %arg2[%c11, %c0_62, %c0_63] : memref<25x64x8xbf16, #tpu.memory_space<vmem>>, vector<1x64x8xbf16>
    %70 = vector.shape_cast %69 : vector<1x64x8xbf16> to vector<64x8xbf16>
    %cst_64 = arith.constant dense<0.000000e+00> : vector<96x8xf32>
    %71 = tpu.matmul %68, %70, %cst_64 {dimension_numbers = #tpu.dot_dimension_numbers<[1], [0], [0], [1], [0, 0, 1, 1], [], []>} : vector<96x64xbf16>, vector<64x8xbf16>, vector<96x8xf32> -> vector<96x8xf32>
    %72 = arith.addf %66, %71 : vector<96x8xf32>
    %c0_65 = arith.constant 0 : index
    %c26 = arith.constant 26 : index
    %c0_66 = arith.constant 0 : index
    %73 = vector.load %arg1[%c0_65, %c26, %c0_66] : memref<1x148x64xbf16, #tpu.memory_space<vmem>>, vector<1x96x64xbf16>
    %74 = vector.shape_cast %73 : vector<1x96x64xbf16> to vector<96x64xbf16>
    %c12_67 = arith.constant 12 : index
    %c0_68 = arith.constant 0 : index
    %c0_69 = arith.constant 0 : index
    %75 = vector.load %arg2[%c12_67, %c0_68, %c0_69] : memref<25x64x8xbf16, #tpu.memory_space<vmem>>, vector<1x64x8xbf16>
    %76 = vector.shape_cast %75 : vector<1x64x8xbf16> to vector<64x8xbf16>
    %cst_70 = arith.constant dense<0.000000e+00> : vector<96x8xf32>
    %77 = tpu.matmul %74, %76, %cst_70 {dimension_numbers = #tpu.dot_dimension_numbers<[1], [0], [0], [1], [0, 0, 1, 1], [], []>} : vector<96x64xbf16>, vector<64x8xbf16>, vector<96x8xf32> -> vector<96x8xf32>
    %78 = arith.addf %72, %77 : vector<96x8xf32>
    %c0_71 = arith.constant 0 : index
    %c27 = arith.constant 27 : index
    %c0_72 = arith.constant 0 : index
    %79 = vector.load %arg1[%c0_71, %c27, %c0_72] : memref<1x148x64xbf16, #tpu.memory_space<vmem>>, vector<1x96x64xbf16>
    %80 = vector.shape_cast %79 : vector<1x96x64xbf16> to vector<96x64xbf16>
    %c13_73 = arith.constant 13 : index
    %c0_74 = arith.constant 0 : index
    %c0_75 = arith.constant 0 : index
    %81 = vector.load %arg2[%c13_73, %c0_74, %c0_75] : memref<25x64x8xbf16, #tpu.memory_space<vmem>>, vector<1x64x8xbf16>
    %82 = vector.shape_cast %81 : vector<1x64x8xbf16> to vector<64x8xbf16>
    %cst_76 = arith.constant dense<0.000000e+00> : vector<96x8xf32>
    %83 = tpu.matmul %80, %82, %cst_76 {dimension_numbers = #tpu.dot_dimension_numbers<[1], [0], [0], [1], [0, 0, 1, 1], [], []>} : vector<96x64xbf16>, vector<64x8xbf16>, vector<96x8xf32> -> vector<96x8xf32>
    %84 = arith.addf %78, %83 : vector<96x8xf32>
    %c0_77 = arith.constant 0 : index
    %c28 = arith.constant 28 : index
    %c0_78 = arith.constant 0 : index
    %85 = vector.load %arg1[%c0_77, %c28, %c0_78] : memref<1x148x64xbf16, #tpu.memory_space<vmem>>, vector<1x96x64xbf16>
    %86 = vector.shape_cast %85 : vector<1x96x64xbf16> to vector<96x64xbf16>
    %c14_79 = arith.constant 14 : index
    %c0_80 = arith.constant 0 : index
    %c0_81 = arith.constant 0 : index
    %87 = vector.load %arg2[%c14_79, %c0_80, %c0_81] : memref<25x64x8xbf16, #tpu.memory_space<vmem>>, vector<1x64x8xbf16>
    %88 = vector.shape_cast %87 : vector<1x64x8xbf16> to vector<64x8xbf16>
    %cst_82 = arith.constant dense<0.000000e+00> : vector<96x8xf32>
    %89 = tpu.matmul %86, %88, %cst_82 {dimension_numbers = #tpu.dot_dimension_numbers<[1], [0], [0], [1], [0, 0, 1, 1], [], []>} : vector<96x64xbf16>, vector<64x8xbf16>, vector<96x8xf32> -> vector<96x8xf32>
    %90 = arith.addf %84, %89 : vector<96x8xf32>
    %c0_83 = arith.constant 0 : index
    %c36 = arith.constant 36 : index
    %c0_84 = arith.constant 0 : index
    %91 = vector.load %arg1[%c0_83, %c36, %c0_84] : memref<1x148x64xbf16, #tpu.memory_space<vmem>>, vector<1x96x64xbf16>
    %92 = vector.shape_cast %91 : vector<1x96x64xbf16> to vector<96x64xbf16>
    %c15_85 = arith.constant 15 : index
    %c0_86 = arith.constant 0 : index
    %c0_87 = arith.constant 0 : index
    %93 = vector.load %arg2[%c15_85, %c0_86, %c0_87] : memref<25x64x8xbf16, #tpu.memory_space<vmem>>, vector<1x64x8xbf16>
    %94 = vector.shape_cast %93 : vector<1x64x8xbf16> to vector<64x8xbf16>
    %cst_88 = arith.constant dense<0.000000e+00> : vector<96x8xf32>
    %95 = tpu.matmul %92, %94, %cst_88 {dimension_numbers = #tpu.dot_dimension_numbers<[1], [0], [0], [1], [0, 0, 1, 1], [], []>} : vector<96x64xbf16>, vector<64x8xbf16>, vector<96x8xf32> -> vector<96x8xf32>
    %96 = arith.addf %90, %95 : vector<96x8xf32>
    %c0_89 = arith.constant 0 : index
    %c37 = arith.constant 37 : index
    %c0_90 = arith.constant 0 : index
    %97 = vector.load %arg1[%c0_89, %c37, %c0_90] : memref<1x148x64xbf16, #tpu.memory_space<vmem>>, vector<1x96x64xbf16>
    %98 = vector.shape_cast %97 : vector<1x96x64xbf16> to vector<96x64xbf16>
    %c16_91 = arith.constant 16 : index
    %c0_92 = arith.constant 0 : index
    %c0_93 = arith.constant 0 : index
    %99 = vector.load %arg2[%c16_91, %c0_92, %c0_93] : memref<25x64x8xbf16, #tpu.memory_space<vmem>>, vector<1x64x8xbf16>
    %100 = vector.shape_cast %99 : vector<1x64x8xbf16> to vector<64x8xbf16>
    %cst_94 = arith.constant dense<0.000000e+00> : vector<96x8xf32>
    %101 = tpu.matmul %98, %100, %cst_94 {dimension_numbers = #tpu.dot_dimension_numbers<[1], [0], [0], [1], [0, 0, 1, 1], [], []>} : vector<96x64xbf16>, vector<64x8xbf16>, vector<96x8xf32> -> vector<96x8xf32>
    %102 = arith.addf %96, %101 : vector<96x8xf32>
    %c0_95 = arith.constant 0 : index
    %c38 = arith.constant 38 : index
    %c0_96 = arith.constant 0 : index
    %103 = vector.load %arg1[%c0_95, %c38, %c0_96] : memref<1x148x64xbf16, #tpu.memory_space<vmem>>, vector<1x96x64xbf16>
    %104 = vector.shape_cast %103 : vector<1x96x64xbf16> to vector<96x64xbf16>
    %c17 = arith.constant 17 : index
    %c0_97 = arith.constant 0 : index
    %c0_98 = arith.constant 0 : index
    %105 = vector.load %arg2[%c17, %c0_97, %c0_98] : memref<25x64x8xbf16, #tpu.memory_space<vmem>>, vector<1x64x8xbf16>
    %106 = vector.shape_cast %105 : vector<1x64x8xbf16> to vector<64x8xbf16>
    %cst_99 = arith.constant dense<0.000000e+00> : vector<96x8xf32>
    %107 = tpu.matmul %104, %106, %cst_99 {dimension_numbers = #tpu.dot_dimension_numbers<[1], [0], [0], [1], [0, 0, 1, 1], [], []>} : vector<96x64xbf16>, vector<64x8xbf16>, vector<96x8xf32> -> vector<96x8xf32>
    %108 = arith.addf %102, %107 : vector<96x8xf32>
    %c0_100 = arith.constant 0 : index
    %c39 = arith.constant 39 : index
    %c0_101 = arith.constant 0 : index
    %109 = vector.load %arg1[%c0_100, %c39, %c0_101] : memref<1x148x64xbf16, #tpu.memory_space<vmem>>, vector<1x96x64xbf16>
    %110 = vector.shape_cast %109 : vector<1x96x64xbf16> to vector<96x64xbf16>
    %c18 = arith.constant 18 : index
    %c0_102 = arith.constant 0 : index
    %c0_103 = arith.constant 0 : index
    %111 = vector.load %arg2[%c18, %c0_102, %c0_103] : memref<25x64x8xbf16, #tpu.memory_space<vmem>>, vector<1x64x8xbf16>
    %112 = vector.shape_cast %111 : vector<1x64x8xbf16> to vector<64x8xbf16>
    %cst_104 = arith.constant dense<0.000000e+00> : vector<96x8xf32>
    %113 = tpu.matmul %110, %112, %cst_104 {dimension_numbers = #tpu.dot_dimension_numbers<[1], [0], [0], [1], [0, 0, 1, 1], [], []>} : vector<96x64xbf16>, vector<64x8xbf16>, vector<96x8xf32> -> vector<96x8xf32>
    %114 = arith.addf %108, %113 : vector<96x8xf32>
    %c0_105 = arith.constant 0 : index
    %c40 = arith.constant 40 : index
    %c0_106 = arith.constant 0 : index
    %115 = vector.load %arg1[%c0_105, %c40, %c0_106] : memref<1x148x64xbf16, #tpu.memory_space<vmem>>, vector<1x96x64xbf16>
    %116 = vector.shape_cast %115 : vector<1x96x64xbf16> to vector<96x64xbf16>
    %c19 = arith.constant 19 : index
    %c0_107 = arith.constant 0 : index
    %c0_108 = arith.constant 0 : index
    %117 = vector.load %arg2[%c19, %c0_107, %c0_108] : memref<25x64x8xbf16, #tpu.memory_space<vmem>>, vector<1x64x8xbf16>
    %118 = vector.shape_cast %117 : vector<1x64x8xbf16> to vector<64x8xbf16>
    %cst_109 = arith.constant dense<0.000000e+00> : vector<96x8xf32>
    %119 = tpu.matmul %116, %118, %cst_109 {dimension_numbers = #tpu.dot_dimension_numbers<[1], [0], [0], [1], [0, 0, 1, 1], [], []>} : vector<96x64xbf16>, vector<64x8xbf16>, vector<96x8xf32> -> vector<96x8xf32>
    %120 = arith.addf %114, %119 : vector<96x8xf32>
    %c0_110 = arith.constant 0 : index
    %c48 = arith.constant 48 : index
    %c0_111 = arith.constant 0 : index
    %121 = vector.load %arg1[%c0_110, %c48, %c0_111] : memref<1x148x64xbf16, #tpu.memory_space<vmem>>, vector<1x96x64xbf16>
    %122 = vector.shape_cast %121 : vector<1x96x64xbf16> to vector<96x64xbf16>
    %c20 = arith.constant 20 : index
    %c0_112 = arith.constant 0 : index
    %c0_113 = arith.constant 0 : index
    %123 = vector.load %arg2[%c20, %c0_112, %c0_113] : memref<25x64x8xbf16, #tpu.memory_space<vmem>>, vector<1x64x8xbf16>
    %124 = vector.shape_cast %123 : vector<1x64x8xbf16> to vector<64x8xbf16>
    %cst_114 = arith.constant dense<0.000000e+00> : vector<96x8xf32>
    %125 = tpu.matmul %122, %124, %cst_114 {dimension_numbers = #tpu.dot_dimension_numbers<[1], [0], [0], [1], [0, 0, 1, 1], [], []>} : vector<96x64xbf16>, vector<64x8xbf16>, vector<96x8xf32> -> vector<96x8xf32>
    %126 = arith.addf %120, %125 : vector<96x8xf32>
    %c0_115 = arith.constant 0 : index
    %c49 = arith.constant 49 : index
    %c0_116 = arith.constant 0 : index
    %127 = vector.load %arg1[%c0_115, %c49, %c0_116] : memref<1x148x64xbf16, #tpu.memory_space<vmem>>, vector<1x96x64xbf16>
    %128 = vector.shape_cast %127 : vector<1x96x64xbf16> to vector<96x64xbf16>
    %c21 = arith.constant 21 : index
    %c0_117 = arith.constant 0 : index
    %c0_118 = arith.constant 0 : index
    %129 = vector.load %arg2[%c21, %c0_117, %c0_118] : memref<25x64x8xbf16, #tpu.memory_space<vmem>>, vector<1x64x8xbf16>
    %130 = vector.shape_cast %129 : vector<1x64x8xbf16> to vector<64x8xbf16>
    %cst_119 = arith.constant dense<0.000000e+00> : vector<96x8xf32>
    %131 = tpu.matmul %128, %130, %cst_119 {dimension_numbers = #tpu.dot_dimension_numbers<[1], [0], [0], [1], [0, 0, 1, 1], [], []>} : vector<96x64xbf16>, vector<64x8xbf16>, vector<96x8xf32> -> vector<96x8xf32>
    %132 = arith.addf %126, %131 : vector<96x8xf32>
    %c0_120 = arith.constant 0 : index
    %c50 = arith.constant 50 : index
    %c0_121 = arith.constant 0 : index
    %133 = vector.load %arg1[%c0_120, %c50, %c0_121] : memref<1x148x64xbf16, #tpu.memory_space<vmem>>, vector<1x96x64xbf16>
    %134 = vector.shape_cast %133 : vector<1x96x64xbf16> to vector<96x64xbf16>
    %c22 = arith.constant 22 : index
    %c0_122 = arith.constant 0 : index
    %c0_123 = arith.constant 0 : index
    %135 = vector.load %arg2[%c22, %c0_122, %c0_123] : memref<25x64x8xbf16, #tpu.memory_space<vmem>>, vector<1x64x8xbf16>
    %136 = vector.shape_cast %135 : vector<1x64x8xbf16> to vector<64x8xbf16>
    %cst_124 = arith.constant dense<0.000000e+00> : vector<96x8xf32>
    %137 = tpu.matmul %134, %136, %cst_124 {dimension_numbers = #tpu.dot_dimension_numbers<[1], [0], [0], [1], [0, 0, 1, 1], [], []>} : vector<96x64xbf16>, vector<64x8xbf16>, vector<96x8xf32> -> vector<96x8xf32>
    %138 = arith.addf %132, %137 : vector<96x8xf32>
    %c0_125 = arith.constant 0 : index
    %c51 = arith.constant 51 : index
    %c0_126 = arith.constant 0 : index
    %139 = vector.load %arg1[%c0_125, %c51, %c0_126] : memref<1x148x64xbf16, #tpu.memory_space<vmem>>, vector<1x96x64xbf16>
    %140 = vector.shape_cast %139 : vector<1x96x64xbf16> to vector<96x64xbf16>
    %c23 = arith.constant 23 : index
    %c0_127 = arith.constant 0 : index
    %c0_128 = arith.constant 0 : index
    %141 = vector.load %arg2[%c23, %c0_127, %c0_128] : memref<25x64x8xbf16, #tpu.memory_space<vmem>>, vector<1x64x8xbf16>
    %142 = vector.shape_cast %141 : vector<1x64x8xbf16> to vector<64x8xbf16>
    %cst_129 = arith.constant dense<0.000000e+00> : vector<96x8xf32>
    %143 = tpu.matmul %140, %142, %cst_129 {dimension_numbers = #tpu.dot_dimension_numbers<[1], [0], [0], [1], [0, 0, 1, 1], [], []>} : vector<96x64xbf16>, vector<64x8xbf16>, vector<96x8xf32> -> vector<96x8xf32>
    %144 = arith.addf %138, %143 : vector<96x8xf32>
    %c0_130 = arith.constant 0 : index
    %c52 = arith.constant 52 : index
    %c0_131 = arith.constant 0 : index
    %145 = vector.load %arg1[%c0_130, %c52, %c0_131] : memref<1x148x64xbf16, #tpu.memory_space<vmem>>, vector<1x96x64xbf16>
    %146 = vector.shape_cast %145 : vector<1x96x64xbf16> to vector<96x64xbf16>
    %c24_132 = arith.constant 24 : index
    %c0_133 = arith.constant 0 : index
    %c0_134 = arith.constant 0 : index
    %147 = vector.load %arg2[%c24_132, %c0_133, %c0_134] : memref<25x64x8xbf16, #tpu.memory_space<vmem>>, vector<1x64x8xbf16>
    %148 = vector.shape_cast %147 : vector<1x64x8xbf16> to vector<64x8xbf16>
    %cst_135 = arith.constant dense<0.000000e+00> : vector<96x8xf32>
    %149 = tpu.matmul %146, %148, %cst_135 {dimension_numbers = #tpu.dot_dimension_numbers<[1], [0], [0], [1], [0, 0, 1, 1], [], []>} : vector<96x64xbf16>, vector<64x8xbf16>, vector<96x8xf32> -> vector<96x8xf32>
    %150 = arith.addf %144, %149 : vector<96x8xf32>
    %c0_136 = arith.constant 0 : index
    %c0_137 = arith.constant 0 : index
    %c0_138 = arith.constant 0 : index
    %151 = vector.load %arg3[%c0_136, %c0_137, %c0_138] : memref<1x96x8xf32, #tpu.memory_space<vmem>>, vector<1x96x8xf32>
    %152 = vector.shape_cast %151 : vector<1x96x8xf32> to vector<96x8xf32>
    %153 = vector.shape_cast %150 : vector<96x8xf32> to vector<1x96x8xf32>
    tpu.vector_store %arg3[%c0_136, %c0_137, %c0_138], %153 {strides = array<i32>} : memref<1x96x8xf32, #tpu.memory_space<vmem>>, vector<1x96x8xf32>,
    return
  }
  func.func @transform_0(%arg0: i32) -> (i32, i32, i32) {
    %c0_i32 = arith.constant 0 : i32
    %c0_i32_0 = arith.constant 0 : i32
    %c0_i32_1 = arith.constant 0 : i32
    return %arg0, %c0_i32, %c0_i32_0 : i32, i32, i32
  }
  func.func @transform_1(%arg0: i32) -> (i32, i32, i32) {
    %c0_i32 = arith.constant 0 : i32
    %c0_i32_0 = arith.constant 0 : i32
    %c0_i32_1 = arith.constant 0 : i32
    %c0_i32_2 = arith.constant 0 : i32
    return %c0_i32, %c0_i32_0, %c0_i32_1 : i32, i32, i32
  }
  func.func @transform_2(%arg0: i32) -> (i32, i32, i32) {
    %c0_i32 = arith.constant 0 : i32
    %c0_i32_0 = arith.constant 0 : i32
    %c0_i32_1 = arith.constant 0 : i32
    return %arg0, %c0_i32, %c0_i32_0 : i32, i32, i32
  }
}

</mosaic_0001>

<bundles_post_ra>
// kernel: discriminator_forward.2
= control target key start
LH: loop header
LB: loop body
LE: loop exit
PB: predicated region body
PF: predicated region fallthrough
CT: control target
= control target key end

     0   :  { %s8077_s18 = smov 0   ;;  %s9765_s0 = inlined_call_operand.vmem [shape: bf16[2,148,128], index: 0, kind: input, shape index: {}]   ;;  %s9766_s1 = inlined_call_operand.vmem [shape: bf16[25,128,64], index: 1, kind: input, shape index: {}]   ;;  %s9767_s2 = inlined_call_operand.vmem [shape: f32[1,64], index: 2, kind: input, shape index: {}]   ;;  %s9768_s3 = inlined_call_operand.vmem [shape: f32[96,1], index: 3, kind: input, shape index: {}]   ;;  %s9769_s4 = inlined_call_operand.vmem [shape: bf16[2,148,64], index: 4, kind: output, shape index: {0}]   ;;  %s9770_s5 = inlined_call_operand.vmem [shape: f32[2,1,128], index: 5, kind: output, shape index: {1}]  }
   0x1 LB: > { %s5684_s19 = sadd.s32 4294967295, %s8043_s18   ;;  %p5688_p0 = scmp.ge.s32.totalorder %s8043_s18, 1  ;;  %s8043_s18 = sphi %s8077_s18, %s16_s18  }
   0x2   : > { %p190_p1 = scmp.lt.s32.totalorder %s8043_s18, 3 }
   0x4   : > { %p191_p2 = pnand %p5688_p0, %p190_p1 }
   0x5   : > { %v7743_v0 = vld [vmem:[%s9766_s1 + $0x40] sm:$0xff] (!%p191_p2)   ;;  %p221_p3 = scmp.lt.s32.totalorder (!%p191_p2), %s5684_s19, 1  ;;  %v7745_v2 = vld [vmem:[%s9766_s1 + $0x48] sm:$0xff] (!%p191_p2)   ;;  %v7747_v4 = vld [vmem:[%s9766_s1 + $0x50] sm:$0xff] (!%p191_p2)   ;;  %vm326_vm0 = vsmask.f32 (!%p191_p2), 7424 }
   0x6   : > { %194 = sbr.rel (%p191_p2) target bundleno = 807 (0x327), region = 36  ;;  %v7744_v1 = vld [vmem:[%s9766_s1 + $0x300] sm:$0xff] (!%p191_p2)   ;;  %6726 = vmatprep.subr.bf16.mxu1 (!%p191_p2), %v7743_v0  ;;  %v7746_v3 = vld [vmem:[%s9766_s1 + $0x308] sm:$0xff] (!%p191_p2)   ;;  %v7748_v5 = vld [vmem:[%s9766_s1 + $0x310] sm:$0xff] (!%p191_p2)   ;;  %vm670_vm1 = vcmask (!%p191_p2), 1046528   ;;  %vm1058_vm3 = vcmask (!%p191_p2), 1045504  }
   0x7   : > { %7062 = vmatprep.subr.bf16.mxu0 (!%p191_p2), %v7744_v1  ;;  %6727 = vmatpush3.bf16.msra.mxu1 (!%p191_p2), %v7743_v0  ;;  %v7749_v6 = vld [vmem:[%s9766_s1 + $0x58] sm:$0xff] (!%p191_p2)   ;;  %v7751_v8 = vld [vmem:[%s9766_s1 + $0x60] sm:$0xff] (!%p191_p2)   ;;  %v7753_v10 = vld [vmem:[%s9766_s1 + $0x68] sm:$0xff] (!%p191_p2)   ;;  %vm852_vm2 = vsmask.f32 (!%p191_p2), 6400  ;;  %vm1694_vm4 = vcmask (!%p191_p2), 1044480  }
   0x8   : > { %7063 = vmatpush3.bf16.msra.mxu0 (!%p191_p2), %v7744_v1  ;;  %6728 = vmatprep.subr.bf16.mxu1 (!%p191_p2), %v7745_v2  ;;  %v7750_v7 = vld [vmem:[%s9766_s1 + $0x318] sm:$0xff] (!%p191_p2)   ;;  %v7752_v9 = vld [vmem:[%s9766_s1 + $0x320] sm:$0xff] (!%p191_p2)   ;;  %v7754_v13 = vld [vmem:[%s9766_s1 + $0x328] sm:$0xff] (!%p191_p2)   ;;  %vm1463_vm5 = vsmask.f32 (!%p191_p2), 5376  ;;  %vm245_vm7 = vcmask (!%p191_p2), 517120  }
   0x9   : > { %7064 = vmatprep.subr.bf16.mxu0 (!%p191_p2), %v7746_v3  ;;  %v7755_v16 = vld [vmem:[%s9766_s1 + $0x70] sm:$0xff] (!%p191_p2)   ;;  %v7757_v28 = vld [vmem:[%s9766_s1 + $0x78] sm:$0xff] (!%p191_p2)   ;;  %v7761_v42 = vld [vmem:[%s9766_s1] sm:$0xff] (!%p191_p2)   ;;  %vm1876_vm6 = vsmask.f32 (!%p191_p2), 4352  ;;  %vm235_vm8 = vcmask (!%p191_p2), 519168  }
   0xa   : > { %v7756_v23 = vld [vmem:[%s9766_s1 + $0x330] sm:$0xff] (!%p191_p2)   ;;  %v7758_v35 = vld [vmem:[%s9766_s1 + $0x338] sm:$0xff] (!%p191_p2)   ;;  %v7764_v44 = vld [vmem:[%s9766_s1 + $0x340] sm:$0xff] (!%p191_p2)   ;;  %vm241_vm9 = vcmask (!%p191_p2), 519169   ;;  %vm239_vm10 = vcmask (!%p191_p2), 516096   ;;  %vm5525_vm11 = vcmask (!%p191_p2), 523264  }
   0xb   : > { %6729 = vmatpush3.bf16.msra.mxu1 (!%p191_p2), %v7745_v2  ;;  %v7767_v46 = vld [vmem:[%s9766_s1 + $0x8] sm:$0xff] (!%p191_p2)   ;;  %v7769_v55 = vld [vmem:[%s9766_s1 + $0x10] sm:$0xff] (!%p191_p2)   ;;  %vm5461_vm12 = vcmask (!%p191_p2), 1040384   ;;  %vm5462_vm13 = vcmask (!%p191_p2), 1044484   ;;  %s8046_s29 = smov (!%p191_p2), 64  }
   0xc   : > { %7065 = vmatpush3.bf16.msra.mxu0 (!%p191_p2), %v7746_v3  ;;  %6730 = vmatprep.subr.bf16.mxu1 (!%p191_p2), %v7747_v4  ;;  %v7768_v51 = vld [vmem:[%s9766_s1 + $0x348] sm:$0xff] (!%p191_p2)   ;;  %v7770_v62 = vld [vmem:[%s9766_s1 + $0x350] sm:$0xff] (!%p191_p2)   ;;  %v7771_v3 = vld [vmem:[%s9766_s1 + $0x18] sm:$0xff] (!%p191_p2)  }
   0xd   : > { %s9817_s19 = smov (!%p221_p3, %s5684_s19), 1  ;;  %7066 = vmatprep.subr.bf16.mxu0 %v7748_v5  ;;  %vm9663_vm14 = vmor %vm5461_vm12, %vm5462_vm13 }
   0xe   : > { %s7730_s11 = smul.u32 76, %s9817_s19 }
   0xf   : > { %6731 = vmatpush3.bf16.msra.mxu1 %v7747_v4 }
  0x10   : > { %7067 = vmatpush3.bf16.msra.mxu0 %v7748_v5  ;;  %6732 = vmatprep.subr.bf16.mxu1 %v7749_v6  ;;  %s8123_s20 = scalar_lea.vmem %s9765_s0, %s7730_s11  ;;  %s9241_s9 = scalar_lea.vmem %s9769_s4, %s7730_s11 }
  0x11   : > { %7068 = vmatprep.subr.bf16.mxu0 %v7750_v7  ;;  %v247_v11 = vld [vmem:[%s8123_s20] sm:$0xf]  ;;  %v8130_v12 = vld [vmem:[%s8123_s20 + $0x4] sm:$0xf]  ;;  %v8139_v15 = vld [vmem:[%s8123_s20 + $0x8] sm:$0xff]  }
  0x12   : > { %v8136_v14 = vcombine.low %v247_v11, %v8130_v12  ;;  %v8145_v17 = vld [vmem:[%s8123_s20 + $0x10] sm:$0xf]  ;;  %v335_v20 = vshll.u32 %v8139_v15, 16  ;;  %v8151_v21 = vld [vmem:[%s8123_s20 + $0x14] sm:$0xff]   ;;  %v2699_v22 = vld [vmem:[%s8123_s20 + $0xc] sm:$0xe] }
  0x13   : > { %6733 = vmatpush3.bf16.msra.mxu1 %v7749_v6  ;;  %v8160_v26 = vcombine.low %v2699_v22, %v8145_v17  ;;  %v2721_v27 = vrot.slane %v8151_v21, 1  ;;  %v8167_v29 = vld [vmem:[%s8123_s20 + $0x10] sm:$0xff]   ;;  %v339_v32 = vshrl.u32 %v8139_v15, 16  ;;  %v8173_v34 = vld [vmem:[%s8123_s20 + $0x1c] sm:$0xff]   ;;  %v8205_v54 = vld [vmem:[%s8123_s20 + $0x24] sm:$0xff]   ;;  %v9780_v57 = vshll.u32 %v8151_v21, 16 }
  0x14   : > { %7069 = vmatpush3.bf16.msra.mxu0 %v7750_v7  ;;  %6734 = vmatprep.subr.bf16.mxu1 %v7751_v8  ;;  %v328_v18 = vshrl.u32 %v8136_v14, 16  ;;  %v330_v19 = vshll.u32 %v8136_v14, 16  ;;  %v337_v25 = vrot.slane %v335_v20, 1  ;;  %v343_v33 = vshll.u32 %v8167_v29, 16  ;;  %v8195_v48 = vld [vmem:[%s8123_s20 + $0x18] sm:$0xff]   ;;  %v8216_v60 = vld [vmem:[%s8123_s20 + $0x20] sm:$0xff]  }
  0x15   : > { %7070 = vmatprep.subr.bf16.mxu0 %v7752_v9  ;;  %v2720_v31 = vrot.slane %v8160_v26, 1  ;;  %v347_v41 = vshrl.u32 %v8167_v29, 16  ;;  %v2723_v43 = vrot.slane %v8173_v34, 1  ;;  %v351_v53 = vshll.u32 %v8195_v48, 16  ;;  %v8219_v61 = vld [vmem:[%s8123_s20 + $0x2c] sm:$0xff]   ;;  %v7772_v6 = vld [vmem:[%s9766_s1 + $0x358] sm:$0xff]  }
  0x16   : > { %v332_v24 = vrot.slane %v330_v19, 1  ;;  %v345_v38 = vrot.slane %v343_v33, 1  ;;  %v341_v39 = vor.u32 %v339_v32, %v337_v25  ;;  %v866_v40 = vrot.slane %v343_v33, 2  ;;  %v8250_v19 = vld [vmem:[%s8123_s20 + $0x34] sm:$0xff]   ;;  %v7774_v22 = vld [vmem:[%s9766_s1 + $0x20] sm:$0xff]  }
  0x17   : > { %6735 = vmatpush3.bf16.msra.mxu1 %v7751_v8  ;;  %v2722_v37 = vsel %vm670_vm1, %v2720_v31, %v2721_v27  ;;  %v865_v45 = vrot.slane %v347_v41, 1  ;;  %v2724_v50 = vsel %vm670_vm1, %v2721_v27, %v2723_v43  ;;  %v355_v56 = vshrl.u32 %v8195_v48, 16  ;;  %v8240_v8 = vld [vmem:[%s8123_s20 + $0x28] sm:$0xff]   ;;  %v7786_v33 = vld [vmem:[%s8123_s20 + $0x3c] ss:$0 sps:$4 sm:$0x11]  }
  0x18   : > { %7071 = vmatpush3.bf16.msra.mxu0 %v7752_v9  ;;  %6736 = vmatprep.subr.bf16.mxu1 %v7753_v10  ;;  %v333_v30 = vor.u32 %v332_v24, %v328_v18  ;;  %v346_v47 = vsel %vm326_vm0, %v341_v39, %v345_v38  ;;  %v349_v52 = vor.u32 %v347_v41, %v345_v38  ;;  %v353_v58 = vrot.slane %v351_v53, 1  ;;  %v7779_v39 = vld [vmem:[%s9766_s1 + $0x28] sm:$0xff]  }
  0x19   : > { %7072 = vmatprep.subr.bf16.mxu0 %v7754_v13  ;;  %7078 = vmatprep.mubr.bf16.mxu0 %v2722_v37  ;;  %v8197_v49 = vor.u32 %v866_v40, %v865_v45  ;;  %v2725_v59 = vrot.slane %v8205_v54, 1  ;;  %v359_v2 = vshll.u32 %v8216_v60, 16  ;;  %v2727_v4 = vrot.slane %v8219_v61, 1 }
  0x1a   : > { %v338_v36 = vsel %vm326_vm0, %v333_v30, %v337_v25  ;;  %v354_v63 = vsel %vm326_vm0, %v349_v52, %v353_v58  ;;  %v357_v1 = vor.u32 %v355_v56, %v353_v58  ;;  %v9779_v5 = vshrl.u32 %v8151_v21, 16  ;;  %v7776_v25 = vld [vmem:[%s9766_s1 + $0x360] sm:$0xff]  }
  0x1b   : > { %6737 = vmatpush3.bf16.msra.mxu1 %v7753_v10  ;;  %6742 = vmatprep.mubr.bf16.mxu1 %v338_v36  ;;  %v2726_v0 = vsel %vm670_vm1, %v2723_v43, %v2725_v59  ;;  %v361_v7 = vrot.slane %v359_v2, 1  ;;  %v363_v9 = vshrl.u32 %v8216_v60, 16  ;;  %v2902_v10 = vshrl.u32 %v8160_v26, 16 }
  0x1c   : > { %7073 = vmatpush3.bf16.msra.mxu0 %v7754_v13  ;;  %6738 = vmatprep.subr.bf16.mxu1 %v7755_v16  ;;  %v2728_v11 = vsel %vm670_vm1, %v2725_v59, %v2727_v4  ;;  %v367_v18 = vshll.u32 %v8240_v8, 16  ;;  %v2905_v24 = vshll.u32 %v8160_v26, 16  ;;  %v371_v30 = vshrl.u32 %v8240_v8, 16  ;;  %v7784_v59 = vld [vmem:[%s9766_s1 + $0x370] sm:$0xff]  }
  0x1d   : > { %7074 = vmatprep.subr.bf16.mxu0 %v7756_v23  ;;  %v362_v13 = vsel %vm326_vm0, %v357_v1, %v361_v7  ;;  %v2731_v38 = vrot.slane %v7786_v33, 1  ;;  %v2904_v40 = vrot.slane %v2902_v10, 1  ;;  %v2910_v45 = vrot.slane %v9780_v57, 2 }
  0x1e   : > { %v369_v27 = vrot.slane %v367_v18, 1  ;;  %v2907_v41 = vrot.slane %v2905_v24, 2  ;;  %v9778_v52 = vshll.u32 %v8173_v34, 16  ;;  %v9771_v24 = vshrl.u32 %v8250_v19, 16 }
  0x1f   : > { %6739 = vmatpush3.bf16.msra.mxu1 %v7755_v16  ;;  %v365_v16 = vor.u32 %v363_v9, %v361_v7 }
  0x20   : > { %7075 = vmatpush3.bf16.msra.mxu0 %v7756_v23  ;;  %6740 = vmatprep.subr.bf16.mxu1 %v7757_v28  ;;  %v8256_v23 = vld [vmem:[%s8123_s20 + $0x30] ss:$0 sps:$4 sm:$0x11]   ;;  %v373_v36 = vor.u32 %v371_v30, %v369_v27 }
  0x21   : > { %7076 = vmatprep.subr.bf16.mxu0 %v7758_v35  ;;  %v375_v31 = vshll.u32 %v8256_v23, 16  ;;  %v370_v26 = vsel %vm326_vm0, %v365_v16, %v369_v27  ;;  %v7790_v16 = vld [vmem:[%s9766_s1 + $0x380] sm:$0xff]  }
  0x23   : > { %6741 = vmatpush3.bf16.msra.mxu1 %v7757_v28  ;;  %v2729_v28 = vrot.slane %v8250_v19, 1  ;;  %v377_v37 = vrot.slane %v375_v31, 1  ;;  %v7791_v31 = vld [vmem:[%s9766_s1 + $0x88] sm:$0xff]  }
  0x24   : > { %7077 = vmatpush3.bf16.msra.mxu0 %v7758_v35  ;;  %6754 = vmatprep.subr.bf16.mxu1 %v7761_v42 }
  0x25   : > { %7090 = vmatprep.subr.bf16.mxu0 %v7764_v44  ;;  %v2730_v35 = vsel %vm670_vm1, %v2727_v4, %v2729_v28  ;;  %v2732_v43 = vsel %vm670_vm1, %v2729_v28, %v2731_v38  ;;  %v7789_v4 = vld [vmem:[%s9766_s1 + $0x80] sm:$0xff]   ;;  %v7793_v38 = vld [vmem:[%s9766_s1 + $0x90] sm:$0xff]  }
  0x26   : > { %6743 = vmatmul.mubr.bf16.vlgmr.msra.gmra.mrb[0].mxu1 %v346_v47  ;;  %v2908_v47 = vor.u32 %v2907_v41, %v2904_v40  ;;  %v2925_v40 = vrot.slane %v9771_v24, 1 }
  0x27   : > { %6755 = vmatpush3.bf16.msra.mxu1 %v7761_v42  ;;  %7079 = vmatmul.mubr.bf16.vlgmr.msra.gmra.mrb[0].mxu0 %v2724_v50  ;;  %v378_v42 = vsel %vm326_vm0, %v373_v36, %v377_v37 }
  0x28   : > { %7091 = vmatpush3.bf16.msra.mxu0 %v7764_v44  ;;  %6756 = vmatprep.subr.bf16.mxu1 %v7767_v46  ;;  %v2909_v44 = vrot.slane %v9779_v5, 1 }
  0x29   : > { %7092 = vmatprep.subr.bf16.mxu0 %v7768_v51  ;;  %6746 = vmatprep.mubr.bf16.mxu1 %v354_v63  ;;  %v9776_v63 = vshll.u32 %v8205_v54, 16 }
  0x2a   : > { %7082 = vmatprep.mubr.bf16.mxu0 %v2726_v0  ;;  %v2911_v50 = vor.u32 %v2910_v45, %v2909_v44  ;;  %v9775_v0 = vshrl.u32 %v8205_v54, 16  ;;  %v649_v44 = vld [vmem:[%s8123_s20] sm:$0xe]  ;;  %v7795_v45 = vld [vmem:[%s9766_s1 + $0x98] sm:$0xff]  }
  0x2b   : > { %6757 = vmatpush3.bf16.msra.mxu1 %v7767_v46  ;;  %v7780_v46 = vld [vmem:[%s9766_s1 + $0x368] sm:$0xff]   ;;  %v2918_v7 = vrot.slane %v9776_v63, 2 }
  0x2c   : > { %7093 = vmatpush3.bf16.msra.mxu0 %v7768_v51  ;;  %6758 = vmatprep.subr.bf16.mxu1 %v7769_v55  ;;  %v7782_v51 = vld [vmem:[%s9766_s1 + $0x30] sm:$0xff]   ;;  %v2912_v58 = vsel %vm852_vm2, %v2908_v47, %v2911_v50 }
  0x2d   : > { %7094 = vmatprep.subr.bf16.mxu0 %v7770_v62 }
  0x2e   : > { %6747 = vmatmul.mubr.bf16.gmra.mrb[4].mxu1 %v362_v13  ;;  %v9773_v13 = vshrl.u32 %v8219_v61, 16 }
  0x2f   : > { %6759 = vmatpush3.bf16.msra.mxu1 %v7769_v55  ;;  %7083 = vmatmul.mubr.bf16.gmra.mrb[4].mxu0 %v2728_v11  ;;  %v9777_v55 = vshrl.u32 %v8173_v34, 16  ;;  %v9774_v11 = vshll.u32 %v8219_v61, 16 }
  0x30   : > { %7095 = vmatpush3.bf16.msra.mxu0 %v7770_v62  ;;  %6760 = vmatprep.subr.bf16.mxu1 %v7771_v3  ;;  %v7787_v62 = vld [vmem:[%s9766_s1 + $0x38] sm:$0xff]   ;;  %v2921_v33 = vrot.slane %v9773_v13, 1 }
  0x31   : > { %7096 = vmatprep.subr.bf16.mxu0 %v7772_v6  ;;  %6750 = vmatprep.mubr.bf16.mxu1 %v370_v26  ;;  %v2913_v1 = vrot.slane %v9777_v55, 1  ;;  %v2922_v26 = vrot.slane %v9774_v11, 2 }
  0x32   : > { %7086 = vmatprep.mubr.bf16.mxu0 %v2730_v35  ;;  %v7792_v35 = vld [vmem:[%s9766_s1 + $0x388] sm:$0xff]  }
  0x33   : > { %6761 = vmatpush3.bf16.msra.mxu1 %v7771_v3  ;;  %v2914_v3 = vrot.slane %v9778_v52, 2 }
  0x34   : > { %7097 = vmatpush3.bf16.msra.mxu0 %v7772_v6  ;;  %6762 = vmatprep.subr.bf16.mxu1 %v7774_v22  ;;  %v2917_v6 = vrot.slane %v9775_v0, 1 }
  0x35   : > { %7098 = vmatprep.subr.bf16.mxu0 %v7776_v25  ;;  %v2915_v10 = vor.u32 %v2914_v3, %v2913_v1  ;;  %v7796_v1 = vld [vmem:[%s9766_s1 + $0x398] sm:$0xff]  }
  0x36   : > { %6751 = vmatmul.mubr.bf16.gmra.mrb[8].mxu1 %v378_v42  ;;  %v2919_v27 = vor.u32 %v2918_v7, %v2917_v6  ;;  %v7794_v42 = vld [vmem:[%s9766_s1 + $0x390] sm:$0xff]  }
  0x37   : > { %6763 = vmatpush3.bf16.msra.mxu1 %v7774_v22  ;;  %7087 = vmatmul.mubr.bf16.gmra.mrb[8].mxu0 %v2732_v43  ;;  %v9772_v22 = vshll.u32 %v8250_v19, 16  ;;  %v2916_v28 = vsel %vm852_vm2, %v2911_v50, %v2915_v10  ;;  %v2923_v43 = vor.u32 %v2922_v26, %v2921_v33  ;;  %v672_v33 = vrot.slane %v8139_v15, 1 }
  0x38   : > { %7099 = vmatpush3.bf16.msra.mxu0 %v7776_v25  ;;  %6764 = vmatprep.subr.bf16.mxu1 %v7779_v39  ;;  %v8321_v25 = vld [vmem:[%s8123_s20 + $0x3c] ss:$0 sps:$4 sm:$0x33]  }
  0x39   : > { %7100 = vmatprep.subr.bf16.mxu0 %v7780_v46  ;;  %6770 = vmatprep.mubr.bf16.mxu1 %v8136_v14  ;;  %v7788_v14 = vld [vmem:[%s9766_s1 + $0x378] sm:$0xff]   ;;  %v2930_v36 = vshrl.u32 %v8321_v25, 16  ;;  %v2933_v37 = vshll.u32 %v8321_v25, 16  ;;  %v2926_v41 = vrot.slane %v9772_v22, 2 }
  0x3a   : > { %7106 = vmatprep.mubr.bf16.mxu0 %v2912_v58  ;;  %v3111_v58 = vrot.slane %v8205_v54, 2 }
  0x3b   : > { %6765 = vmatpush3.bf16.msra.mxu1 %v7779_v39  ;;  %v2920_v39 = vsel %vm852_vm2, %v2915_v10, %v2919_v27  ;;  %v2935_v47 = vrot.slane %v2933_v37, 2  ;;  %v2927_v50 = vor.u32 %v2926_v41, %v2925_v40  ;;  %v861_v40 = vrot.slane %v339_v32, 1 }
  0x3c   : > { %7101 = vmatpush3.bf16.msra.mxu0 %v7780_v46  ;;  %6766 = vmatprep.subr.bf16.mxu1 %v7782_v51  ;;  %v2932_v46 = vrot.slane %v2930_v36, 1  ;;  %v7799_v36 = vld [vmem:[%s9766_s1 + $0xa8] sm:$0xff]   ;;  %v862_v41 = vrot.slane %v335_v20, 2  ;;  %v870_v20 = vrot.slane %v351_v53, 2 }
  0x3d   : > { %7102 = vmatprep.subr.bf16.mxu0 %v7784_v59  ;;  %v2928_v6 = vsel %vm852_vm2, %v2923_v43, %v2927_v50 }
  0x3f   : > { %6767 = vmatpush3.bf16.msra.mxu1 %v7782_v51  ;;  %v3109_v51 = vrot.slane %v8173_v34, 2 }
  0x40   : > { %7103 = vmatpush3.bf16.msra.mxu0 %v7784_v59  ;;  %6768 = vmatprep.subr.bf16.mxu1 %v7787_v62  ;;  %v2924_v59 = vsel %vm852_vm2, %v2919_v27, %v2923_v43  ;;  %v7797_v27 = vld [vmem:[%s9766_s1 + $0xa0] sm:$0xff]   ;;  %v869_v43 = vrot.slane %v355_v56, 1  ;;  %v7804_v56 = vld [vmem:[%s9766_s1 + $0xb8] sm:$0xff]  }
  0x41   : > { %7104 = vmatprep.subr.bf16.mxu0 %v7788_v14  ;;  %v8363_v3 = vsel %vm1058_vm3, %v3109_v51, %v3111_v58 }
  0x43   : > { %6769 = vmatpush3.bf16.msra.mxu1 %v7787_v62  ;;  %v3085_v62 = vld [vmem:[%s8123_s20 + $0xc] sm:$0xc] }
  0x44   : > { %7105 = vmatpush3.bf16.msra.mxu0 %v7788_v14  ;;  %6782 = vmatprep.subr.bf16.mxu1 %v7789_v4  ;;  %v3113_v14 = vrot.slane %v8219_v61, 2  ;;  %v6068_v7 = vcombine.low %v3085_v62, %v8145_v17  ;;  %v7807_v62 = vld [vmem:[%s9766_s1 + $0xc0] sm:$0xff]  }
  0x45   : > { %7118 = vmatprep.subr.bf16.mxu0 %v7790_v16 }
  0x46   : > { %6771 = vmatmul.mubr.bf16.vlgmr.msra.gmra.mrb[0].mxu1 %v8139_v15  ;;  %v8373_v10 = vsel %vm1058_vm3, %v3111_v58, %v3113_v14  ;;  %v3106_v26 = vrot.slane %v6068_v7, 2  ;;  %v7802_v15 = vld [vmem:[%s9766_s1 + $0x3b0] sm:$0xff]   ;;  %v674_v58 = vrot.slane %v8167_v29, 1 }
  0x47   : > { %6783 = vmatpush3.bf16.msra.mxu1 %v7789_v4  ;;  %7107 = vmatmul.mubr.bf16.vlgmr.msra.gmra.mrb[0].mxu0 %v2916_v28  ;;  %v8368_v4 = vcombine.low %v649_v44, %v8130_v12  ;;  %v2936_v28 = vor.u32 %v2935_v47, %v2932_v46  ;;  %v7798_v12 = vld [vmem:[%s9766_s1 + $0x3a0] sm:$0xff]   ;;  %v7801_v44 = vld [vmem:[%s9766_s1 + $0xb0] sm:$0xff]   ;;  %v871_v46 = vor.u32 %v870_v20, %v869_v43  ;;  %v7805_v47 = vld [vmem:[%s9766_s1 + $0x3b8] sm:$0xff]   ;;  %v3117_v20 = vrot.slane %v8321_v25, 2 }
  0x48   : > { %7119 = vmatpush3.bf16.msra.mxu0 %v7790_v16  ;;  %6784 = vmatprep.subr.bf16.mxu1 %v7791_v31  ;;  %v3115_v16 = vrot.slane %v8250_v19, 2  ;;  %v7818_v25 = vld [vmem:[%s9766_s1 + $0xe8] sm:$0xff]  }
  0x49   : > { %7120 = vmatprep.subr.bf16.mxu0 %v7792_v35  ;;  %6774 = vmatprep.mubr.bf16.mxu1 %v8167_v29  ;;  %v2937_v37 = vsel %vm852_vm2, %v2927_v50, %v2936_v28  ;;  %v8430_v53 = vsel %vm852_vm2, %v8197_v49, %v871_v46  ;;  %v873_v50 = vrot.slane %v363_v9, 1  ;;  %v878_v29 = vrot.slane %v367_v18, 2  ;;  %v7810_v18 = vld [vmem:[%s9766_s1 + $0xc8] sm:$0xff]  }
  0x4a   : > { %7110 = vmatprep.mubr.bf16.mxu0 %v2920_v39  ;;  %v8386_v17 = vsel %vm1058_vm3, %v3113_v14, %v3115_v16  ;;  %v675_v14 = vsel %vm670_vm1, %v672_v33, %v674_v58 }
  0x4b   : > { %6785 = vmatpush3.bf16.msra.mxu1 %v7791_v31  ;;  %v671_v31 = vrot.slane %v8368_v4, 1 }
  0x4c   : > { %7121 = vmatpush3.bf16.msra.mxu0 %v7792_v35  ;;  %6786 = vmatprep.subr.bf16.mxu1 %v7793_v38  ;;  %v3107_v35 = vrot.slane %v8151_v21, 2 }
  0x4d   : > { %7122 = vmatprep.subr.bf16.mxu0 %v7794_v42  ;;  %v673_v39 = vsel %vm670_vm1, %v671_v31, %v672_v33  ;;  %v7813_v31 = vld [vmem:[%s9766_s1 + $0x3d0] sm:$0xff]   ;;  %v680_v33 = vrot.slane %v8240_v8, 1 }
  0x4e   : > { %6775 = vmatmul.mubr.bf16.gmra.mrb[4].mxu1 %v8195_v48 }
  0x4f   : > { %6787 = vmatpush3.bf16.msra.mxu1 %v7793_v38  ;;  %7111 = vmatmul.mubr.bf16.gmra.mrb[4].mxu0 %v2924_v59  ;;  %v7800_v38 = vld [vmem:[%s9766_s1 + $0x3a8] sm:$0xff]   ;;  %v874_v59 = vrot.slane %v359_v2, 2  ;;  %v676_v2 = vrot.slane %v8195_v48, 1 }
  0x50   : > { %7123 = vmatpush3.bf16.msra.mxu0 %v7794_v42  ;;  %6788 = vmatprep.subr.bf16.mxu1 %v7795_v45  ;;  %v3108_v42 = vsel %vm1058_vm3, %v3106_v26, %v3107_v35  ;;  %v7811_v48 = vld [vmem:[%s9766_s1 + $0x3c8] sm:$0xff]   ;;  %v854_v26 = vshrl.u32 %v8368_v4, 16 }
  0x51   : > { %7124 = vmatprep.subr.bf16.mxu0 %v7796_v1  ;;  %6778 = vmatprep.mubr.bf16.mxu1 %v8216_v60  ;;  %v875_v9 = vor.u32 %v874_v59, %v873_v50  ;;  %v677_v28 = vsel %vm670_vm1, %v674_v58, %v676_v2  ;;  %v7819_v50 = vld [vmem:[%s9766_s1 + $0x3e8] sm:$0xff]   ;;  %v7820_v59 = vld [vmem:[%s9766_s1 + $0xf0] sm:$0xff]  }
  0x52   : > { %7114 = vmatprep.mubr.bf16.mxu0 %v2928_v6 }
  0x53   : > { %6789 = vmatpush3.bf16.msra.mxu1 %v7795_v45  ;;  %v8410_v45 = vor.u32 %v862_v41, %v861_v40  ;;  %v8450_v6 = vsel %vm852_vm2, %v871_v46, %v875_v9  ;;  %v856_v40 = vrot.slane %v854_v26, 1  ;;  %v8583_v26 = vld [vmem:[%s8123_s20 + $0x30] ss:$0 sps:$4 sm:$0x33]  }
  0x54   : > { %7125 = vmatpush3.bf16.msra.mxu0 %v7796_v1  ;;  %6790 = vmatprep.subr.bf16.mxu1 %v7797_v27  ;;  %v877_v1 = vrot.slane %v371_v30, 1  ;;  %v3110_v30 = vsel %vm1058_vm3, %v3107_v35, %v3109_v51  ;;  %v678_v51 = vrot.slane %v8216_v60, 1  ;;  %v7814_v60 = vld [vmem:[%s9766_s1 + $0xd8] sm:$0xff]   ;;  %v857_v35 = vshll.u32 %v8368_v4, 16 }
  0x55   : > { %7126 = vmatprep.subr.bf16.mxu0 %v7798_v12  ;;  %v8420_v32 = vsel %vm852_vm2, %v8410_v45, %v8197_v49  ;;  %v7809_v49 = vld [vmem:[%s9766_s1 + $0x3c0] sm:$0xff]  }
  0x56   : > { %6779 = vmatmul.mubr.bf16.gmra.mrb[8].mxu1 %v8240_v8  ;;  %v8452_v7 = vor.u32 %v878_v29, %v877_v1  ;;  %v8491_v8 = vld [vmem:[%s8123_s20 + $0x1c] sm:$0xf]  ;;  %v681_v4 = vsel %vm670_vm1, %v678_v51, %v680_v33  ;;  %v859_v41 = vrot.slane %v857_v35, 2  ;;  %v8536_v1 = vld [vmem:[%s8123_s20 + $0x20] sm:$0xf] }
  0x57   : > { %6791 = vmatpush3.bf16.msra.mxu1 %v7797_v27  ;;  %7115 = vmatmul.mubr.bf16.gmra.mrb[8].mxu0 %v2937_v37  ;;  %v679_v37 = vsel %vm670_vm1, %v676_v2, %v678_v51  ;;  %v8548_v29 = vld [vmem:[%s8123_s20 + $0x28] sm:$0xf] }
  0x58   : > { %7127 = vmatpush3.bf16.msra.mxu0 %v7798_v12  ;;  %6792 = vmatprep.subr.bf16.mxu1 %v7799_v36  ;;  %v8465_v27 = vsel %vm852_vm2, %v875_v9, %v8452_v7  ;;  %v7812_v12 = vld [vmem:[%s9766_s1 + $0xd0] sm:$0xff]   ;;  %v7823_v9 = vld [vmem:[%s9766_s1 + $0x3f8] sm:$0xff]  }
  0x59   : > { %7128 = vmatprep.subr.bf16.mxu0 %v7800_v38  ;;  %6798 = vmatprep.mubr.bf16.mxu1 %v673_v39  ;;  %v8488_v39 = vld [vmem:[%s8123_s20 + $0x18] sm:$0xf] }
  0x5a   : > { %7134 = vmatprep.mubr.bf16.mxu0 %v3108_v42  ;;  %v682_v42 = vrot.slane %v8256_v23, 1  ;;  %v7817_v23 = vld [vmem:[%s9766_s1 + $0x3e0] sm:$0xff]  }
  0x5b   : > { %6793 = vmatpush3.bf16.msra.mxu1 %v7799_v36  ;;  %v3266_v36 = vld [vmem:[%s8123_s20 + $0x10] sm:$0xc] }
  0x5c   : > { %7129 = vmatpush3.bf16.msra.mxu0 %v7800_v38  ;;  %6794 = vmatprep.subr.bf16.mxu1 %v7801_v44  ;;  %v8485_v38 = vld [vmem:[%s8123_s20 + $0x14] sm:$0xf] }
  0x5d   : > { %7130 = vmatprep.subr.bf16.mxu0 %v7802_v15  ;;  %v8500_v43 = vcombine.low %v3266_v36, %v8485_v38 }
  0x5f   : > { %6795 = vmatpush3.bf16.msra.mxu1 %v7801_v44  ;;  %v8504_v44 = vcombine.low %v8488_v39, %v8491_v8  ;;  %v3329_v46 = vrot.slane %v8500_v43, 2 }
  0x60   : > { %7131 = vmatpush3.bf16.msra.mxu0 %v7802_v15  ;;  %6796 = vmatprep.subr.bf16.mxu1 %v7804_v56  ;;  %v7816_v15 = vld [vmem:[%s9766_s1 + $0xe0] sm:$0xff]  }
  0x61   : > { %7132 = vmatprep.subr.bf16.mxu0 %v7805_v47 }
  0x63   : > { %6797 = vmatpush3.bf16.msra.mxu1 %v7804_v56  ;;  %v683_v56 = vsel %vm670_vm1, %v680_v33, %v682_v42  ;;  %v7827_v33 = vld [vmem:[%s9766_s1 + $0x400] sm:$0xff]  }
  0x64   : > { %7133 = vmatpush3.bf16.msra.mxu0 %v7805_v47  ;;  %6810 = vmatprep.subr.bf16.mxu1 %v7807_v62  ;;  %v3330_v47 = vrot.slane %v8504_v44, 2 }
  0x65   : > { %7146 = vmatprep.subr.bf16.mxu0 %v7809_v49 }
  0x66   : > { %6799 = vmatmul.mubr.bf16.vlgmr.msra.gmra.mrb[0].mxu1 %v675_v14  ;;  %v8555_v14 = vld [vmem:[%s8123_s20 + $0x2c] sm:$0xf] }
  0x67   : > { %6811 = vmatpush3.bf16.msra.mxu1 %v7807_v62  ;;  %7135 = vmatmul.mubr.bf16.vlgmr.msra.gmra.mrb[0].mxu0 %v3110_v30  ;;  %v3331_v62 = vsel %vm1058_vm3, %v3329_v46, %v3330_v47  ;;  %v8558_v30 = vld [vmem:[%s8123_s20 + $0x30] sm:$0xf]  ;;  %v8569_v51 = vcombine.low %v8548_v29, %v8555_v14 }
  0x68   : > { %7147 = vmatpush3.bf16.msra.mxu0 %v7809_v49  ;;  %6812 = vmatprep.subr.bf16.mxu1 %v7810_v18  ;;  %v7822_v49 = vld [vmem:[%s9766_s1 + $0xf8] sm:$0xff]   ;;  %v7831_v46 = vld [vmem:[%s9766_s1 + $0x110] sm:$0xff]  }
  0x69   : > { %7148 = vmatprep.subr.bf16.mxu0 %v7811_v48  ;;  %6802 = vmatprep.mubr.bf16.mxu1 %v677_v28  ;;  %v3277_v28 = vld [vmem:[%s8123_s20 + $0x3c] sm:$0xf]  ;;  %v3334_v36 = vrot.slane %v8569_v51, 2 }
  0x6a   : > { %7138 = vmatprep.mubr.bf16.mxu0 %v8363_v3  ;;  %v7815_v3 = vld [vmem:[%s9766_s1 + $0x3d8] sm:$0xff]  }
  0x6b   : > { %6813 = vmatpush3.bf16.msra.mxu1 %v7810_v18  ;;  %v8561_v18 = vld [vmem:[%s8123_s20 + $0x34] sm:$0xf] }
  0x6c   : > { %7149 = vmatpush3.bf16.msra.mxu0 %v7811_v48  ;;  %6814 = vmatprep.subr.bf16.mxu1 %v7812_v12  ;;  %v8564_v48 = vld [vmem:[%s8123_s20 + $0x38] sm:$0xf] }
  0x6d   : > { %7150 = vmatprep.subr.bf16.mxu0 %v7813_v31  ;;  %v8586_v35 = vcombine.low %v8564_v48, %v3277_v28 }
  0x6e   : > { %6803 = vmatmul.mubr.bf16.gmra.mrb[4].mxu1 %v679_v37  ;;  %v3719_v37 = vld [vmem:[%s8123_s20 + $0x10] sm:$0x8] }
  0x6f   : > { %6815 = vmatpush3.bf16.msra.mxu1 %v7812_v12  ;;  %7139 = vmatmul.mubr.bf16.gmra.mrb[4].mxu0 %v8373_v10  ;;  %v860_v10 = vor.u32 %v859_v41, %v856_v40  ;;  %v7824_v12 = vld [vmem:[%s9766_s1 + $0x100] sm:$0xff]   ;;  %v7829_v40 = vld [vmem:[%s9766_s1 + $0x108] sm:$0xff]   ;;  %v8599_v42 = vcombine.low %v3719_v37, %v8485_v38  ;;  %v3514_v37 = vshll.u32 %v8500_v43, 16 }
  0x70   : > { %7151 = vmatpush3.bf16.msra.mxu0 %v7813_v31  ;;  %6816 = vmatprep.subr.bf16.mxu1 %v7814_v60  ;;  %v7830_v41 = vld [vmem:[%s9766_s1 + $0x408] sm:$0xff]  }
  0x71   : > { %7152 = vmatprep.subr.bf16.mxu0 %v7815_v3  ;;  %6806 = vmatprep.mubr.bf16.mxu1 %v681_v4  ;;  %v864_v58 = vsel %vm852_vm2, %v860_v10, %v8410_v45  ;;  %v8539_v45 = vld [vmem:[%s8123_s20 + $0x24] sm:$0xf]  ;;  %v3511_v10 = vshrl.u32 %v8500_v43, 16  ;;  %v3516_v24 = vrot.slane %v3514_v37, 3 }
  0x72   : > { %7142 = vmatprep.mubr.bf16.mxu0 %v8386_v17  ;;  %v3118_v17 = vsel %vm1058_vm3, %v3115_v16, %v3117_v20  ;;  %v7821_v16 = vld [vmem:[%s9766_s1 + $0x3f0] sm:$0xff]   ;;  %v8552_v2 = vcombine.low %v8536_v1, %v8539_v45 }
  0x73   : > { %6817 = vmatpush3.bf16.msra.mxu1 %v7814_v60  ;;  %v8580_v60 = vcombine.low %v8558_v30, %v8561_v18 }
  0x74   : > { %7153 = vmatpush3.bf16.msra.mxu0 %v7815_v3  ;;  %6818 = vmatprep.subr.bf16.mxu1 %v7816_v15  ;;  %v3332_v31 = vrot.slane %v8552_v2, 2  ;;  %v3741_v3 = vrot.slane %v8504_v44, 3 }
  0x75   : > { %7154 = vmatprep.subr.bf16.mxu0 %v7817_v23  ;;  %v3336_v20 = vrot.slane %v8580_v60, 2 }
  0x76   : > { %6807 = vmatmul.mubr.bf16.gmra.mrb[8].mxu1 %v683_v56  ;;  %v3333_v4 = vsel %vm1058_vm3, %v3330_v47, %v3332_v31  ;;  %v3743_v56 = vrot.slane %v8552_v2, 3  ;;  %v3338_v47 = vrot.slane %v8586_v35, 2 }
  0x77   : > { %6819 = vmatpush3.bf16.msra.mxu1 %v7816_v15  ;;  %7143 = vmatmul.mubr.bf16.gmra.mrb[8].mxu0 %v3118_v17  ;;  %v1230_v15 = vld [vmem:[%s8123_s20 + $0x30] sm:$0xf] }
  0x78   : > { %7155 = vmatpush3.bf16.msra.mxu0 %v7817_v23  ;;  %6820 = vmatprep.subr.bf16.mxu1 %v7818_v25  ;;  %v882_v23 = vshrl.u32 %v8583_v26, 16 }
  0x79   : > { %7156 = vmatprep.subr.bf16.mxu0 %v7819_v50  ;;  %6826 = vmatprep.mubr.bf16.mxu1 %v864_v58  ;;  %v3335_v58 = vsel %vm1058_vm3, %v3332_v31, %v3334_v36  ;;  %v3747_v31 = vrot.slane %v8580_v60, 3 }
  0x7a   : > { %7162 = vmatprep.mubr.bf16.mxu0 %v3331_v62  ;;  %v3745_v62 = vrot.slane %v8569_v51, 3  ;;  %v884_v28 = vrot.slane %v882_v23, 1  ;;  %v7833_v23 = vld [vmem:[%s9766_s1 + $0x118] sm:$0xff]  }
  0x7b   : > { %6821 = vmatpush3.bf16.msra.mxu1 %v7818_v25  ;;  %v3740_v25 = vrot.slane %v8599_v42, 3 }
  0x7c   : > { %7157 = vmatpush3.bf16.msra.mxu0 %v7819_v50  ;;  %6822 = vmatprep.subr.bf16.mxu1 %v7820_v59  ;;  %v7832_v50 = vld [vmem:[%s9766_s1 + $0x410] sm:$0xff]  }
  0x7d   : > { %7158 = vmatprep.subr.bf16.mxu0 %v7821_v16 }
  0x7f   : > { %6823 = vmatpush3.bf16.msra.mxu1 %v7820_v59  ;;  %v8621_v59 = vsel %vm1694_vm4, %v3741_v3, %v3743_v56 }
  0x80   : > { %7159 = vmatpush3.bf16.msra.mxu0 %v7821_v16  ;;  %6824 = vmatprep.subr.bf16.mxu1 %v7822_v49  ;;  %v7845_v16 = vld [vmem:[%s8123_s20 + $0x40] ss:$0 sps:$4 sm:$0x33]  }
  0x81   : > { %7160 = vmatprep.subr.bf16.mxu0 %v7823_v9 }
  0x83   : > { %6825 = vmatpush3.bf16.msra.mxu1 %v7822_v49  ;;  %v1037_v49 = vld [vmem:[%s8123_s20] sm:$0xc] }
  0x84   : > { %7161 = vmatpush3.bf16.msra.mxu0 %v7823_v9  ;;  %6838 = vmatprep.subr.bf16.mxu1 %v7824_v12  ;;  %v8627_v9 = vsel %vm1694_vm4, %v3740_v25, %v3741_v3  ;;  %v3519_v3 = vshrl.u32 %v8504_v44, 16  ;;  %v3522_v25 = vshll.u32 %v8504_v44, 16  ;;  %v7847_v44 = vld [vmem:[%s9766_s1 + $0x438] sm:$0xff]  }
  0x85   : > { %7174 = vmatprep.subr.bf16.mxu0 %v7827_v33 }
  0x86   : > { %6827 = vmatmul.mubr.bf16.vlgmr.msra.gmra.mrb[0].mxu1 %v8420_v32  ;;  %v885_v32 = vshll.u32 %v8583_v26, 16  ;;  %v3524_v13 = vrot.slane %v3522_v25, 3 }
  0x87   : > { %6839 = vmatpush3.bf16.msra.mxu1 %v7824_v12  ;;  %7163 = vmatmul.mubr.bf16.vlgmr.msra.gmra.mrb[0].mxu0 %v3333_v4  ;;  %v8631_v12 = vsel %vm1694_vm4, %v3743_v56, %v3745_v62  ;;  %v3337_v56 = vsel %vm1058_vm3, %v3334_v36, %v3336_v20  ;;  %v3339_v36 = vsel %vm1058_vm3, %v3336_v20, %v3338_v47 }
  0x88   : > { %7175 = vmatpush3.bf16.msra.mxu0 %v7827_v33  ;;  %6840 = vmatprep.subr.bf16.mxu1 %v7829_v40  ;;  %v3749_v33 = vrot.slane %v8586_v35, 3  ;;  %v887_v4 = vrot.slane %v885_v32, 2 }
  0x89   : > { %7176 = vmatprep.subr.bf16.mxu0 %v7830_v41  ;;  %6830 = vmatprep.mubr.bf16.mxu1 %v8430_v53  ;;  %v8639_v53 = vsel %vm1694_vm4, %v3745_v62, %v3747_v31  ;;  %v3513_v62 = vrot.slane %v3511_v10, 2  ;;  %v7837_v10 = vld [vmem:[%s9766_s1 + $0x420] sm:$0xff]  }
  0x8a   : > { %7166 = vmatprep.mubr.bf16.mxu0 %v3335_v58  ;;  %v8648_v43 = vsel %vm1694_vm4, %v3747_v31, %v3749_v33  ;;  %v8017_v58 = vld [vmem:[%s8123_s20 + $0x4] sm:$0xf]  ;;  %v888_v22 = vor.u32 %v887_v4, %v884_v28  ;;  %v3521_v31 = vrot.slane %v3519_v3, 2 }
  0x8b   : > { %6841 = vmatpush3.bf16.msra.mxu1 %v7829_v40  ;;  %v7834_v40 = vld [vmem:[%s9766_s1 + $0x418] sm:$0xff]   ;;  %v5796_v32 = vcombine.low %v1037_v49, %v8017_v58  ;;  %v3517_v37 = vor.u32 %v3516_v24, %v3513_v62  ;;  %v3537_v62 = vshrl.u32 %v8569_v51, 16 }
  0x8c   : > { %7177 = vmatpush3.bf16.msra.mxu0 %v7830_v41  ;;  %6842 = vmatprep.subr.bf16.mxu1 %v7831_v46  ;;  %v3340_v41 = vrot.slane %v7845_v16, 2  ;;  %v889_v49 = vsel %vm852_vm2, %v8452_v7, %v888_v22  ;;  %v8677_v4 = vor.u32 %v3524_v13, %v3521_v31  ;;  %v7840_v22 = vld [vmem:[%s9766_s1 + $0x428] sm:$0xff]   ;;  %v7841_v7 = vld [vmem:[%s9766_s1 + $0x130] sm:$0xff]   ;;  %v3929_v31 = vrot.slane %v3519_v3, 3 }
  0x8d   : > { %7178 = vmatprep.subr.bf16.mxu0 %v7832_v50  ;;  %v1059_v20 = vrot.slane %v5796_v32, 2  ;;  %v8019_v3 = vld [vmem:[%s8123_s20 + $0x10] sm:$0xff]  }
  0x8e   : > { %6831 = vmatmul.mubr.bf16.gmra.mrb[4].mxu1 %v8450_v6  ;;  %v7835_v6 = vld [vmem:[%s9766_s1 + $0x120] sm:$0xff]   ;;  %v3341_v28 = vsel %vm1058_vm3, %v3338_v47, %v3340_v41  ;;  %v3922_v47 = vshrl.u32 %v8599_v42, 16  ;;  %v3925_v41 = vshll.u32 %v8599_v42, 16 }
  0x8f   : > { %6843 = vmatpush3.bf16.msra.mxu1 %v7831_v46  ;;  %7167 = vmatmul.mubr.bf16.gmra.mrb[4].mxu0 %v3337_v56  ;;  %v8668_v46 = vld [vmem:[%s8123_s20 + $0x8] sm:$0xff]   ;;  %v3531_v56 = vshll.u32 %v8552_v2, 16 }
  0x90   : > { %7179 = vmatpush3.bf16.msra.mxu0 %v7832_v50  ;;  %6844 = vmatprep.subr.bf16.mxu1 %v7833_v23  ;;  %v1060_v16 = vrot.slane %v8668_v46, 2  ;;  %v7839_v50 = vld [vmem:[%s9766_s1 + $0x128] sm:$0xff]  }
  0x91   : > { %7180 = vmatprep.subr.bf16.mxu0 %v7834_v40  ;;  %6834 = vmatprep.mubr.bf16.mxu1 %v8465_v27  ;;  %v3528_v27 = vshrl.u32 %v8552_v2, 16  ;;  %v3526_v2 = vsel %vm1463_vm5, %v3517_v37, %v8677_v4  ;;  %v3533_v32 = vrot.slane %v3531_v56, 3  ;;  %v7846_v37 = vld [vmem:[%s9766_s1 + $0x138] sm:$0xff]   ;;  %v7852_v46 = vld [vmem:[%s9766_s1 + $0x448] sm:$0xff]  }
  0x92   : > { %7170 = vmatprep.mubr.bf16.mxu0 %v3339_v36  ;;  %v1061_v13 = vsel %vm1058_vm3, %v1059_v20, %v1060_v16  ;;  %v3924_v36 = vrot.slane %v3922_v47, 3  ;;  %v3927_v20 = vrot.slane %v3925_v41, 4  ;;  %v3546_v47 = vshrl.u32 %v8580_v60, 16 }
  0x93   : > { %6845 = vmatpush3.bf16.msra.mxu1 %v7833_v23  ;;  %v3530_v58 = vrot.slane %v3528_v27, 2 }
  0x94   : > { %7181 = vmatpush3.bf16.msra.mxu0 %v7834_v40  ;;  %6846 = vmatprep.subr.bf16.mxu1 %v7835_v6  ;;  %v7843_v40 = vld [vmem:[%s9766_s1 + $0x430] sm:$0xff]   ;;  %v3548_v0 = vrot.slane %v3546_v47, 2 }
  0x95   : > { %7182 = vmatprep.subr.bf16.mxu0 %v7837_v10 }
  0x96   : > { %6835 = vmatmul.mubr.bf16.gmra.mrb[8].mxu1 %v889_v49  ;;  %v3933_v49 = vrot.slane %v3528_v27, 3  ;;  %v1221_v27 = vld [vmem:[%s8123_s20 + $0xc] sm:$0xf] }
  0x97   : > { %6847 = vmatpush3.bf16.msra.mxu1 %v7835_v6  ;;  %7171 = vmatmul.mubr.bf16.gmra.mrb[8].mxu0 %v3341_v28  ;;  %v3930_v6 = vrot.slane %v3522_v25, 4  ;;  %v3934_v28 = vrot.slane %v3531_v56, 4  ;;  %v1062_v25 = vrot.slane %v8019_v3, 2  ;;  %v7849_v56 = vld [vmem:[%s9766_s1 + $0x140] sm:$0xff]  }
  0x98   : > { %7183 = vmatpush3.bf16.msra.mxu0 %v7837_v10  ;;  %6848 = vmatprep.subr.bf16.mxu1 %v7839_v50  ;;  %v3540_v10 = vshll.u32 %v8569_v51, 16  ;;  %v8715_v51 = vld [vmem:[%s8123_s20 + $0x40] ss:$0 sps:$4 sm:$0x77]  }
  0x99   : > { %7184 = vmatprep.subr.bf16.mxu0 %v7840_v22  ;;  %6854 = vmatprep.mubr.bf16.mxu1 %v1061_v13  ;;  %v3931_v42 = vor.u32 %v3930_v6, %v3929_v31  ;;  %v3928_v13 = vor.u32 %v3927_v20, %v3924_v36  ;;  %v7850_v36 = vld [vmem:[%s9766_s1 + $0x440] sm:$0xff]   ;;  %v3549_v6 = vshll.u32 %v8580_v60, 16  ;;  %v1063_v60 = vsel %vm1058_vm3, %v1060_v16, %v1062_v25 }
  0x9a   : > { %7190 = vmatprep.mubr.bf16.mxu0 %v3526_v2  ;;  %v3539_v2 = vrot.slane %v3537_v62, 2  ;;  %v3542_v31 = vrot.slane %v3540_v10, 3  ;;  %v3938_v11 = vrot.slane %v3540_v10, 4  ;;  %v3564_v16 = vshrl.u32 %v8715_v51, 16 }
  0x9b   : > { %6849 = vmatpush3.bf16.msra.mxu1 %v7839_v50  ;;  %v3935_v50 = vor.u32 %v3934_v28, %v3933_v49  ;;  %v8724_v41 = vsel %vm1876_vm6, %v3928_v13, %v3931_v42  ;;  %v8020_v49 = vld [vmem:[%s8123_s20 + $0x18] sm:$0xff]   ;;  %v8737_v28 = vld [vmem:[%s8123_s20 + $0x20] sm:$0xff]   ;;  %v3937_v13 = vrot.slane %v3537_v62, 3  ;;  %v3941_v10 = vrot.slane %v3546_v47, 3 }
  0x9c   : > { %7185 = vmatpush3.bf16.msra.mxu0 %v7840_v22  ;;  %6850 = vmatprep.subr.bf16.mxu1 %v7841_v7  ;;  %v3534_v22 = vor.u32 %v3533_v32, %v3530_v58  ;;  %v3555_v58 = vshrl.u32 %v8586_v35, 16  ;;  %v3558_v32 = vshll.u32 %v8586_v35, 16  ;;  %v1066_v3 = vrot.slane %v8737_v28, 2  ;;  %v7858_v28 = vld [vmem:[%s9766_s1 + $0x460] sm:$0xff]   ;;  %v7885_v35 = vld [vmem:[%s9766_s1 + $0x1b0] sm:$0xff]  }
  0x9d   : > { %7186 = vmatprep.subr.bf16.mxu0 %v7843_v40  ;;  %v8731_v20 = vsel %vm1876_vm6, %v3931_v42, %v3935_v50  ;;  %v7851_v42 = vld [vmem:[%s9766_s1 + $0x148] sm:$0xff]   ;;  %v3543_v62 = vor.u32 %v3542_v31, %v3539_v2  ;;  %v3551_v55 = vrot.slane %v3549_v6, 3  ;;  %v3942_v57 = vrot.slane %v3549_v6, 4  ;;  %v7853_v2 = vld [vmem:[%s9766_s1 + $0x150] sm:$0xff]  }
  0x9e   : > { %v3557_v52 = vrot.slane %v3555_v58, 2  ;;  %v3560_v5 = vrot.slane %v3558_v32, 3  ;;  %v3945_v31 = vrot.slane %v3555_v58, 3  ;;  %v3946_v6 = vrot.slane %v3558_v32, 4  ;;  %v8774_v58 = vld [vmem:[%s8123_s20 + $0x8] sm:$0xf] }
  0x9f   : > { %6851 = vmatpush3.bf16.msra.mxu1 %v7841_v7  ;;  %v1064_v7 = vrot.slane %v8020_v49, 2  ;;  %v8749_v49 = vld [vmem:[%s8123_s20 + $0x28] sm:$0xff]   ;;  %v3943_v47 = vor.u32 %v3942_v57, %v3941_v10  ;;  %v3567_v24 = vshll.u32 %v8715_v51, 16  ;;  %v3552_v57 = vor.u32 %v3551_v55, %v3548_v0  ;;  %v1224_v32 = vld [vmem:[%s8123_s20 + $0x18] sm:$0xf] }
  0xa0   : > { %7187 = vmatpush3.bf16.msra.mxu0 %v7843_v40  ;;  %6852 = vmatprep.subr.bf16.mxu1 %v7846_v37  ;;  %v3535_v40 = vsel %vm1463_vm5, %v8677_v4, %v3534_v22  ;;  %v1068_v63 = vrot.slane %v8749_v49, 2  ;;  %v3939_v4 = vor.u32 %v3938_v11, %v3937_v13  ;;  %v3544_v13 = vsel %vm1463_vm5, %v3534_v22, %v3543_v62  ;;  %v1226_v0 = vld [vmem:[%s8123_s20 + $0x20] sm:$0xf]  ;;  %v1227_v10 = vld [vmem:[%s8123_s20 + $0x24] sm:$0xf] }
  0xa1   : > { %7188 = vmatprep.subr.bf16.mxu0 %v7847_v44  ;;  %v1065_v11 = vsel %vm1058_vm3, %v1062_v25, %v1064_v7  ;;  %v1219_v25 = vld [vmem:[%s8123_s20 + $0x4] sm:$0xc]  ;;  %v8781_v22 = vor.u32 %v3946_v6, %v3945_v31  ;;  %v1067_v31 = vsel %vm1058_vm3, %v1064_v7, %v1066_v3  ;;  %v3561_v6 = vor.u32 %v3560_v5, %v3557_v52 }
  0xa2   : > { %v3569_v23 = vrot.slane %v3567_v24, 3  ;;  %v8808_v17 = vcombine.low %v1219_v25, %v8774_v58  ;;  %v1069_v5 = vsel %vm1058_vm3, %v1066_v3, %v1068_v63  ;;  %v7857_v7 = vld [vmem:[%s9766_s1 + $0x160] sm:$0xff]  }
  0xa3   : > { %6853 = vmatpush3.bf16.msra.mxu1 %v7846_v37  ;;  %v8758_v37 = vsel %vm1876_vm6, %v3935_v50, %v3939_v4  ;;  %v7854_v50 = vld [vmem:[%s9766_s1 + $0x450] sm:$0xff]  }
  0xa4   : > { %7189 = vmatpush3.bf16.msra.mxu0 %v7847_v44  ;;  %6866 = vmatprep.subr.bf16.mxu1 %v7849_v56  ;;  %v1222_v44 = vld [vmem:[%s8123_s20 + $0x10] sm:$0xf] }
  0xa5   : > { %7202 = vmatprep.subr.bf16.mxu0 %v7850_v36  ;;  %v8787_v55 = vcombine.low %v1221_v27, %v1222_v44  ;;  %v1229_v27 = vld [vmem:[%s8123_s20 + $0x2c] sm:$0xf]  ;;  %v3553_v44 = vsel %vm1463_vm5, %v3543_v62, %v3552_v57  ;;  %v1070_v62 = vrot.slane %v8583_v26, 2 }
  0xa6   : > { %6855 = vmatmul.mubr.bf16.vlgmr.msra.gmra.mrb[0].mxu1 %v1063_v60  ;;  %v8769_v60 = vrot.slane %v3564_v16, 2  ;;  %v1225_v16 = vld [vmem:[%s8123_s20 + $0x1c] sm:$0xf] }
  0xa7   : > { %6867 = vmatpush3.bf16.msra.mxu1 %v7849_v56  ;;  %7191 = vmatmul.mubr.bf16.vlgmr.msra.gmra.mrb[0].mxu0 %v3535_v40  ;;  %v1223_v56 = vld [vmem:[%s8123_s20 + $0x14] sm:$0xf]  ;;  %v8779_v40 = vsel %vm1876_vm6, %v3939_v4, %v3943_v47  ;;  %v8793_v4 = vsel %vm1876_vm6, %v3943_v47, %v8781_v22  ;;  %v8816_v52 = vcombine.low %v1225_v16, %v1226_v0  ;;  %v1283_v16 = vrot.slane %v8787_v55, 2 }
  0xa8   : > { %7203 = vmatpush3.bf16.msra.mxu0 %v7850_v36  ;;  %6868 = vmatprep.subr.bf16.mxu1 %v7851_v42  ;;  %v7855_v36 = vld [vmem:[%s9766_s1 + $0x158] sm:$0xff]   ;;  %v8804_v47 = vcombine.low %v1223_v56, %v1224_v32  ;;  %v8827_v56 = vld [vmem:[%s8123_s20 + $0x34] ss:$0 sps:$4 sm:$0x77]   ;;  %v3570_v3 = vor.u32 %v3569_v23, %v8769_v60  ;;  %v1071_v60 = vsel %vm1058_vm3, %v1068_v63, %v1070_v62  ;;  %v7860_v63 = vld [vmem:[%s9766_s1 + $0x468] sm:$0xff]  }
  0xa9   : > { %7204 = vmatprep.subr.bf16.mxu0 %v7852_v46  ;;  %6858 = vmatprep.mubr.bf16.mxu1 %v1065_v11  ;;  %v7856_v11 = vld [vmem:[%s9766_s1 + $0x458] sm:$0xff]   ;;  %v1700_v26 = vrot.slane %v8816_v52, 3 }
  0xaa   : > { %7194 = vmatprep.mubr.bf16.mxu0 %v3544_v13  ;;  %v1228_v13 = vld [vmem:[%s8123_s20 + $0x28] sm:$0xf]  ;;  %v1698_v24 = vrot.slane %v8804_v47, 3 }
  0xab   : > { %6869 = vmatpush3.bf16.msra.mxu1 %v7851_v42  ;;  %v9781_v42 = vrot.slane %v8787_v55, 3  ;;  %v8824_v25 = vcombine.low %v1227_v10, %v1228_v13  ;;  %v1706_v10 = vrot.slane %v8827_v56, 3  ;;  %v3571_v13 = vsel %vm1463_vm5, %v3561_v6, %v3570_v3 }
  0xac   : > { %7205 = vmatpush3.bf16.msra.mxu0 %v7852_v46  ;;  %6870 = vmatprep.subr.bf16.mxu1 %v7853_v2  ;;  %v3562_v46 = vsel %vm1463_vm5, %v3552_v57, %v3561_v6  ;;  %v8845_v23 = vsel %vm1694_vm4, %v1698_v24, %v1700_v26  ;;  %v1473_v6 = vshrl.u32 %v8787_v55, 16 }
  0xad   : > { %7206 = vmatprep.subr.bf16.mxu0 %v7854_v50  ;;  %v8838_v57 = vsel %vm1694_vm4, %v9781_v42, %v1698_v24  ;;  %v1702_v32 = vrot.slane %v8824_v25, 3  ;;  %v1476_v24 = vshll.u32 %v8787_v55, 16 }
  0xae   : > { %6859 = vmatmul.mubr.bf16.gmra.mrb[4].mxu1 %v1067_v31  ;;  %v7859_v31 = vld [vmem:[%s9766_s1 + $0x168] sm:$0xff]   ;;  %v1885_v62 = vrot.slane %v1473_v6, 3 }
  0xaf   : > { %6871 = vmatpush3.bf16.msra.mxu1 %v7853_v2  ;;  %7195 = vmatmul.mubr.bf16.gmra.mrb[4].mxu0 %v3553_v44  ;;  %v8833_v2 = vcombine.low %v1229_v27, %v1230_v15  ;;  %v8852_v0 = vsel %vm1694_vm4, %v1700_v26, %v1702_v32  ;;  %v7862_v44 = vld [vmem:[%s9766_s1 + $0x470] sm:$0xff]   ;;  %v1886_v3 = vrot.slane %v1476_v24, 4  ;;  %v7864_v26 = vld [vmem:[%s9766_s1 + $0x178] sm:$0xff]  }
  0xb0   : > { %7207 = vmatpush3.bf16.msra.mxu0 %v7854_v50  ;;  %6872 = vmatprep.subr.bf16.mxu1 %v7855_v36  ;;  %v1282_v50 = vrot.slane %v8808_v17, 2 }
  0xb1   : > { %7208 = vmatprep.subr.bf16.mxu0 %v7856_v11  ;;  %6862 = vmatprep.mubr.bf16.mxu1 %v1069_v5  ;;  %v1704_v15 = vrot.slane %v8833_v2, 3  ;;  %v1285_v5 = vrot.slane %v8804_v47, 2 }
  0xb2   : > { %7198 = vmatprep.mubr.bf16.mxu0 %v3562_v46  ;;  %v9784_v46 = vshrl.u32 %v8804_v47, 16 }
  0xb3   : > { %6873 = vmatpush3.bf16.msra.mxu1 %v7855_v36  ;;  %v8860_v27 = vsel %vm1694_vm4, %v1702_v32, %v1704_v15  ;;  %v8866_v49 = vsel %vm1694_vm4, %v1704_v15, %v1706_v10  ;;  %v7861_v36 = vld [vmem:[%s9766_s1 + $0x170] sm:$0xff]   ;;  %v7865_v32 = vld [vmem:[%s9766_s1 + $0x478] sm:$0xff]   ;;  %v9788_v15 = vshll.u32 %v8816_v52, 16 }
  0xb4   : > { %7209 = vmatpush3.bf16.msra.mxu0 %v7856_v11  ;;  %6874 = vmatprep.subr.bf16.mxu1 %v7857_v7  ;;  %v1284_v11 = vsel %vm1058_vm3, %v1282_v50, %v1283_v16  ;;  %v1889_v50 = vrot.slane %v9784_v46, 3 }
  0xb5   : > { %7210 = vmatprep.subr.bf16.mxu0 %v7858_v28  ;;  %v1894_v42 = vrot.slane %v9788_v15, 4 }
  0xb6   : > { %6863 = vmatmul.mubr.bf16.gmra.mrb[8].mxu1 %v1071_v60  ;;  %v8897_v60 = vor.u32 %v1886_v3, %v1885_v62  ;;  %v9787_v62 = vshrl.u32 %v8833_v2, 16 }
  0xb7   : > { %6875 = vmatpush3.bf16.msra.mxu1 %v7857_v7  ;;  %7199 = vmatmul.mubr.bf16.gmra.mrb[8].mxu0 %v3571_v13  ;;  %v9782_v7 = vshll.u32 %v8804_v47, 16 }
  0xb8   : > { %7211 = vmatpush3.bf16.msra.mxu0 %v7858_v28  ;;  %6876 = vmatprep.subr.bf16.mxu1 %v7859_v31  ;;  %v9783_v28 = vshrl.u32 %v8816_v52, 16 }
  0xb9   : > { %7212 = vmatprep.subr.bf16.mxu0 %v7860_v63  ;;  %6882 = vmatprep.mubr.bf16.mxu1 %v1284_v11  ;;  %v1890_v10 = vrot.slane %v9782_v7, 4 }
  0xba   : > { %7218 = vmatprep.mubr.bf16.mxu0 %v8627_v9  ;;  %v9785_v9 = vshrl.u32 %v8824_v25, 16  ;;  %v1893_v13 = vrot.slane %v9783_v28, 3 }
  0xbb   : > { %6877 = vmatpush3.bf16.msra.mxu1 %v7859_v31  ;;  %v9786_v31 = vshll.u32 %v8824_v25, 16  ;;  %v1891_v11 = vor.u32 %v1890_v10, %v1889_v50  ;;  %v7868_v50 = vld [vmem:[%s9766_s1 + $0x180] sm:$0xff]   ;;  %v1901_v10 = vrot.slane %v9787_v62, 3 }
  0xbc   : > { %7213 = vmatpush3.bf16.msra.mxu0 %v7860_v63  ;;  %6878 = vmatprep.subr.bf16.mxu1 %v7861_v36  ;;  %v1897_v3 = vrot.slane %v9785_v9, 3  ;;  %v9789_v63 = vshll.u32 %v8833_v2, 16  ;;  %v1895_v28 = vor.u32 %v1894_v42, %v1893_v13  ;;  %v1287_v13 = vrot.slane %v8816_v52, 2 }
  0xbd   : > { %7214 = vmatprep.subr.bf16.mxu0 %v7862_v44  ;;  %v8913_v7 = vsel %vm1876_vm6, %v8897_v60, %v1891_v11  ;;  %v1898_v46 = vrot.slane %v9786_v31, 4  ;;  %v1286_v31 = vsel %vm1058_vm3, %v1283_v16, %v1285_v5 }
  0xbe   : > { %v8926_v9 = vsel %vm1876_vm6, %v1891_v11, %v1895_v28  ;;  %v1289_v11 = vrot.slane %v8824_v25, 2 }
  0xbf   : > { %6879 = vmatpush3.bf16.msra.mxu1 %v7861_v36  ;;  %v7870_v36 = vld [vmem:[%s9766_s1 + $0x480] sm:$0xff]   ;;  %v1899_v42 = vor.u32 %v1898_v46, %v1897_v3  ;;  %v7872_v46 = vld [vmem:[%s9766_s1 + $0x188] sm:$0xff]   ;;  %v7875_v3 = vld [vmem:[%s9766_s1 + $0x490] sm:$0xff]  }
  0xc0   : > { %7215 = vmatpush3.bf16.msra.mxu0 %v7862_v44  ;;  %6880 = vmatprep.subr.bf16.mxu1 %v7864_v26  ;;  %v1902_v44 = vrot.slane %v9789_v63, 4 }
  0xc1   : > { %7216 = vmatprep.subr.bf16.mxu0 %v7865_v32  ;;  %v8935_v62 = vsel %vm1876_vm6, %v1895_v28, %v1899_v42  ;;  %v1288_v28 = vsel %vm1058_vm3, %v1285_v5, %v1287_v13  ;;  %v1465_v5 = vshrl.u32 %v8808_v17, 16 }
  0xc2   : > { %v8937_v15 = vor.u32 %v1902_v44, %v1901_v10  ;;  %v7876_v10 = vld [vmem:[%s9766_s1 + $0x198] sm:$0xff]  }
  0xc3   : > { %6881 = vmatpush3.bf16.msra.mxu1 %v7864_v26  ;;  %v7873_v26 = vld [vmem:[%s9766_s1 + $0x488] sm:$0xff]  }
  0xc4   : > { %7217 = vmatpush3.bf16.msra.mxu0 %v7865_v32  ;;  %6894 = vmatprep.subr.bf16.mxu1 %v7868_v50  ;;  %v8947_v16 = vsel %vm1876_vm6, %v1899_v42, %v8937_v15  ;;  %v7874_v32 = vld [vmem:[%s9766_s1 + $0x190] sm:$0xff]   ;;  %v7877_v42 = vld [vmem:[%s9766_s1 + $0x498] sm:$0xff]  }
  0xc5   : > { %7230 = vmatprep.subr.bf16.mxu0 %v7870_v36 }
  0xc6   : > { %6883 = vmatmul.mubr.bf16.vlgmr.msra.gmra.mrb[0].mxu1 %v1286_v31  ;;  %v7887_v31 = vld [vmem:[%s8123_s20 + $0x34] ss:$0 sps:$4 sm:$0x33]  }
  0xc7   : > { %6895 = vmatpush3.bf16.msra.mxu1 %v7868_v50  ;;  %7219 = vmatmul.mubr.bf16.vlgmr.msra.gmra.mrb[0].mxu0 %v8621_v59  ;;  %v1468_v50 = vshll.u32 %v8808_v17, 16  ;;  %v1291_v59 = vrot.slane %v8833_v2, 2  ;;  %v1467_v17 = vrot.slane %v1465_v5, 2  ;;  %v7879_v5 = vld [vmem:[%s9766_s1 + $0x1a0] sm:$0xff]  }
  0xc8   : > { %7231 = vmatpush3.bf16.msra.mxu0 %v7870_v36  ;;  %6896 = vmatprep.subr.bf16.mxu1 %v7872_v46  ;;  %v1290_v36 = vsel %vm1058_vm3, %v1287_v13, %v1289_v11  ;;  %v1293_v13 = vrot.slane %v7887_v31, 2 }
  0xc9   : > { %7232 = vmatprep.subr.bf16.mxu0 %v7873_v26  ;;  %6886 = vmatprep.mubr.bf16.mxu1 %v1288_v28  ;;  %v1470_v44 = vrot.slane %v1468_v50, 3  ;;  %v1478_v28 = vrot.slane %v1476_v24, 3  ;;  %v7880_v24 = vld [vmem:[%s9766_s1 + $0x4a0] sm:$0xff]  }
  0xca   : > { %7222 = vmatprep.mubr.bf16.mxu0 %v8631_v12  ;;  %v1292_v12 = vsel %vm1058_vm3, %v1289_v11, %v1291_v59  ;;  %v3751_v11 = vrot.slane %v8715_v51, 3  ;;  %v1294_v50 = vsel %vm1058_vm3, %v1291_v59, %v1293_v13  ;;  %v7882_v51 = vld [vmem:[%s9766_s1 + $0x1a8] sm:$0xff]   ;;  %v9792_v13 = vshrl.u32 %v8816_v52, 16 }
  0xcb   : > { %6897 = vmatpush3.bf16.msra.mxu1 %v7872_v46  ;;  %v1475_v46 = vrot.slane %v1473_v6, 2 }
  0xcc   : > { %7233 = vmatpush3.bf16.msra.mxu0 %v7873_v26  ;;  %6898 = vmatprep.subr.bf16.mxu1 %v7874_v32  ;;  %v8977_v26 = vld [vmem:[%s8123_s20 + $0x34] sm:$0xf] }
  0xcd   : > { %7234 = vmatprep.subr.bf16.mxu0 %v7875_v3  ;;  %v5902_v6 = vcombine.low %v8977_v26, %v8977_v26 }
  0xce   : > { %6887 = vmatmul.mubr.bf16.gmra.mrb[4].mxu1 %v1290_v36  ;;  %v3752_v36 = vsel %vm1694_vm4, %v3749_v33, %v3751_v11 }
  0xcf   : > { %6899 = vmatpush3.bf16.msra.mxu1 %v7874_v32  ;;  %7223 = vmatmul.mubr.bf16.gmra.mrb[4].mxu0 %v8639_v53  ;;  %v1471_v53 = vor.u32 %v1470_v44, %v1467_v17  ;;  %v1479_v32 = vor.u32 %v1478_v28, %v1475_v46  ;;  %v1909_v31 = vshll.u32 %v5902_v6, 16  ;;  %v9790_v17 = vshrl.u32 %v8804_v47, 16 }
  0xd0   : > { %7235 = vmatpush3.bf16.msra.mxu0 %v7875_v3  ;;  %6900 = vmatprep.subr.bf16.mxu1 %v7876_v10  ;;  %v1906_v3 = vshrl.u32 %v5902_v6, 16  ;;  %v9791_v46 = vshll.u32 %v8804_v47, 16  ;;  %v7890_v47 = vld [vmem:[%s9766_s1 + $0x1c0] sm:$0xff]  }
  0xd1   : > { %7236 = vmatprep.subr.bf16.mxu0 %v7877_v42  ;;  %6890 = vmatprep.mubr.bf16.mxu1 %v1292_v12  ;;  %v1911_v63 = vrot.slane %v1909_v31, 4  ;;  %v1480_v59 = vsel %vm1463_vm5, %v1471_v53, %v1479_v32  ;;  %v1484_v44 = vrot.slane %v9790_v17, 2  ;;  %v9794_v31 = vshrl.u32 %v8824_v25, 16 }
  0xd2   : > { %7226 = vmatprep.mubr.bf16.mxu0 %v8648_v43  ;;  %v1908_v12 = vrot.slane %v1906_v3, 3  ;;  %v7883_v43 = vld [vmem:[%s9766_s1 + $0x4a8] sm:$0xff]   ;;  %v1487_v28 = vrot.slane %v9791_v46, 3  ;;  %v9032_v3 = vld [vmem:[%s8123_s20 + $0x40] sm:$0xf]  ;;  %v1521_v17 = vshll.u32 %v8827_v56, 16 }
  0xd3   : > { %6901 = vmatpush3.bf16.msra.mxu1 %v7876_v10  ;;  %v7894_v46 = vld [vmem:[%s9766_s1 + $0x1d0] sm:$0xff]  }
  0xd4   : > { %7237 = vmatpush3.bf16.msra.mxu0 %v7877_v42  ;;  %6902 = vmatprep.subr.bf16.mxu1 %v7879_v5  ;;  %v1912_v10 = vor.u32 %v1911_v63, %v1908_v12  ;;  %v7886_v42 = vld [vmem:[%s9766_s1 + $0x4b0] sm:$0xff]   ;;  %v7888_v63 = vld [vmem:[%s9766_s1 + $0x1b8] sm:$0xff]   ;;  %v1488_v6 = vor.u32 %v1487_v28, %v1484_v44  ;;  %v7892_v12 = vld [vmem:[%s9766_s1 + $0x1c8] sm:$0xff]  }
  0xd5   : > { %7238 = vmatprep.subr.bf16.mxu0 %v7880_v24 }
  0xd6   : > { %6891 = vmatmul.mubr.bf16.gmra.mrb[8].mxu1 %v1294_v50  ;;  %v9005_v33 = vsel %vm1876_vm6, %v8937_v15, %v1912_v10  ;;  %v7889_v15 = vld [vmem:[%s9766_s1 + $0x4b8] sm:$0xff]   ;;  %v9795_v50 = vshll.u32 %v8824_v25, 16  ;;  %v9796_v10 = vshrl.u32 %v8833_v2, 16 }
  0xd7   : > { %6903 = vmatpush3.bf16.msra.mxu1 %v7879_v5  ;;  %7227 = vmatmul.mubr.bf16.gmra.mrb[8].mxu0 %v3752_v36  ;;  %v1493_v5 = vrot.slane %v9792_v13, 2  ;;  %v1489_v36 = vsel %vm1463_vm5, %v1479_v32, %v1488_v6 }
  0xd8   : > { %7239 = vmatpush3.bf16.msra.mxu0 %v7880_v24  ;;  %6904 = vmatprep.subr.bf16.mxu1 %v7882_v51  ;;  %v7891_v24 = vld [vmem:[%s9766_s1 + $0x4c0] sm:$0xff]   ;;  %v1511_v32 = vrot.slane %v9796_v10, 2  ;;  %v9799_v10 = vcombine.low %v8485_v38, %v8488_v39 }
  0xd9   : > { %7240 = vmatprep.subr.bf16.mxu0 %v7883_v43  ;;  %6910 = vmatprep.mubr.bf16.mxu1 %v1480_v59  ;;  %v6174_v59 = vcombine.low %v9032_v3, %v9032_v3  ;;  %v7909_v38 = vld [vmem:[%s9766_s1 + $0x200] sm:$0xff]  }
  0xda   : > { %7246 = vmatprep.mubr.bf16.mxu0 %v8724_v41  ;;  %v9793_v41 = vshll.u32 %v8816_v52, 16  ;;  %v1502_v52 = vrot.slane %v9794_v31, 2  ;;  %v7911_v39 = vld [vmem:[%s9766_s1 + $0x500] sm:$0xff]  }
  0xdb   : > { %6905 = vmatpush3.bf16.msra.mxu1 %v7882_v51  ;;  %v1505_v51 = vrot.slane %v9795_v50, 3  ;;  %v3950_v28 = vshrl.u32 %v6174_v59, 16 }
  0xdc   : > { %7241 = vmatpush3.bf16.msra.mxu0 %v7883_v43  ;;  %6906 = vmatprep.subr.bf16.mxu1 %v7885_v35  ;;  %v1496_v11 = vrot.slane %v9793_v41, 3  ;;  %v7893_v43 = vld [vmem:[%s9766_s1 + $0x4c8] sm:$0xff]  }
  0xdd   : > { %7242 = vmatprep.subr.bf16.mxu0 %v7886_v42  ;;  %v1506_v44 = vor.u32 %v1505_v51, %v1502_v52  ;;  %v7898_v52 = vld [vmem:[%s9766_s1 + $0x1e0] sm:$0xff]  }
  0xde   : > { %v1497_v53 = vor.u32 %v1496_v11, %v1493_v5  ;;  %v1673_v5 = vld [vmem:[%s8123_s20 + $0x4] sm:$0x8]  ;;  %v7896_v11 = vld [vmem:[%s9766_s1 + $0x1d8] sm:$0xff]  }
  0xdf   : > { %6907 = vmatpush3.bf16.msra.mxu1 %v7885_v35  ;;  %v9797_v35 = vshll.u32 %v8833_v2, 16  ;;  %v7895_v2 = vld [vmem:[%s9766_s1 + $0x4d0] sm:$0xff]   ;;  %v9072_v31 = vcombine.low %v1673_v5, %v8774_v58  ;;  %v7899_v51 = vld [vmem:[%s9766_s1 + $0x4e0] sm:$0xff]  }
  0xe0   : > { %7243 = vmatpush3.bf16.msra.mxu0 %v7886_v42  ;;  %6908 = vmatprep.subr.bf16.mxu1 %v7888_v63  ;;  %v1498_v25 = vsel %vm1463_vm5, %v1488_v6, %v1497_v53  ;;  %v1507_v41 = vsel %vm1463_vm5, %v1497_v53, %v1506_v44  ;;  %v7931_v5 = vld [vmem:[%s9766_s1 + $0x240] sm:$0xff]  }
  0xe1   : > { %7244 = vmatprep.subr.bf16.mxu0 %v7889_v15  ;;  %v1514_v42 = vrot.slane %v9797_v35, 3  ;;  %v1695_v58 = vrot.slane %v9072_v31, 3  ;;  %v7913_v35 = vld [vmem:[%s9766_s1 + $0x208] sm:$0xff]  }
  0xe3   : > { %6909 = vmatpush3.bf16.msra.mxu1 %v7888_v63  ;;  %v1518_v63 = vshrl.u32 %v8827_v56, 16  ;;  %v1515_v56 = vor.u32 %v1514_v42, %v1511_v32  ;;  %v7907_v32 = vld [vmem:[%s9766_s1 + $0x4f8] sm:$0xff]   ;;  %v7914_v42 = vld [vmem:[%s9766_s1 + $0x508] sm:$0xff]  }
  0xe4   : > { %7245 = vmatpush3.bf16.msra.mxu0 %v7889_v15  ;;  %6922 = vmatprep.subr.bf16.mxu1 %v7890_v47  ;;  %v3953_v15 = vshll.u32 %v6174_v59, 16 }
  0xe5   : > { %7258 = vmatprep.subr.bf16.mxu0 %v7891_v24  ;;  %v1520_v13 = vrot.slane %v1518_v63, 2  ;;  %v9800_v63 = vcombine.low %v8491_v8, %v8536_v1  ;;  %v1878_v8 = vshrl.u32 %v9072_v31, 16  ;;  %v1881_v1 = vshll.u32 %v9072_v31, 16  ;;  %v9200_v31 = vld [vmem:[%s8123_s20 + $0x38] sm:$0xff]  }
  0xe6   : > { %6911 = vmatmul.mubr.bf16.vlgmr.msra.gmra.mrb[0].mxu1 %v1489_v36  ;;  %v3955_v6 = vrot.slane %v3953_v15, 4  ;;  %v7900_v36 = vld [vmem:[%s9766_s1 + $0x1e8] sm:$0xff]   ;;  %v7921_v15 = vld [vmem:[%s9766_s1 + $0x520] sm:$0xff]  }
  0xe7   : > { %6923 = vmatpush3.bf16.msra.mxu1 %v7890_v47  ;;  %7247 = vmatmul.mubr.bf16.vlgmr.msra.gmra.mrb[0].mxu0 %v8731_v20  ;;  %v1523_v20 = vrot.slane %v1521_v17, 3  ;;  %v3952_v47 = vrot.slane %v3950_v28, 3  ;;  %v7915_v17 = vld [vmem:[%s9766_s1 + $0x210] sm:$0xff]   ;;  %v7919_v28 = vld [vmem:[%s9766_s1 + $0x220] sm:$0xff]  }
  0xe8   : > { %7259 = vmatpush3.bf16.msra.mxu0 %v7891_v24  ;;  %6924 = vmatprep.subr.bf16.mxu1 %v7892_v12  ;;  %v1516_v24 = vsel %vm1463_vm5, %v1506_v44, %v1515_v56  ;;  %v7916_v44 = vld [vmem:[%s9766_s1 + $0x510] sm:$0xff]  }
  0xe9   : > { %7260 = vmatprep.subr.bf16.mxu0 %v7893_v43  ;;  %6914 = vmatprep.mubr.bf16.mxu1 %v1498_v25  ;;  %v1524_v53 = vor.u32 %v1523_v20, %v1520_v13  ;;  %v3956_v50 = vor.u32 %v3955_v6, %v3952_v47  ;;  %v7902_v25 = vld [vmem:[%s9766_s1 + $0x1f0] sm:$0xff]   ;;  %v7923_v13 = vld [vmem:[%s9766_s1 + $0x228] sm:$0xff]   ;;  %v4481_v6 = vld [vmem:[%s8123_s20 + $0x18] sm:$0xf] }
  0xea   : > { %7250 = vmatprep.mubr.bf16.mxu0 %v8758_v37  ;;  %v7897_v37 = vld [vmem:[%s9766_s1 + $0x4d8] sm:$0xff]   ;;  %v7927_v20 = vld [vmem:[%s9766_s1 + $0x530] sm:$0xff]   ;;  %v7935_v47 = vld [vmem:[%s9766_s1 + $0x248] sm:$0xff]  }
  0xeb   : > { %6925 = vmatpush3.bf16.msra.mxu1 %v7892_v12  ;;  %v3957_v12 = vsel %vm1876_vm6, %v8781_v22, %v3956_v50  ;;  %v7903_v22 = vld [vmem:[%s9766_s1 + $0x4f0] sm:$0xff]  }
  0xec   : > { %7261 = vmatpush3.bf16.msra.mxu0 %v7893_v43  ;;  %6926 = vmatprep.subr.bf16.mxu1 %v7894_v46  ;;  %v7901_v43 = vld [vmem:[%s9766_s1 + $0x4e8] sm:$0xff]  }
  0xed   : > { %7262 = vmatprep.subr.bf16.mxu0 %v7895_v2 }
  0xee   : > { %6915 = vmatmul.mubr.bf16.gmra.mrb[4].mxu1 %v1507_v41  ;;  %v7933_v41 = vld [vmem:[%s9766_s1 + $0x540] sm:$0xff]  }
  0xef   : > { %6927 = vmatpush3.bf16.msra.mxu1 %v7894_v46  ;;  %7251 = vmatmul.mubr.bf16.gmra.mrb[4].mxu0 %v8779_v40  ;;  %v1525_v40 = vsel %vm1463_vm5, %v1515_v56, %v1524_v53  ;;  %v7917_v46 = vld [vmem:[%s9766_s1 + $0x218] sm:$0xff]   ;;  %v9203_v53 = vld [vmem:[%s8123_s20 + $0x40] sm:$0xff]  }
  0xf0   : > { %7263 = vmatpush3.bf16.msra.mxu0 %v7895_v2  ;;  %6928 = vmatprep.subr.bf16.mxu1 %v7896_v11  ;;  %v9802_v2 = vcombine.low %v8555_v14, %v8558_v30  ;;  %v8023_v30 = vld [vmem:[%s8123_s20 + $0x3c] sm:$0xf] }
  0xf1   : > { %7264 = vmatprep.subr.bf16.mxu0 %v7897_v37  ;;  %6918 = vmatprep.mubr.bf16.mxu1 %v1516_v24  ;;  %v6204_v56 = vcombine.low %v8023_v30, %v9032_v3  ;;  %v7925_v3 = vld [vmem:[%s9766_s1 + $0x230] sm:$0xff]   ;;  %v7936_v24 = vld [vmem:[%s9766_s1 + $0x548] sm:$0xff]  }
  0xf2   : > { %7254 = vmatprep.mubr.bf16.mxu0 %v8793_v4  ;;  %v9798_v4 = vrot.slane %v8787_v55, 3  ;;  %v7906_v55 = vld [vmem:[%s9766_s1 + $0x1f8] sm:$0xff]  }
  0xf3   : > { %6929 = vmatpush3.bf16.msra.mxu1 %v7896_v11  ;;  %v7934_v11 = vld [vmem:[%s8123_s20 + $0x20] sm:$0xff]  }
  0xf4   : > { %7265 = vmatpush3.bf16.msra.mxu0 %v7897_v37  ;;  %6930 = vmatprep.subr.bf16.mxu1 %v7898_v52  ;;  %v1697_v59 = vsel %vm1694_vm4, %v1695_v58, %v9798_v4  ;;  %v9194_v37 = vld [vmem:[%s8123_s20 + $0x1c] sm:$0xf]  ;;  %v5159_v58 = vrot.slane %v9203_v53, 2 }
  0xf5   : > { %7266 = vmatprep.subr.bf16.mxu0 %v7899_v51  ;;  %v6259_v50 = vcombine.low %v4481_v6, %v9194_v37 }
  0xf6   : > { %6919 = vmatmul.mubr.bf16.gmra.mrb[8].mxu1 %v1525_v40  ;;  %v7937_v40 = vld [vmem:[%s9766_s1 + $0x250] sm:$0xff]  }
  0xf7   : > { %6931 = vmatpush3.bf16.msra.mxu1 %v7898_v52  ;;  %7255 = vmatmul.mubr.bf16.gmra.mrb[8].mxu0 %v3957_v12  ;;  %v7942_v52 = vld [vmem:[%s8123_s20 + $0x28] sm:$0xff]   ;;  %v7944_v12 = vld [vmem:[%s8123_s20 + $0x30] sm:$0xff]   ;;  %v4547_v4 = vshll.u32 %v6259_v50, 16 }
  0xf8   : > { %7267 = vmatpush3.bf16.msra.mxu0 %v7899_v51  ;;  %6932 = vmatprep.subr.bf16.mxu1 %v7900_v36  ;;  %v5157_v51 = vrot.slane %v9200_v31, 2 }
  0xf9   : > { %7268 = vmatprep.subr.bf16.mxu0 %v7901_v43  ;;  %6938 = vmatprep.mubr.bf16.mxu1 %v1697_v59  ;;  %v7939_v59 = vld [vmem:[%s9766_s1 + $0x258] sm:$0xff]  }
  0xfa   : > { %7274 = vmatprep.mubr.bf16.mxu0 %v9799_v10  ;;  %v4549_v10 = vrot.slane %v4547_v4, 1  ;;  %v7962_v4 = vld [vmem:[%s9766_s1 + $0x588] sm:$0xff]  }
  0xfb   : > { %6933 = vmatpush3.bf16.msra.mxu1 %v7900_v36  ;;  %v9222_v36 = vsel %vm1058_vm3, %v5157_v51, %v5159_v58 }
  0xfc   : > { %7269 = vmatpush3.bf16.msra.mxu0 %v7901_v43  ;;  %6934 = vmatprep.subr.bf16.mxu1 %v7902_v25  ;;  %v9226_v43 = vld [vmem:[%s8123_s20 + $0x20] sm:$0xff]  }
  0xfd   : > { %7270 = vmatprep.subr.bf16.mxu0 %v7903_v22 }
  0xff   : > { %6935 = vmatpush3.bf16.msra.mxu1 %v7902_v25  ;;  %v7948_v25 = vld [vmem:[%s8123_s20 + $0x38] sm:$0xff]  }
 0x100   : > { %7271 = vmatpush3.bf16.msra.mxu0 %v7903_v22  ;;  %6936 = vmatprep.subr.bf16.mxu1 %v7906_v55  ;;  %v4545_v22 = vshrl.u32 %v6259_v50, 16 }
 0x101   : > { %7272 = vmatprep.subr.bf16.mxu0 %v7907_v32 }
 0x103   : > { %6937 = vmatpush3.bf16.msra.mxu1 %v7906_v55  ;;  %v8045_v55 = vmov 0  }
 0x104   : > { %7273 = vmatpush3.bf16.msra.mxu0 %v7907_v32  ;;  %6950 = vmatprep.subr.bf16.mxu1 %v7909_v38  ;;  %236 = vst.msk [vmem:[%s9241_s9] sm:$0xf] %vm235_vm8, %v8045_v55  ;;  %237 = vst.msk [vmem:[%s9241_s9 + $0x4] sm:$0xf] %vm235_vm8, %v8045_v55  ;;  %v7941_v32 = vld [vmem:[%s9766_s1 + $0x260] sm:$0xff]  }
 0x105   : > { %7286 = vmatprep.subr.bf16.mxu0 %v7911_v39  ;;  %238 = vst.msk [vmem:[%s9241_s9 + $0x8] sm:$0xf] %vm235_vm8, %v8045_v55  ;;  %243 = vst.msk [vmem:[%s9241_s9 + $0x40] sm:$0xf] %vm235_vm8, %v8045_v55  ;;  %7741 = vset.pattern.permute.xlu0 %v8045_v55 }
 0x106   : > { %6939 = vmatmul.mubr.bf16.vlgmr.msra.gmra.mrb[0].mxu1 %v8838_v57  ;;  %v9801_v57 = vcombine.low %v8539_v45, %v8548_v29  ;;  %v1880_v45 = vrot.slane %v1878_v8, 3  ;;  %v1883_v29 = vrot.slane %v1881_v1, 4  ;;  %244 = vst.msk [vmem:[%s9241_s9 + $0x44] sm:$0xf] %vm235_vm8, %v8045_v55  ;;  %v8025_v8 = vld [vmem:[%s8123_s20 + $0x8] sm:$0xf]  ;;  %7742 = vset.pattern.permute.xlu1 %v8045_v55 }
 0x107   : > { %6951 = vmatpush3.bf16.msra.mxu1 %v7909_v38  ;;  %7275 = vmatmul.mubr.bf16.vlgmr.msra.gmra.mrb[0].mxu0 %v9800_v63  ;;  %246 = vst.msk [vmem:[%s9241_s9 + $0x48] sm:$0x3] %vm245_vm7, %v8045_v55  ;;  %v5341_v38 = vld [vmem:[%s9768_s3] sm:$0xff] }
 0x108   : > { %7287 = vmatpush3.bf16.msra.mxu0 %v7911_v39  ;;  %6952 = vmatprep.subr.bf16.mxu1 %v7913_v35  ;;  %v1884_v14 = vor.u32 %v1883_v29, %v1880_v45  ;;  %v7943_v39 = vld [vmem:[%s9766_s1 + $0x560] sm:$0xff]   ;;  %v7947_v45 = vld [vmem:[%s9766_s1 + $0x270] sm:$0xff]   ;;  %v9296_v29 = vld [vmem:[%s8123_s20 + $0x28] sm:$0xff]   ;;  %242 = vst.msk [vmem:[%s9241_s9 + $0x3c] sm:$0xe] %vm241_vm9, %v8045_v55 }
 0x109   : > { %7288 = vmatprep.subr.bf16.mxu0 %v7914_v42  ;;  %6942 = vmatprep.mubr.bf16.mxu1 %v8845_v23  ;;  %v7918_v23 = vld [vmem:[%s9766_s1 + $0x518] sm:$0xff]   ;;  %v4560_v30 = vshll.u32 %v9296_v29, 16  ;;  %240 = vst.msk [vmem:[%s9241_s9 + $0xc] sm:$0x1] %vm239_vm10, %v8045_v55 }
 0x10a   : > { %7278 = vmatprep.mubr.bf16.mxu0 %v9801_v57  ;;  %5355 = vperm.xlu0 %7741, %v5341_v38   ;;  %v8024_v57 = vld [vmem:[%s8123_s20 + $0xc] sm:$0xf] }
 0x10b   : > { %6953 = vmatpush3.bf16.msra.mxu1 %v7913_v35  ;;  %v7951_v35 = vld [vmem:[%s8123_s20 + $0x40] sm:$0xff]   ;;  %v5927_v1 = vcombine.low %v8025_v8, %v8024_v57  ;;  %v5350_v38 = vld [vmem:[%s9768_s3 + $0x48] sm:$0xff] }
 0x10c   : > { %7289 = vmatpush3.bf16.msra.mxu0 %v7914_v42  ;;  %6954 = vmatprep.subr.bf16.mxu1 %v7915_v17  ;;  %v4550_v42 = vor.u32 %v4549_v10, %v4545_v22  ;;  %v4580_v10 = vshrl.u32 %v9200_v31, 16  ;;  %v8031_v57 = vld [vmem:[%s8123_s20 + $0x24] sm:$0xf] }
 0x10d   : > { %7290 = vmatprep.subr.bf16.mxu0 %v7916_v44 }
 0x10e   : > { %6943 = vmatmul.mubr.bf16.gmra.mrb[4].mxu1 %v8852_v0  ;;  %v9803_v0 = vcombine.low %v8561_v18, %v8564_v48  ;;  %v1888_v18 = vsel %vm1876_vm6, %v1884_v14, %v8897_v60  ;;  %v7932_v48 = vld [vmem:[%s8123_s20 + $0x18] sm:$0xff]   ;;  %v4556_v14 = vshrl.u32 %v9226_v43, 16 }
 0x10f   : > { %6955 = vmatpush3.bf16.msra.mxu1 %v7915_v17  ;;  %7279 = vmatmul.mubr.bf16.gmra.mrb[4].mxu0 %v9802_v2  ;;  %v7930_v60 = vld [vmem:[%s9766_s1 + $0x538] sm:$0xff]   ;;  %v5343_v17 = vld [vmem:[%s9768_s3 + $0x10] sm:$0xff] }
 0x110   : > { %7291 = vmatpush3.bf16.msra.mxu0 %v7916_v44  ;;  %6956 = vmatprep.subr.bf16.mxu1 %v7917_v46  ;;  %v7946_v44 = vld [vmem:[%s9766_s1 + $0x568] sm:$0xff]   ;;  %v7949_v2 = vld [vmem:[%s9766_s1 + $0x570] sm:$0xff]  }
 0x111   : > { %7292 = vmatprep.subr.bf16.mxu0 %v7918_v23  ;;  %6946 = vmatprep.mubr.bf16.mxu1 %v8860_v27  ;;  %v7924_v27 = vld [vmem:[%s9766_s1 + $0x528] sm:$0xff]  }
 0x112   : > { %7282 = vmatprep.mubr.bf16.mxu0 %v9803_v0  ;;  %5365 = vperm.xlu1 %7742, %v5343_v17   ;;  %v7952_v0 = vld [vmem:[%s9766_s1 + $0x278] sm:$0xff]   ;;  %v5351_v17 = vld [vmem:[%s9768_s3 + $0x50] sm:$0xff] }
 0x113   : > { %6957 = vmatpush3.bf16.msra.mxu1 %v7917_v46 }
 0x114   : > { %7293 = vmatpush3.bf16.msra.mxu0 %v7918_v23  ;;  %6958 = vmatprep.subr.bf16.mxu1 %v7919_v28  ;;  %v5342_v23 = vld [vmem:[%s9768_s3 + $0x8] sm:$0xff] }
 0x115   : > { %7294 = vmatprep.subr.bf16.mxu0 %v7921_v15  ;;  %5360 = vperm.xlu0 %7741, %v5342_v23   ;;  %v5352_v23 = vld [vmem:[%s9768_s3 + $0x58] sm:$0xff] }
 0x116   : > { %6947 = vmatmul.mubr.bf16.gmra.mrb[8].mxu1 %v8866_v49  ;;  %v7929_v49 = vld [vmem:[%s9766_s1 + $0x238] sm:$0xff]  }
 0x117   : > { %6959 = vmatpush3.bf16.msra.mxu1 %v7919_v28  ;;  %7283 = vmatmul.mubr.bf16.gmra.mrb[8].mxu0 %v6204_v56  ;;  %v9305_v28 = vld [vmem:[%s8123_s20 + $0x30] sm:$0xff]   ;;  %v5346_v56 = vld [vmem:[%s9768_s3 + $0x28] sm:$0xff] }
 0x118   : > { %7295 = vmatpush3.bf16.msra.mxu0 %v7921_v15  ;;  %6960 = vmatprep.subr.bf16.mxu1 %v7923_v13  ;;  %v5345_v15 = vld [vmem:[%s9768_s3 + $0x20] sm:$0xff] }
 0x119   : > { %7296 = vmatprep.subr.bf16.mxu0 %v7924_v27  ;;  %6966 = vmatprep.mubr.bf16.mxu1 %v1888_v18  ;;  %v4568_v18 = vshll.u32 %v9305_v28, 16 }
 0x11a   : > { %7302 = vmatprep.mubr.bf16.mxu0 %v7932_v48  ;;  %5375 = vperm.xlu0 %7741, %v5345_v15   ;;  %v5347_v48 = vld [vmem:[%s9768_s3 + $0x30] sm:$0xff] }
 0x11b   : > { %6961 = vmatpush3.bf16.msra.mxu1 %v7923_v13  ;;  %v7953_v13 = vld [vmem:[%s9766_s1 + $0x578] sm:$0xff]  }
 0x11c   : > { %7297 = vmatpush3.bf16.msra.mxu0 %v7924_v27  ;;  %6962 = vmatprep.subr.bf16.mxu1 %v7925_v3  ;;  %v4564_v27 = vshrl.u32 %v9296_v29, 16 }
 0x11d   : > { %7298 = vmatprep.subr.bf16.mxu0 %v7927_v20 }
 0x11e   : > { %5385 = vperm.xlu0 %7741, %v5347_v48   ;;  %v8033_v48 = vld [vmem:[%s8123_s20 + $0x2c] sm:$0xf] }
 0x11f   : > { %6963 = vmatpush3.bf16.msra.mxu1 %v7925_v3  ;;  %v7955_v3 = vld [vmem:[%s9766_s1 + $0x280] sm:$0xff]  }
 0x120   : > { %7299 = vmatpush3.bf16.msra.mxu0 %v7927_v20  ;;  %6964 = vmatprep.subr.bf16.mxu1 %v7929_v49 }
 0x121   : > { %7300 = vmatprep.subr.bf16.mxu0 %v7930_v60 }
 0x123   : > { %6965 = vmatpush3.bf16.msra.mxu1 %v7929_v49  ;;  %v4562_v49 = vrot.slane %v4560_v30, 1 }
 0x124   : > { %7301 = vmatpush3.bf16.msra.mxu0 %v7930_v60  ;;  %6978 = vmatprep.subr.bf16.mxu1 %v7931_v5  ;;  %v5348_v60 = vld [vmem:[%s9768_s3 + $0x38] sm:$0xff] }
 0x125   : > { %7314 = vmatprep.subr.bf16.mxu0 %v7933_v41  ;;  %v4566_v6 = vor.u32 %v4564_v27, %v4562_v49 }
 0x126   : > { %6967 = vmatmul.mubr.bf16.vlgmr.msra.gmra.mrb[0].mxu1 %v8913_v7  ;;  %v7938_v7 = vld [vmem:[%s9766_s1 + $0x550] sm:$0xff]  }
 0x127   : > { %6979 = vmatpush3.bf16.msra.mxu1 %v7931_v5  ;;  %7303 = vmatmul.mubr.bf16.vlgmr.msra.gmra.mrb[0].mxu0 %v7934_v11  ;;  %v7958_v5 = vld [vmem:[%s9766_s1 + $0x580] sm:$0xff]   ;;  %v8027_v11 = vld [vmem:[%s8123_s20 + $0x14] sm:$0xf] }
 0x128   : > { %7315 = vmatpush3.bf16.msra.mxu0 %v7933_v41  ;;  %6980 = vmatprep.subr.bf16.mxu1 %v7935_v47  ;;  %v8026_v41 = vld [vmem:[%s8123_s20 + $0x10] sm:$0xf] }
 0x129   : > { %7316 = vmatprep.subr.bf16.mxu0 %v7936_v24  ;;  %6970 = vmatprep.mubr.bf16.mxu1 %v8926_v9  ;;  %v7940_v9 = vld [vmem:[%s9766_s1 + $0x558] sm:$0xff]  }
 0x12a   : > { %7306 = vmatprep.mubr.bf16.mxu0 %v7942_v52  ;;  %v5349_v52 = vld [vmem:[%s9768_s3 + $0x40] sm:$0xff] }
 0x12b   : > { %6981 = vmatpush3.bf16.msra.mxu1 %v7935_v47  ;;  %v5928_v47 = vcombine.low %v8026_v41, %v8027_v11  ;;  %5395 = vperm.xlu0 %7741, %v5349_v52   ;;  %v7970_v11 = vld [vmem:[%s9766_s1 + $0x5a0] sm:$0xff]   ;;  %v4765_v52 = vrot.slane %v9226_v43, 1 }
 0x12c   : > { %7317 = vmatpush3.bf16.msra.mxu0 %v7936_v24  ;;  %6982 = vmatprep.subr.bf16.mxu1 %v7937_v40  ;;  %v4570_v24 = vrot.slane %v4568_v18, 1 }
 0x12d   : > { %7318 = vmatprep.subr.bf16.mxu0 %v7938_v7 }
 0x12e   : > { %6971 = vmatmul.mubr.bf16.gmra.mrb[4].mxu1 %v8935_v62  ;;  %v4552_v62 = vshll.u32 %v9226_v43, 16  ;;  %v4571_v22 = vsel %vm326_vm0, %v4566_v6, %v4570_v24 }
 0x12f   : > { %6983 = vmatpush3.bf16.msra.mxu1 %v7937_v40  ;;  %7307 = vmatmul.mubr.bf16.gmra.mrb[4].mxu0 %v7944_v12  ;;  %v7961_v40 = vld [vmem:[%s9766_s1 + $0x288] sm:$0xff]   ;;  %v4576_v12 = vshll.u32 %v9200_v31, 16 }
 0x130   : > { %7319 = vmatpush3.bf16.msra.mxu0 %v7938_v7  ;;  %6984 = vmatprep.subr.bf16.mxu1 %v7939_v59  ;;  %v4554_v63 = vrot.slane %v4552_v62, 1  ;;  %v4572_v7 = vshrl.u32 %v9305_v28, 16 }
 0x131   : > { %7320 = vmatprep.subr.bf16.mxu0 %v7940_v9  ;;  %6974 = vmatprep.mubr.bf16.mxu1 %v8947_v16  ;;  %v7945_v16 = vld [vmem:[%s9766_s1 + $0x268] sm:$0xff]  }
 0x132   : > { %7310 = vmatprep.mubr.bf16.mxu0 %v7948_v25  ;;  %v4555_v46 = vsel %vm326_vm0, %v4550_v42, %v4554_v63  ;;  %v4558_v20 = vor.u32 %v4556_v14, %v4554_v63  ;;  %v4578_v42 = vrot.slane %v4576_v12, 1  ;;  %v9373_v63 = vld [vmem:[%s8123_s20 + $0x48] ss:$0 sps:$4 sm:$0x11]   ;;  %5405 = vperm.xlu0 %7741, %v5351_v17   ;;  %v7987_v17 = vld [vmem:[%s8123_s20 + $0x14] sm:$0xff]  }
 0x133   : > { %6985 = vmatpush3.bf16.msra.mxu1 %v7939_v59  ;;  %v8028_v59 = vld [vmem:[%s8123_s20 + $0x18] sm:$0xf]  ;;  %v4592_v15 = vshll.u32 %v9373_v63, 16 }
 0x134   : > { %7321 = vmatpush3.bf16.msra.mxu0 %v7940_v9  ;;  %6986 = vmatprep.subr.bf16.mxu1 %v7941_v32  ;;  %v4563_v50 = vsel %vm326_vm0, %v4558_v20, %v4562_v49  ;;  %v8029_v9 = vld [vmem:[%s8123_s20 + $0x1c] sm:$0xf] }
 0x135   : > { %7322 = vmatprep.subr.bf16.mxu0 %v7943_v39  ;;  %v5929_v25 = vcombine.low %v8028_v59, %v8029_v9  ;;  %v4594_v41 = vrot.slane %v4592_v15, 1  ;;  %v7983_v59 = vld [vmem:[%s8123_s20 + $0xc] sm:$0xff]  }
 0x136   : > { %6975 = vmatmul.mubr.bf16.gmra.mrb[8].mxu1 %v9005_v33  ;;  %v5344_v33 = vld [vmem:[%s9768_s3 + $0x18] sm:$0xff]  ;;  %v7976_v9 = vld [vmem:[%s9766_s1 + $0x2b0] sm:$0xff]  }
 0x137   : > { %6987 = vmatpush3.bf16.msra.mxu1 %v7941_v32  ;;  %7311 = vmatmul.mubr.bf16.gmra.mrb[8].mxu0 %v7951_v35  ;;  %v4584_v32 = vshll.u32 %v9203_v53, 16  ;;  %v4574_v35 = vor.u32 %v4572_v7, %v4570_v24  ;;  %v7990_v15 = vld [vmem:[%s9766_s1 + $0x2d0] sm:$0xff]  }
 0x138   : > { %7323 = vmatpush3.bf16.msra.mxu0 %v7943_v39  ;;  %6988 = vmatprep.subr.bf16.mxu1 %v7945_v16  ;;  %v7963_v39 = vld [vmem:[%s9766_s1 + $0x290] sm:$0xff]  }
 0x139   : > { %7324 = vmatprep.subr.bf16.mxu0 %v7946_v44  ;;  %6994 = vmatprep.mubr.bf16.mxu1 %v5927_v1  ;;  %v4582_v1 = vor.u32 %v4580_v10, %v4578_v42 }
 0x13a   : > { %7330 = vmatprep.mubr.bf16.mxu0 %v4555_v46  ;;  %5370 = vperm.xlu1 %7742, %v5344_v33   ;;  %v4586_v46 = vrot.slane %v4584_v32, 1  ;;  %v4579_v33 = vsel %vm326_vm0, %v4574_v35, %v4578_v42  ;;  %v4767_v35 = vrot.slane %v9296_v29, 1  ;;  %v7986_v42 = vld [vmem:[%s9766_s1 + $0x5c0] sm:$0xff]  }
 0x13b   : > { %6989 = vmatpush3.bf16.msra.mxu1 %v7945_v16  ;;  %v7964_v16 = vld [vmem:[%s9766_s1 + $0x590] sm:$0xff]  }
 0x13c   : > { %7325 = vmatpush3.bf16.msra.mxu0 %v7946_v44  ;;  %6990 = vmatprep.subr.bf16.mxu1 %v7947_v45  ;;  %v8030_v44 = vld [vmem:[%s8123_s20 + $0x20] sm:$0xf]  ;;  %v4587_v20 = vsel %vm326_vm0, %v4582_v1, %v4586_v46  ;;  %v7989_v1 = vld [vmem:[%s9766_s1 + $0x5c8] sm:$0xff]  }
 0x13d   : > { %7326 = vmatprep.subr.bf16.mxu0 %v7949_v2  ;;  %v5930_v8 = vcombine.low %v8030_v44, %v8031_v57  ;;  %v2437_v44 = vld [vmem:[%s8123_s20 + $0xc] sm:$0xf]  ;;  %v4768_v57 = vsel %vm670_vm1, %v4765_v52, %v4767_v35 }
 0x13e   : > { %5380 = vperm.xlu1 %7742, %v5346_v56   ;;  %v7966_v56 = vld [vmem:[%s9766_s1 + $0x598] sm:$0xff]  }
 0x13f   : > { %6991 = vmatpush3.bf16.msra.mxu1 %v7947_v45  ;;  %v7965_v45 = vld [vmem:[%s9766_s1 + $0x298] sm:$0xff]  }
 0x140   : > { %7327 = vmatpush3.bf16.msra.mxu0 %v7949_v2  ;;  %6992 = vmatprep.subr.bf16.mxu1 %v7952_v0  ;;  %v4588_v2 = vshrl.u32 %v9203_v53, 16 }
 0x141   : > { %7328 = vmatprep.subr.bf16.mxu0 %v7953_v13 }
 0x142   : > { %5390 = vperm.xlu1 %7742, %v5348_v60   ;;  %v7968_v60 = vld [vmem:[%s9766_s1 + $0x2a0] sm:$0xff]  }
 0x143   : > { %6993 = vmatpush3.bf16.msra.mxu1 %v7952_v0  ;;  %v4743_v0 = vld [vmem:[%s8123_s20 + $0x18] sm:$0xe] }
 0x144   : > { %7329 = vmatpush3.bf16.msra.mxu0 %v7953_v13  ;;  %7006 = vmatprep.subr.bf16.mxu1 %v7955_v3  ;;  %v8032_v13 = vld [vmem:[%s8123_s20 + $0x28] sm:$0xf]  ;;  %v9404_v49 = vcombine.low %v4743_v0, %v9194_v37  ;;  %v4771_v0 = vrot.slane %v9200_v31, 1 }
 0x145   : > { %7342 = vmatprep.subr.bf16.mxu0 %v7958_v5 }
 0x146   : > { %6995 = vmatmul.mubr.bf16.vlgmr.msra.gmra.mrb[0].mxu1 %v5928_v47  ;;  %5400 = vperm.xlu1 %7742, %v5350_v38   ;;  %v8034_v47 = vld [vmem:[%s8123_s20 + $0x30] sm:$0xf]  ;;  %v4764_v24 = vrot.slane %v9404_v49, 1  ;;  %v7982_v38 = vld [vmem:[%s9766_s1 + $0x5b8] sm:$0xff]  }
 0x147   : > { %7007 = vmatpush3.bf16.msra.mxu1 %v7955_v3  ;;  %7331 = vmatmul.mubr.bf16.vlgmr.msra.gmra.mrb[0].mxu0 %v4563_v50  ;;  %v5931_v3 = vcombine.low %v8032_v13, %v8033_v48  ;;  %v5932_v6 = vcombine.low %v8034_v47, %v8977_v26  ;;  %v7973_v50 = vld [vmem:[%s9766_s1 + $0x2a8] sm:$0xff]   ;;  %v4773_v48 = vrot.slane %v9203_v53, 1 }
 0x148   : > { %7343 = vmatpush3.bf16.msra.mxu0 %v7958_v5  ;;  %7008 = vmatprep.subr.bf16.mxu1 %v7961_v40  ;;  %v4590_v5 = vor.u32 %v4588_v2, %v4586_v46  ;;  %v4766_v26 = vsel %vm670_vm1, %v4764_v24, %v4765_v52  ;;  %v7994_v46 = vld [vmem:[%s8123_s20 + $0x1c] sm:$0xff]   ;;  %v7995_v13 = vld [vmem:[%s8123_s20 + $0x24] sm:$0xff]   ;;  %v8000_v47 = vld [vmem:[%s8123_s20 + $0x2c] sm:$0xff]  }
 0x149   : > { %7344 = vmatprep.subr.bf16.mxu0 %v7962_v4  ;;  %6998 = vmatprep.mubr.bf16.mxu1 %v5929_v25  ;;  %v7978_v25 = vld [vmem:[%s9766_s1 + $0x5b0] sm:$0xff]  }
 0x14a   : > { %7334 = vmatprep.mubr.bf16.mxu0 %v4571_v22  ;;  %5410 = vperm.xlu1 %7742, %v5352_v23   ;;  %v7981_v22 = vld [vmem:[%s9766_s1 + $0x2b8] sm:$0xff]   ;;  %v8035_v23 = vld [vmem:[%s8123_s20 + $0x10] sm:$0xf] }
 0x14b   : > { %7009 = vmatpush3.bf16.msra.mxu1 %v7961_v40  ;;  %v4595_v40 = vsel %vm326_vm0, %v4590_v5, %v4594_v41  ;;  %v7992_v5 = vld [vmem:[%s9766_s1 + $0x2d8] sm:$0xff]  }
 0x14c   : > { %7345 = vmatpush3.bf16.msra.mxu0 %v7962_v4  ;;  %7010 = vmatprep.subr.bf16.mxu1 %v7963_v39  ;;  %v7974_v4 = vld [vmem:[%s9766_s1 + $0x5a8] sm:$0xff]  }
 0x14d   : > { %7346 = vmatprep.subr.bf16.mxu0 %v7964_v16 }
 0x14e   : > { %6999 = vmatmul.mubr.bf16.gmra.mrb[4].mxu1 %v5930_v8  ;;  %v7988_v8 = vld [vmem:[%s9766_s1 + $0x2c8] sm:$0xff]  }
 0x14f   : > { %7011 = vmatpush3.bf16.msra.mxu1 %v7963_v39  ;;  %7335 = vmatmul.mubr.bf16.gmra.mrb[4].mxu0 %v4579_v33  ;;  %v7984_v39 = vld [vmem:[%s9766_s1 + $0x2c0] sm:$0xff]  }
 0x150   : > { %7347 = vmatpush3.bf16.msra.mxu0 %v7964_v16  ;;  %7012 = vmatprep.subr.bf16.mxu1 %v7965_v45  ;;  %v4769_v16 = vrot.slane %v9305_v28, 1 }
 0x151   : > { %7348 = vmatprep.subr.bf16.mxu0 %v7966_v56  ;;  %7002 = vmatprep.mubr.bf16.mxu1 %v5931_v3 }
 0x152   : > { %7338 = vmatprep.mubr.bf16.mxu0 %v4587_v20  ;;  %v4770_v33 = vsel %vm670_vm1, %v4767_v35, %v4769_v16  ;;  %v4946_v20 = vshrl.u32 %v9404_v49, 16  ;;  %v4772_v41 = vsel %vm670_vm1, %v4769_v16, %v4771_v0 }
 0x153   : > { %7013 = vmatpush3.bf16.msra.mxu1 %v7965_v45  ;;  %v5987_v45 = vcombine.low %v2437_v44, %v8035_v23  ;;  %v8002_v44 = vld [vmem:[%s9766_s1 + $0x2f0] sm:$0xff]   ;;  %v8005_v23 = vld [vmem:[%s9766_s1 + $0x5f8] sm:$0xff]  }
 0x154   : > { %7349 = vmatpush3.bf16.msra.mxu0 %v7966_v56  ;;  %7014 = vmatprep.subr.bf16.mxu1 %v7968_v60  ;;  %v7991_v56 = vld [vmem:[%s9766_s1 + $0x5d0] sm:$0xff]   ;;  %v4948_v52 = vrot.slane %v4946_v20, 1 }
 0x155   : > { %7350 = vmatprep.subr.bf16.mxu0 %v7970_v11  ;;  %v2503_v3 = vshll.u32 %v5987_v45, 16  ;;  %v2501_v24 = vshrl.u32 %v5987_v45, 16  ;;  %v9805_v45 = vshrl.u32 %v8151_v21, 16 }
 0x156   : > { %7003 = vmatmul.mubr.bf16.gmra.mrb[8].mxu1 %v5932_v6  ;;  %v4774_v6 = vsel %vm670_vm1, %v4771_v0, %v4773_v48  ;;  %v4961_v0 = vrot.slane %v4572_v7, 1 }
 0x157   : > { %7015 = vmatpush3.bf16.msra.mxu1 %v7968_v60  ;;  %7339 = vmatmul.mubr.bf16.gmra.mrb[8].mxu0 %v4595_v40  ;;  %v4949_v60 = vshll.u32 %v9404_v49, 16  ;;  %v2505_v49 = vrot.slane %v2503_v3, 1  ;;  %v4953_v40 = vrot.slane %v4556_v14, 1  ;;  %v9808_v3 = vshll.u32 %v8205_v54, 16 }
 0x158   : > { %7351 = vmatpush3.bf16.msra.mxu0 %v7970_v11  ;;  %7016 = vmatprep.subr.bf16.mxu1 %v7973_v50  ;;  %v7993_v11 = vld [vmem:[%s9766_s1 + $0x5d8] sm:$0xff]  }
 0x159   : > { %7352 = vmatprep.subr.bf16.mxu0 %v7974_v4  ;;  %7022 = vmatprep.mubr.bf16.mxu1 %v7983_v59  ;;  %v7996_v59 = vld [vmem:[%s9766_s1 + $0x2e0] sm:$0xff]   ;;  %v2506_v14 = vor.u32 %v2505_v49, %v2501_v24  ;;  %v2526_v20 = vrot.slane %v9808_v3, 1 }
 0x15a   : > { %7358 = vmatprep.mubr.bf16.mxu0 %v4766_v26  ;;  %v4775_v26 = vrot.slane %v9373_v63, 1  ;;  %v7998_v63 = vld [vmem:[%s9766_s1 + $0x2e8] sm:$0xff]  }
 0x15b   : > { %7017 = vmatpush3.bf16.msra.mxu1 %v7973_v50  ;;  %v4951_v50 = vrot.slane %v4949_v60, 2 }
 0x15c   : > { %7353 = vmatpush3.bf16.msra.mxu0 %v7974_v4  ;;  %7018 = vmatprep.subr.bf16.mxu1 %v7976_v9  ;;  %v4954_v4 = vrot.slane %v4552_v62, 2  ;;  %v4776_v35 = vsel %vm670_vm1, %v4773_v48, %v4775_v26 }
 0x15d   : > { %7354 = vmatprep.subr.bf16.mxu0 %v7978_v25 }
 0x15f   : > { %7019 = vmatpush3.bf16.msra.mxu1 %v7976_v9  ;;  %v7997_v9 = vld [vmem:[%s9766_s1 + $0x5e0] sm:$0xff]  }
 0x160   : > { %7355 = vmatpush3.bf16.msra.mxu0 %v7978_v25  ;;  %7020 = vmatprep.subr.bf16.mxu1 %v7981_v22  ;;  %v8001_v25 = vld [vmem:[%s8123_s20 + $0x34] sm:$0xff]  }
 0x161   : > { %7356 = vmatprep.subr.bf16.mxu0 %v7982_v38 }
 0x163   : > { %7021 = vmatpush3.bf16.msra.mxu1 %v7981_v22  ;;  %v9804_v22 = vshll.u32 %v8151_v21, 16  ;;  %v9807_v21 = vshrl.u32 %v8173_v34, 16 }
 0x164   : > { %7357 = vmatpush3.bf16.msra.mxu0 %v7982_v38  ;;  %7034 = vmatprep.subr.bf16.mxu1 %v7984_v39  ;;  %v4952_v38 = vor.u32 %v4951_v50, %v4948_v52  ;;  %v9810_v52 = vshll.u32 %v8219_v61, 16 }
 0x165   : > { %7370 = vmatprep.subr.bf16.mxu0 %v7986_v42  ;;  %v2510_v62 = vrot.slane %v9804_v22, 1  ;;  %v8036_v22 = vld [vmem:[%s8123_s20 + $0x3c] ss:$0 sps:$4 sm:$0x11]  }
 0x166   : > { %7023 = vmatmul.mubr.bf16.vlgmr.msra.gmra.mrb[0].mxu1 %v7987_v17  ;;  %v2534_v50 = vrot.slane %v9810_v52, 1 }
 0x167   : > { %7035 = vmatpush3.bf16.msra.mxu1 %v7984_v39  ;;  %7359 = vmatmul.mubr.bf16.vlgmr.msra.gmra.mrb[0].mxu0 %v4768_v57  ;;  %v4955_v39 = vor.u32 %v4954_v4, %v4953_v40  ;;  %v2511_v17 = vsel %vm326_vm0, %v2506_v14, %v2510_v62  ;;  %v8003_v57 = vld [vmem:[%s9766_s1 + $0x5f0] sm:$0xff]  }
 0x168   : > { %7371 = vmatpush3.bf16.msra.mxu0 %v7986_v42  ;;  %7036 = vmatprep.subr.bf16.mxu1 %v7988_v8  ;;  %v7999_v42 = vld [vmem:[%s9766_s1 + $0x5e8] sm:$0xff]  }
 0x169   : > { %7372 = vmatprep.subr.bf16.mxu0 %v7989_v1  ;;  %7026 = vmatprep.mubr.bf16.mxu1 %v7994_v46  ;;  %v4956_v16 = vsel %vm852_vm2, %v4952_v38, %v4955_v39  ;;  %v4958_v46 = vrot.slane %v4560_v30, 2  ;;  %v5129_v38 = vld [vmem:[%s8123_s20 + $0x18] sm:$0xc] }
 0x16a   : > { %7362 = vmatprep.mubr.bf16.mxu0 %v4770_v33  ;;  %v2514_v33 = vor.u32 %v9805_v45, %v2510_v62  ;;  %v2548_v62 = vshll.u32 %v8036_v22, 16 }
 0x16b   : > { %7037 = vmatpush3.bf16.msra.mxu1 %v7988_v8  ;;  %v4957_v8 = vrot.slane %v4564_v27, 1  ;;  %v9806_v27 = vshll.u32 %v8173_v34, 16  ;;  %v4966_v34 = vrot.slane %v4576_v12, 2  ;;  %v4970_v12 = vrot.slane %v4584_v32, 2 }
 0x16c   : > { %7373 = vmatpush3.bf16.msra.mxu0 %v7989_v1  ;;  %7038 = vmatprep.subr.bf16.mxu1 %v7990_v15  ;;  %v8004_v1 = vld [vmem:[%s9766_s1 + $0x2f8] sm:$0xff]   ;;  %v9812_v32 = vshll.u32 %v8250_v19, 16 }
 0x16d   : > { %7374 = vmatprep.subr.bf16.mxu0 %v7991_v56  ;;  %v4959_v30 = vor.u32 %v4958_v46, %v4957_v8  ;;  %v2550_v8 = vrot.slane %v2548_v62, 1  ;;  %v8012_v46 = vld [vmem:[%s9766_s1 + $0x620] sm:$0xff]  }
 0x16e   : > { %7027 = vmatmul.mubr.bf16.gmra.mrb[4].mxu1 %v7995_v13  ;;  %v8007_v13 = vld [vmem:[%s9766_s1 + $0x600] sm:$0xff]  }
 0x16f   : > { %7039 = vmatpush3.bf16.msra.mxu1 %v7990_v15  ;;  %7363 = vmatmul.mubr.bf16.gmra.mrb[4].mxu0 %v4772_v41  ;;  %v2518_v15 = vrot.slane %v9806_v27, 1  ;;  %v4965_v41 = vrot.slane %v4580_v10, 1  ;;  %v4969_v10 = vrot.slane %v4588_v2, 1  ;;  %v9811_v2 = vshrl.u32 %v8219_v61, 16 }
 0x170   : > { %7375 = vmatpush3.bf16.msra.mxu0 %v7991_v56  ;;  %7040 = vmatprep.subr.bf16.mxu1 %v7992_v5  ;;  %v4962_v56 = vrot.slane %v4568_v18, 2  ;;  %v4960_v18 = vsel %vm852_vm2, %v4955_v39, %v4959_v30 }
 0x171   : > { %7376 = vmatprep.subr.bf16.mxu0 %v7993_v11  ;;  %7030 = vmatprep.mubr.bf16.mxu1 %v8000_v47  ;;  %v2522_v48 = vor.u32 %v9807_v21, %v2518_v15  ;;  %v2519_v7 = vsel %vm326_vm0, %v2514_v33, %v2518_v15  ;;  %v4967_v40 = vor.u32 %v4966_v34, %v4965_v41  ;;  %v5155_v33 = vrot.slane %v9305_v28, 2  ;;  %v8013_v15 = vld [vmem:[%s9766_s1 + $0x628] sm:$0xff]   ;;  %v8015_v28 = vld [vmem:[%s9766_s1 + $0x638] sm:$0xff]  }
 0x172   : > { %7366 = vmatprep.mubr.bf16.mxu0 %v4774_v6  ;;  %v4963_v60 = vor.u32 %v4962_v56, %v4961_v0  ;;  %v9809_v6 = vshrl.u32 %v8205_v54, 16  ;;  %v8009_v54 = vld [vmem:[%s9766_s1 + $0x610] sm:$0xff]   ;;  %v2538_v26 = vor.u32 %v9811_v2, %v2534_v50  ;;  %v4971_v14 = vor.u32 %v4970_v12, %v4969_v10 }
 0x173   : > { %7041 = vmatpush3.bf16.msra.mxu1 %v7992_v5  ;;  %v8008_v5 = vld [vmem:[%s9766_s1 + $0x608] sm:$0xff]   ;;  %v2527_v47 = vsel %vm326_vm0, %v2522_v48, %v2526_v20  ;;  %v5158_v56 = vsel %vm1058_vm3, %v5155_v33, %v5157_v51 }
 0x174   : > { %7377 = vmatpush3.bf16.msra.mxu0 %v7993_v11  ;;  %7042 = vmatprep.subr.bf16.mxu1 %v7996_v59  ;;  %v9543_v11 = vld [vmem:[%s8123_s20 + $0x48] ss:$0 sps:$4 sm:$0x33]   ;;  %v2530_v24 = vor.u32 %v9809_v6, %v2526_v20  ;;  %v4964_v49 = vsel %vm852_vm2, %v4959_v30, %v4963_v60  ;;  %v4968_v39 = vsel %vm852_vm2, %v4963_v60, %v4967_v40 }
 0x175   : > { %7378 = vmatprep.subr.bf16.mxu0 %v7997_v9  ;;  %v4974_v4 = vshrl.u32 %v9543_v11, 16 }
 0x176   : > { %7031 = vmatmul.mubr.bf16.gmra.mrb[8].mxu1 %v8001_v25  ;;  %v2535_v25 = vsel %vm326_vm0, %v2530_v24, %v2534_v50 }
 0x177   : > { %7043 = vmatpush3.bf16.msra.mxu1 %v7996_v59  ;;  %7367 = vmatmul.mubr.bf16.gmra.mrb[8].mxu0 %v4776_v35  ;;  %v4977_v59 = vshll.u32 %v9543_v11, 16  ;;  %v4976_v61 = vrot.slane %v4974_v4, 1 }
 0x178   : > { %7379 = vmatpush3.bf16.msra.mxu0 %v7997_v9  ;;  %7044 = vmatprep.subr.bf16.mxu1 %v7998_v63  ;;  %v2542_v9 = vrot.slane %v9812_v32, 1 }
 0x179   : > { %7380 = vmatprep.subr.bf16.mxu0 %v7999_v42  ;;  %7050 = vmatprep.mubr.bf16.mxu1 %v2511_v17  ;;  %v4979_v35 = vrot.slane %v4977_v59, 2  ;;  %v6340_v17 = vcombine.low %v5129_v38, %v9194_v37  ;;  %v5151_v37 = vrot.slane %v9226_v43, 2 }
 0x17a   : > { %7386 = vmatprep.mubr.bf16.mxu0 %v4956_v16  ;;  %v4972_v16 = vsel %vm852_vm2, %v4967_v40, %v4971_v14 }
 0x17b   : > { %7045 = vmatpush3.bf16.msra.mxu1 %v7998_v63  ;;  %v8010_v63 = vld [vmem:[%s9766_s1 + $0x618] sm:$0xff]  }
 0x17c   : > { %7381 = vmatpush3.bf16.msra.mxu0 %v7999_v42  ;;  %7046 = vmatprep.subr.bf16.mxu1 %v8002_v44  ;;  %v2543_v42 = vsel %vm326_vm0, %v2538_v26, %v2542_v9 }
 0x17d   : > { %7382 = vmatprep.subr.bf16.mxu0 %v8003_v57 }
 0x17f   : > { %7047 = vmatpush3.bf16.msra.mxu1 %v8002_v44  ;;  %v9813_v44 = vshrl.u32 %v8250_v19, 16  ;;  %v5153_v19 = vrot.slane %v9296_v29, 2  ;;  %v8014_v29 = vld [vmem:[%s9766_s1 + $0x630] sm:$0xff]  }
 0x180   : > { %7383 = vmatpush3.bf16.msra.mxu0 %v8003_v57  ;;  %7048 = vmatprep.subr.bf16.mxu1 %v8004_v1 }
 0x181   : > { %7384 = vmatprep.subr.bf16.mxu0 %v8005_v23  ;;  %v2546_v57 = vor.u32 %v9813_v44, %v2542_v9  ;;  %v5156_v43 = vsel %vm1058_vm3, %v5153_v19, %v5155_v33  ;;  %v5154_v30 = vsel %vm1058_vm3, %v5151_v37, %v5153_v19 }
 0x183   : > { %7049 = vmatpush3.bf16.msra.mxu1 %v8004_v1  ;;  %v4980_v1 = vor.u32 %v4979_v35, %v4976_v61  ;;  %v2551_v45 = vsel %vm326_vm0, %v2546_v57, %v2550_v8 }
 0x184   : > { %7385 = vmatpush3.bf16.msra.mxu0 %v8005_v23  ;;  %7426 = vmatprep.subr.bf16.mxu1 %v8007_v13  ;;  %v5150_v23 = vrot.slane %v6340_v17, 2 }
 0x185   : > { %7398 = vmatprep.subr.bf16.mxu0 %v8007_v13  ;;  %v4981_v27 = vsel %vm852_vm2, %v4971_v14, %v4980_v1  ;;  %v9623_v14 = vld [vmem:[%s9767_s2] ss:$0 sm:$0xff] }
 0x186   : > { %7051 = vmatmul.mubr.bf16.vlgmr.msra.gmra.mrb[0].mxu1 %v2519_v7  ;;  %v5152_v0 = vsel %vm1058_vm3, %v5150_v23, %v5151_v37 }
 0x187   : > { %7387 = vmatmul.mubr.bf16.vlgmr.msra.gmra.mrb[0].mxu0 %v4960_v18  ;;  %7434 = vmatpush3.bf16.msra.mxu1 %v8007_v13 }
 0x188   : > { %7399 = vmatpush3.bf16.msra.mxu0 %v8007_v13  ;;  %7427 = vmatprep.subr.bf16.mxu1 %v8008_v5  ;;  %v5161_v13 = vrot.slane %v9543_v11, 2 }
 0x189   : > { %7400 = vmatprep.subr.bf16.mxu0 %v8008_v5  ;;  %7054 = vmatprep.mubr.bf16.mxu1 %v2527_v47 }
 0x18a   : > { %7390 = vmatprep.mubr.bf16.mxu0 %v4964_v49  ;;  %v5162_v21 = vsel %vm1058_vm3, %v5159_v58, %v5161_v13 }
 0x18b   : > { %7435 = vmatpush3.bf16.msra.mxu1 %v8008_v5 }
 0x18c   : > { %7401 = vmatpush3.bf16.msra.mxu0 %v8008_v5  ;;  %7428 = vmatprep.subr.bf16.mxu1 %v8009_v54 }
 0x18d   : > { %7402 = vmatprep.subr.bf16.mxu0 %v8009_v54 }
 0x18e   : > { %7055 = vmatmul.mubr.bf16.gmra.mrb[4].mxu1 %v2535_v25 }
 0x18f   : > { %7391 = vmatmul.mubr.bf16.gmra.mrb[4].mxu0 %v4968_v39  ;;  %7436 = vmatpush3.bf16.msra.mxu1 %v8009_v54 }
 0x190   : > { %7403 = vmatpush3.bf16.msra.mxu0 %v8009_v54  ;;  %7429 = vmatprep.subr.bf16.mxu1 %v8010_v63  ;;  %v5356_v54 = vpop.permute.xlu0 %5355 }
 0x191   : > { %7404 = vmatprep.subr.bf16.mxu0 %v8010_v63  ;;  %7058 = vmatprep.mubr.bf16.mxu1 %v2543_v42  ;;  %v5366_v26 = vpop.permute.xlu1 %5365 }
 0x192   : > { %7394 = vmatprep.mubr.bf16.mxu0 %v4972_v16 }
 0x193   : > { %7437 = vmatpush3.bf16.msra.mxu1 %v8010_v63 }
 0x194   : > { %7405 = vmatpush3.bf16.msra.mxu0 %v8010_v63  ;;  %7430 = vmatprep.subr.bf16.mxu1 %v8012_v46  ;;  %v9618_v32 = vpop.permute.xlu0 %5360 }
 0x195   : > { %7406 = vmatprep.subr.bf16.mxu0 %v8012_v46 }
 0x196   : > { %7059 = vmatmul.mubr.bf16.gmra.mrb[8].mxu1 %v2551_v45 }
 0x197   : > { %7395 = vmatmul.mubr.bf16.gmra.mrb[8].mxu0 %v4981_v27  ;;  %7438 = vmatpush3.bf16.msra.mxu1 %v8012_v46 }
 0x198   : > { %7407 = vmatpush3.bf16.msra.mxu0 %v8012_v46  ;;  %7431 = vmatprep.subr.bf16.mxu1 %v8013_v15 }
 0x199   : > { %7408 = vmatprep.subr.bf16.mxu0 %v8013_v15  ;;  %7414 = vmatprep.mubr.bf16.mxu0 %v5152_v0  ;;  %v5376_v25 = vpop.permute.xlu0 %5375 }
 0x19a   : > { %7418 = vmatprep.mubr.bf16.mxu1 %v5156_v43 }
 0x19b   : > { %7439 = vmatpush3.bf16.msra.mxu1 %v8013_v15 }
 0x19c   : > { %7409 = vmatpush3.bf16.msra.mxu0 %v8013_v15  ;;  %7432 = vmatprep.subr.bf16.mxu1 %v8014_v29 }
 0x19d   : > { %7410 = vmatprep.subr.bf16.mxu0 %v8014_v29  ;;  %v5386_v15 = vpop.permute.xlu0 %5385 }
 0x19f   : > { %7440 = vmatpush3.bf16.msra.mxu1 %v8014_v29 }
 0x1a0   : > { %7411 = vmatpush3.bf16.msra.mxu0 %v8014_v29  ;;  %7433 = vmatprep.subr.bf16.mxu1 %v8015_v28 }
 0x1a1   : > { %7412 = vmatprep.subr.bf16.mxu0 %v8015_v28 }
 0x1a3   : > { %7441 = vmatpush3.bf16.msra.mxu1 %v8015_v28 }
 0x1a4   : > { %7413 = vmatpush3.bf16.msra.mxu0 %v8015_v28 }
 0x1a6   : > { %7419 = vmatmul.mubr.bf16.vlgmr.msra.gmra.mrb[12].mxu1 %v5158_v56 }
 0x1a7   : > { %7415 = vmatmul.mubr.bf16.vlgmr.msra.gmra.mrb[0].mxu0 %v5154_v30  ;;  %7422 = vmatprep.mubr.bf16.mxu1 %v9222_v36 }
 0x1ae   : > { %7423 = vmatmul.mubr.bf16.gmra.mrb[16].mxu1 %v5162_v21 }
 0x1b9   : > { %v5371_v9 = vpop.permute.xlu1 %5370 }
 0x1bd   : > { %v5381_v13 = vpop.permute.xlu1 %5380 }
 0x259   : > { %v7052_v31 = vpop.f32.mrb[0].mxu1 }
 0x25a   : > { %v2640_v51 = vpop.f32.mrb[1].mxu1 }
 0x25b   : > { %v7053_v48 = vpop.f32.mrb[2].mxu1 }
 0x25c   : > { %v2643_v3 = vpop.f32.mrb[3].mxu1 }
 0x261   : > { %v7056_v36 = vpop.f32.mrb[4].mxu1 }
 0x262   : > { %v7392_v20 = vpop.f32.mrb[4].mxu0  ;;  %v2656_v7 = vpop.f32.mrb[5].mxu1 }
 0x263   : > { %v7446_v60 = vadd.f32 %v7392_v20, %v7056_v36  ;;  %v5086_v53 = vpop.f32.mrb[5].mxu0  ;;  %v7057_v18 = vpop.f32.mrb[6].mxu1 }
 0x264   : > { %v7448_v58 = vadd.f32 %v5086_v53, %v2656_v7  ;;  %v7393_v5 = vpop.f32.mrb[6].mxu0  ;;  %v2659_v41 = vpop.f32.mrb[7].mxu1 }
 0x265   : > { %v7450_v34 = vadd.f32 %v7393_v5, %v7057_v18  ;;  %v5089_v11 = vpop.f32.mrb[7].mxu0 }
 0x266   : > { %v7452_v47 = vadd.f32 %v5089_v11, %v2659_v41 }
 0x269   : > { %v7060_v6 = vpop.f32.mrb[8].mxu1 }
 0x26a   : > { %v7396_v24 = vpop.f32.mrb[8].mxu0  ;;  %v2672_v49 = vpop.f32.mrb[9].mxu1 }
 0x26b   : > { %v9610_v55 = vadd.f32 %v7396_v24, %v7060_v6  ;;  %v5102_v52 = vpop.f32.mrb[9].mxu0  ;;  %v7061_v50 = vpop.f32.mrb[10].mxu1 }
 0x26c   : > { %v9612_v10 = vadd.f32 %v5102_v52, %v2672_v49  ;;  %v7397_v12 = vpop.f32.mrb[10].mxu0  ;;  %v2675_v40 = vpop.f32.mrb[11].mxu1 }
 0x26d   : > { %v9614_v4 = vadd.f32 %v7397_v12, %v7061_v50  ;;  %v5105_v59 = vpop.f32.mrb[11].mxu0 }
 0x26e   : > { %v9616_v2 = vadd.f32 %v5105_v59, %v2675_v40  ;;  %v5391_v40 = vpop.permute.xlu1 %5390 }
 0x279   : > { %v7420_v22 = vpop.f32.mrb[12].mxu1 }
 0x27a   : > { %v7416_v62 = vpop.f32.mrb[0].mxu0  ;;  %v7447_v38 = vadd.f32 %v7446_v60, %v7420_v22  ;;  %v5267_v39 = vpop.f32.mrb[13].mxu1 }
 0x27b   : > { %v7442_v63 = vadd.f32 %v7416_v62, %v7052_v31  ;;  %v5251_v61 = vpop.f32.mrb[1].mxu0  ;;  %v7449_v35 = vadd.f32 %v7448_v58, %v5267_v39  ;;  %v7421_v42 = vpop.f32.mrb[14].mxu1 }
 0x27c   : > { %v5323_v17 = vadd.f32 %v7447_v38, %v9623_v14  ;;  %v7443_v16 = vadd.f32 %v5251_v61, %v2640_v51  ;;  %v7417_v44 = vpop.f32.mrb[2].mxu0  ;;  %v7451_v57 = vadd.f32 %v7450_v34, %v7421_v42  ;;  %v5270_v8 = vpop.f32.mrb[15].mxu1 }
 0x27d   : > { %v5319_v1 = vadd.f32 %v7442_v63, %v9623_v14  ;;  %v5321_v46 = vadd.f32 %v7449_v35, %v9623_v14  ;;  %v7444_v23 = vadd.f32 %v7417_v44, %v7053_v48  ;;  %v5254_v37 = vpop.f32.mrb[3].mxu0  ;;  %v7453_v45 = vadd.f32 %v7452_v47, %v5270_v8 }
 0x27e   : > { %v5335_v19 = vmax.f32 %v5323_v17, 0.0  ;;  %v5317_v33 = vadd.f32 %v7443_v16, %v9623_v14  ;;  %v7445_v27 = vadd.f32 %v5254_v37, %v2643_v3  ;;  %v5324_v28 = vadd.f32 %v7451_v57, %v9623_v14 }
 0x27f   : > { %v5331_v0 = vmax.f32 %v5319_v1, 0.0  ;;  %v5333_v43 = vmax.f32 %v5321_v46, 0.0  ;;  %v5320_v29 = vadd.f32 %v7444_v23, %v9623_v14  ;;  %v5322_v51 = vadd.f32 %v7453_v45, %v9623_v14 }
 0x280   : > { %v9631_v56 = vmul.f32 %v5386_v15, %v5335_v19  ;;  %v5329_v30 = vmax.f32 %v5317_v33, 0.0  ;;  %v5336_v18 = vmax.f32 %v5324_v28, 0.0  ;;  %v5318_v11 = vadd.f32 %v7445_v27, %v9623_v14 }
 0x281   : > { %v5415_v21 = vmul.f32 %v5366_v26, %v5331_v0  ;;  %v5417_v31 = vmul.f32 %v5376_v25, %v5333_v43  ;;  %v9634_v48 = vpop.f32.mrb[16].mxu1  ;;  %v5332_v53 = vmax.f32 %v5320_v29, 0.0  ;;  %v5334_v24 = vmax.f32 %v5322_v51, 0.0  ;;  %v5396_v51 = vpop.permute.xlu0 %5395 }
 0x282   : > { %v6370_v3 = vpack.c.bf16 %v9631_v56, %v9631_v56  ;;  %v5413_v36 = vmul.f32 %v5356_v54, %v5329_v30  ;;  %v9638_v20 = vpop.f32.mrb[17].mxu1  ;;  %v9649_v49 = vmul.f32 %v9631_v56, %v9631_v56  ;;  %v9657_v62 = vmul.f32 %v5391_v40, %v5336_v18 }
 0x283   : > { %v6366_v7 = vpack.c.bf16 %v5415_v21, %v5415_v21  ;;  %v6368_v60 = vpack.c.bf16 %v5417_v31, %v5417_v31  ;;  %v9640_v58 = vpop.f32.mrb[18].mxu1  ;;  %v5558_v5 = vmul.f32 %v5415_v21, %v5415_v21  ;;  %v5529_v12 = vsel %vm5525_vm11, %v5415_v21, 0.0 }
 0x284   : > { %v9642_v41 = vrot.slane %v6370_v3, 7  ;;  %v6364_v34 = vpack.c.bf16 %v5413_v36, %v5413_v36  ;;  %v9645_v47 = vpop.f32.mrb[19].mxu1  ;;  %v5556_v50 = vmul.f32 %v5413_v36, %v5413_v36  ;;  %v5526_v54 = vsel %vm5525_vm11, %v5413_v36, 0.0 }
 0x285   : > { %v5469_v6 = vrot.slane %v6366_v7, 7  ;;  %v5475_v59 = vrot.slane %v6368_v60, 7  ;;  %v5416_v26 = vmul.f32 %v5371_v9, %v5332_v53  ;;  %v5571_v25 = vsel %vm5525_vm11, %v5558_v5, 0.0 }
 0x286   : > { %v5464_v52 = vrot.slane %v6364_v34, 7  ;;  %v5483_v22 = vrot.slane %v9642_v41, 4  ;;  %v5330_v38 = vmax.f32 %v5318_v11, 0.0  ;;  %v5533_v63 = vsel %vm5525_vm11, %v5417_v31, 0.0  ;;  %v5401_v34 = vpop.permute.xlu1 %5400 }
 0x287   : > { %v5471_v39 = vrot.slane %v5469_v6, 4  ;;  %v6367_v61 = vpack.c.bf16 %v5416_v26, %v5416_v26  ;;  %v5418_v35 = vmul.f32 %v5381_v13, %v5334_v24  ;;  %v5568_v42 = vsel %vm5525_vm11, %v5556_v50, 0.0 }
 0x288   : > { %5512 = vst.msk [vmem:[%s9241_s9 + $0xc] sm:$0xe] %vm241_vm9, %v5464_v52  ;;  %v5560_v17 = vmul.f32 %v5417_v31, %v5417_v31  ;;  %v6371_v16 = vpack.c.bf16 %v9657_v62, %v9657_v62  ;;  %v5414_v44 = vmul.f32 %v9618_v32, %v5330_v38  ;;  %v5477_v57 = vrot.slane %v5475_v59, 4 }
 0x289   : > { %v5472_v8 = vrot.slane %v6367_v61, 7  ;;  %v5559_v1 = vmul.f32 %v5416_v26, %v5416_v26  ;;  %v6369_v46 = vpack.c.bf16 %v5418_v35, %v5418_v35  ;;  %v5465_v23 = vrot.slane %v5464_v52, 4 }
 0x28a   : > { %v9670_v37 = vrot.slane %v6371_v16, 7  ;;  %v6365_v45 = vpack.c.bf16 %v5414_v44, %v5414_v44  ;;  %v5527_v19 = vsel %vm5525_vm11, %v5414_v44, 0.0  ;;  %v5557_v0 = vmul.f32 %v5414_v44, %v5414_v44 }
 0x28b   : > { %v5473_v33 = vsel %vm9663_vm14, %v5471_v39, %v5472_v8  ;;  %v5474_v27 = vrot.slane %v5472_v8, 4  ;;  %v5528_v15 = vadd.f32 %v5527_v19, %v5526_v54  ;;  %v5531_v32 = vsel %vm5525_vm11, %v5416_v26, 0.0 }
 0x28c   : > { %5515 = vst.msk [vmem:[%s9241_s9 + $0x18] sm:$0xf] %vm235_vm8, %v5473_v33  ;;  %v5485_v43 = vsel %vm9663_vm14, %v5483_v22, %v9670_v37  ;;  %v5466_v29 = vrot.slane %v6365_v45, 7  ;;  %v5478_v28 = vrot.slane %v6369_v46, 7  ;;  %v5573_v13 = vsel %vm5525_vm11, %v5559_v1, 0.0 }
 0x28d   : > { %v5476_v30 = vsel %vm9663_vm14, %v5474_v27, %v5475_v59  ;;  %5519 = vst.msk [vmem:[%s9241_s9 + $0x28] sm:$0xf] %vm235_vm8, %v5485_v43  ;;  %v5530_v21 = vadd.f32 %v5529_v12, %v5528_v15  ;;  %v5569_v31 = vsel %vm5525_vm11, %v5557_v0, 0.0  ;;  %v5561_v5 = vmul.f32 %v5418_v35, %v5418_v35 }
 0x28e   : > { %5516 = vst.msk [vmem:[%s9241_s9 + $0x1c] sm:$0xf] %vm235_vm8, %v5476_v30  ;;  %v5467_v3 = vsel %vm9663_vm14, %v5465_v23, %v5466_v29  ;;  %v5468_v36 = vrot.slane %v5466_v29, 4  ;;  %v5570_v7 = vadd.f32 %v5569_v31, %v5568_v42  ;;  %v5479_v60 = vsel %vm9663_vm14, %v5477_v57, %v5478_v28  ;;  %v5411_v42 = vpop.permute.xlu1 %5410 }
 0x28f   : > { %5513 = vst.msk [vmem:[%s9241_s9 + $0x10] sm:$0xf] %vm235_vm8, %v5467_v3  ;;  %v5480_v53 = vrot.slane %v5478_v28, 4  ;;  %5517 = vst.msk [vmem:[%s9241_s9 + $0x20] sm:$0xf] %vm235_vm8, %v5479_v60  ;;  %v5532_v18 = vadd.f32 %v5531_v32, %v5530_v21  ;;  %v7455_v11 = vadd.f32 %v9610_v55, %v9634_v48  ;;  %v7457_v50 = vadd.f32 %v9612_v10, %v9638_v20 }
 0x290   : > { %v5470_v24 = vsel %vm9663_vm14, %v5468_v36, %v5469_v6  ;;  %v5572_v52 = vadd.f32 %v5571_v25, %v5570_v7  ;;  %v7459_v12 = vadd.f32 %v9614_v4, %v9640_v58  ;;  %v7461_v55 = vadd.f32 %v9616_v2, %v9645_v47  ;;  %v5406_v2 = vpop.permute.xlu0 %5405 }
 0x291   : > { %5514 = vst.msk [vmem:[%s9241_s9 + $0x14] sm:$0xf] %vm235_vm8, %v5470_v24  ;;  %v5482_v40 = vsel %vm9663_vm14, %v5480_v53, %v9642_v41  ;;  %v5534_v54 = vadd.f32 %v5533_v63, %v5532_v18  ;;  %v5327_v59 = vadd.f32 %v7455_v11, %v9623_v14  ;;  %v5535_v48 = vsel %vm5525_vm11, %v5418_v35, 0.0 }
 0x292   : > { %5518 = vst.msk [vmem:[%s9241_s9 + $0x24] sm:$0xf] %vm235_vm8, %v5482_v40  ;;  %v5574_v10 = vadd.f32 %v5573_v13, %v5572_v52  ;;  %v5325_v20 = vadd.f32 %v7457_v50, %v9623_v14  ;;  %v5328_v4 = vadd.f32 %v7459_v12, %v9623_v14  ;;  %v5575_v58 = vsel %vm5525_vm11, %v5560_v17, 0.0 }
 0x293   : > { %v5536_v6 = vadd.f32 %v5535_v48, %v5534_v54  ;;  %v5339_v26 = vmax.f32 %v5327_v59, 0.0  ;;  %v5326_v41 = vadd.f32 %v7461_v55, %v9623_v14  ;;  %v5537_v25 = vsel %vm5525_vm11, %v9631_v56, 0.0 }
 0x294   : > { %v5576_v22 = vadd.f32 %v5575_v58, %v5574_v10  ;;  %v5337_v47 = vmax.f32 %v5325_v20, 0.0  ;;  %v5340_v38 = vmax.f32 %v5328_v4, 0.0  ;;  %v5563_v39 = vmul.f32 %v9657_v62, %v9657_v62 }
 0x295   : > { %v5538_v63 = vadd.f32 %v5537_v25, %v5536_v6  ;;  %v5577_v61 = vsel %vm5525_vm11, %v5561_v5, 0.0  ;;  %v5423_v35 = vmul.f32 %v5406_v2, %v5339_v26  ;;  %v5539_v17 = vsel %vm5525_vm11, %v9657_v62, 0.0 }
 0x296   : > { %v5578_v16 = vadd.f32 %v5577_v61, %v5576_v22  ;;  %v5421_v14 = vmul.f32 %v5396_v51, %v5337_v47  ;;  %v5424_v44 = vmul.f32 %v5411_v42, %v5340_v38  ;;  %v5579_v56 = vsel %vm5525_vm11, %v9649_v49, 0.0 }
 0x297   : > { %v6374_v57 = vpack.c.bf16 %v5423_v35, %v5423_v35  ;;  %v5540_v8 = vadd.f32 %v5539_v17, %v5538_v63  ;;  %v5338_v1 = vmax.f32 %v5326_v41, 0.0  ;;  %v5581_v33 = vsel %vm5525_vm11, %v5563_v39, 0.0 }
 0x298   : > { %v5580_v46 = vadd.f32 %v5579_v56, %v5578_v16  ;;  %v6372_v23 = vpack.c.bf16 %v5421_v14, %v5421_v14  ;;  %v5541_v45 = vsel %vm5525_vm11, %v5421_v14, 0.0  ;;  %v5564_v19 = vmul.f32 %v5421_v14, %v5421_v14 }
 0x299   : > { %v5493_v27 = vrot.slane %v6374_v57, 7  ;;  %v5542_v15 = vadd.f32 %v5541_v45, %v5540_v8  ;;  %v6375_v62 = vpack.c.bf16 %v5424_v44, %v5424_v44  ;;  %v5486_v0 = vrot.slane %v9670_v37, 4 }
 0x29a   : > { %v5487_v32 = vrot.slane %v6372_v23, 7  ;;  %v5582_v43 = vadd.f32 %v5581_v33, %v5580_v46  ;;  %v5583_v29 = vsel %vm5525_vm11, %v5564_v19, 0.0  ;;  %v5422_v30 = vmul.f32 %v5401_v34, %v5338_v1 }
 0x29b   : > { %v5495_v49 = vrot.slane %v5493_v27, 4  ;;  %v5496_v28 = vrot.slane %v6375_v62, 7  ;;  %v5566_v7 = vmul.f32 %v5423_v35, %v5423_v35  ;;  %v5545_v18 = vsel %vm5525_vm11, %v5423_v35, 0.0 }
 0x29c   : > { %v5488_v13 = vsel %vm9663_vm14, %v5486_v0, %v5487_v32  ;;  %v5489_v21 = vrot.slane %v5487_v32, 4  ;;  %v5584_v31 = vadd.f32 %v5583_v29, %v5582_v43  ;;  %v6373_v3 = vpack.c.bf16 %v5422_v30, %v5422_v30 }
 0x29d   : > { %5520 = vst.msk [vmem:[%s9241_s9 + $0x2c] sm:$0xf] %vm235_vm8, %v5488_v13  ;;  %v5497_v51 = vsel %vm9663_vm14, %v5495_v49, %v5496_v28  ;;  %v5498_v37 = vrot.slane %v5496_v28, 4  ;;  %v5543_v36 = vsel %vm5525_vm11, %v5422_v30, 0.0  ;;  %v5565_v53 = vmul.f32 %v5422_v30, %v5422_v30 }
 0x29e   : > { %5523 = vst.msk [vmem:[%s9241_s9 + $0x38] sm:$0xf] %vm235_vm8, %v5497_v51  ;;  %v5544_v60 = vadd.f32 %v5543_v36, %v5542_v15  ;;  %v5490_v5 = vrot.slane %v6373_v3, 7  ;;  %v5567_v34 = vmul.f32 %v5424_v44, %v5424_v44  ;;  %v5547_v52 = vsel %vm5525_vm11, %v5424_v44, 0.0 }
 0x29f   : > { %5524 = vst.msk [vmem:[%s9241_s9 + $0x3c] sm:$0x1] %vm239_vm10, %v5498_v37  ;;  %v5585_v24 = vsel %vm5525_vm11, %v5565_v53, 0.0  ;;  %v5587_v54 = vsel %vm5525_vm11, %v5566_v7, 0.0 }
 0x2a0   : > { %v5546_v11 = vadd.f32 %v5545_v18, %v5544_v60  ;;  %v5491_v50 = vsel %vm9663_vm14, %v5489_v21, %v5490_v5  ;;  %v5492_v12 = vrot.slane %v5490_v5, 4  ;;  %v5586_v40 = vadd.f32 %v5585_v24, %v5584_v31 }
 0x2a1   : > { %5521 = vst.msk [vmem:[%s9241_s9 + $0x30] sm:$0xf] %vm235_vm8, %v5491_v50  ;;  %v5589_v10 = vsel %vm5525_vm11, %v5567_v34, 0.0 }
 0x2a2   : > { %v5548_v59 = vadd.f32 %v5547_v52, %v5546_v11  ;;  %v5494_v55 = vsel %vm9663_vm14, %v5492_v12, %v5493_v27  ;;  %v5588_v48 = vadd.f32 %v5587_v54, %v5586_v40 }
 0x2a3   : > { %5522 = vst.msk [vmem:[%s9241_s9 + $0x34] sm:$0xf] %vm235_vm8, %v5494_v55  ;;  %s233_s9 = scalar_lea.vmem %s9770_s5, %s9817_s19 }
 0x2a4   : > { %v5590_v20 = vadd.f32 %v5589_v10, %v5588_v48  ;;  %v5549_v22 = vrot.slane %v5548_v59, 4 }
 0x2a6   : > { %v5591_v4 = vrot.slane %v5590_v20, 4  ;;  %v5550_v2 = vadd.f32 %v5549_v22, %v5548_v59 }
 0x2a8   : > { %v5592_v58 = vadd.f32 %v5591_v4, %v5590_v20  ;;  %v5551_v47 = vrot.slane %v5550_v2, 2 }
 0x2aa   : > { %v5593_v6 = vrot.slane %v5592_v58, 2  ;;  %v5552_v9 = vadd.f32 %v5551_v47, %v5550_v2 }
 0x2ac   : > { %v5594_v26 = vadd.f32 %v5593_v6, %v5592_v58  ;;  %v5553_v38 = vrot.slane %v5552_v9, 1 }
 0x2ae   : > { %v5595_v41 = vrot.slane %v5594_v26, 1  ;;  %v5554_v39 = vadd.f32 %v5553_v38, %v5552_v9 }
 0x2b0   : > { %v5596_v25 = vadd.f32 %v5595_v41, %v5594_v26 }
 0x2b2   : > { %5599 = vrot.lane.b32.xlu0 %v5596_v25, %s8046_s29 }
 0x324   : > { %v5600_v63 = vpop.permute.xlu0 %5599 }
 0x325   : > { %v5602_v61 = vsel %vm5525_vm11, %v5554_v39, %v5600_v63 }
 0x326   : > { %5603 = vst [vmem:[%s233_s9] sm:$0x1] %v5602_v61 }
 0x327 PF: > { %s16_s18 = sadd.s32 1, %s8043_s18  }
 0x328   : > { %p13_p4 = scmp.ge.s32.totalorder %s16_s18, 4  }
 0x32a   :  { %15 = sbr.rel (!%p13_p4) target bundleno = 1 (0x1), region = 102 }

// kernel: discriminator_forward.3
= control target key start
LH: loop header
LB: loop body
LE: loop exit
PB: predicated region body
PF: predicated region fallthrough
CT: control target
= control target key end

     0   :  { %s6556_s9 = smov 0   ;;  %s7887_s0 = inlined_call_operand.vmem [shape: bf16[2,148,64], index: 0, kind: input, shape index: {}]   ;;  %s7888_s1 = inlined_call_operand.vmem [shape: bf16[25,64,8], index: 1, kind: input, shape index: {}]   ;;  %s7889_s2 = inlined_call_operand.vmem [shape: f32[2,96,8], index: 2, kind: output, shape index: {}]  }
   0x1 LB: > { %s4771_s10 = sadd.s32 4294967295, %s6539_s9   ;;  %p4775_p0 = scmp.ge.s32.totalorder %s6539_s9, 1  ;;  %s6539_s9 = sphi %s6556_s9, %s12_s9  }
   0x2   : > { %p112_p1 = scmp.lt.s32.totalorder %s6539_s9, 3 }
   0x4   : > { %p113_p2 = pnand %p4775_p0, %p112_p1 }
   0x5   : > { %v6352_v0 = vld [vmem:[%s7888_s1 + $0x20] sm:$0xff] (!%p113_p2)   ;;  %p134_p3 = scmp.lt.s32.totalorder (!%p113_p2), %s4771_s10, 1  ;;  %v6354_v2 = vld [vmem:[%s7888_s1 + $0x28] sm:$0xff] (!%p113_p2)   ;;  %v6356_v4 = vld [vmem:[%s7888_s1 + $0x30] sm:$0xff] (!%p113_p2)   ;;  %vm285_vm0 = vcmask (!%p113_p2), 523264   ;;  %vm515_vm2 = vcmask (!%p113_p2), 1046528  }
   0x6   : > { %116 = sbr.rel (%p113_p2) target bundleno = 541 (0x21d), region = 28  ;;  %v6353_v1 = vld [vmem:[%s7888_s1 + $0x180] sm:$0xff] (!%p113_p2)   ;;  %5546 = vmatprep.subr.bf16.mxu1 (!%p113_p2), %v6352_v0  ;;  %v6355_v3 = vld [vmem:[%s7888_s1 + $0x188] sm:$0xff] (!%p113_p2)   ;;  %v6357_v5 = vld [vmem:[%s7888_s1 + $0x190] sm:$0xff] (!%p113_p2)   ;;  %vm208_vm1 = vsmask.f32 (!%p113_p2), 7424 }
   0x7   : > { %5786 = vmatprep.subr.bf16.mxu0 (!%p113_p2), %v6353_v1  ;;  %5547 = vmatpush3.bf16.msra.mxu1 (!%p113_p2), %v6352_v0  ;;  %v6358_v6 = vld [vmem:[%s7888_s1 + $0x38] sm:$0xff] (!%p113_p2)   ;;  %v6366_v30 = vld [vmem:[%s7888_s1 + $0x1a0] sm:$0xff] (!%p113_p2)   ;;  %v6368_v35 = vld [vmem:[%s7888_s1 + $0x1a8] sm:$0xff] (!%p113_p2)   ;;  %vm677_vm3 = vsmask.f32 (!%p113_p2), 6400  ;;  %vm863_vm4 = vcmask (!%p113_p2), 1045504  }
   0x8   : > { %5787 = vmatpush3.bf16.msra.mxu0 (!%p113_p2), %v6353_v1  ;;  %5548 = vmatprep.subr.bf16.mxu1 (!%p113_p2), %v6354_v2  ;;  %v6359_v7 = vld [vmem:[%s7888_s1 + $0x198] sm:$0xff] (!%p113_p2)   ;;  %v6367_v34 = vld [vmem:[%s7888_s1] sm:$0xff] (!%p113_p2)   ;;  %v6373_v55 = vld [vmem:[%s7888_s1 + $0x1b0] sm:$0xff] (!%p113_p2)   ;;  %vm1228_vm5 = vsmask.f32 (!%p113_p2), 5376  ;;  %vm1439_vm6 = vcmask (!%p113_p2), 1044480  }
   0x9   : > { %5788 = vmatprep.subr.bf16.mxu0 (!%p113_p2), %v6355_v3  ;;  %v6374_v59 = vld [vmem:[%s7888_s1 + $0x8] sm:$0xff] (!%p113_p2)   ;;  %v6375_v61 = vld [vmem:[%s7888_s1 + $0x1b8] sm:$0xff] (!%p113_p2)   ;;  %vm1601_vm7 = vsmask.f32 (!%p113_p2), 4352  ;;  %vm4703_vm8 = vcmask (!%p113_p2), 64512  }
   0xb   : > { %5549 = vmatpush3.bf16.msra.mxu1 (!%p113_p2), %v6354_v2 }
   0xc   : > { %5789 = vmatpush3.bf16.msra.mxu0 (!%p113_p2), %v6355_v3  ;;  %5550 = vmatprep.subr.bf16.mxu1 (!%p113_p2), %v6356_v4  ;;  %v6378_v3 = vld [vmem:[%s7888_s1 + $0x10] sm:$0xff] (!%p113_p2)  }
   0xd   : > { %s7937_s10 = smov (!%p134_p3, %s4771_s10), 1  ;;  %5790 = vmatprep.subr.bf16.mxu0 %v6357_v5 }
   0xe   : > { %s6342_s21 = smul.u32 76, %s7937_s10 }
   0xf   : > { %5551 = vmatpush3.bf16.msra.mxu1 %v6356_v4 }
  0x10   : > { %s6591_s28 = scalar_lea.vmem %s7887_s0, %s6342_s21  ;;  %5791 = vmatpush3.bf16.msra.mxu0 %v6357_v5  ;;  %5552 = vmatprep.subr.bf16.mxu1 %v6358_v6 }
  0x11   : > { %v145_v8 = vld [vmem:[%s6591_s28] sm:$0xf]  ;;  %v6598_v9 = vld [vmem:[%s6591_s28 + $0x4] sm:$0xf]  ;;  %v6604_v11 = vld [vmem:[%s6591_s28 + $0x8] sm:$0xff]   ;;  %5792 = vmatprep.subr.bf16.mxu0 %v6359_v7 }
  0x12   : > { %v6601_v10 = vcombine.low %v145_v8, %v6598_v9  ;;  %v6607_v12 = vld [vmem:[%s6591_s28 + $0x14] sm:$0xff]   ;;  %v6610_v13 = vld [vmem:[%s6591_s28 + $0x10] sm:$0xf]  ;;  %v217_v16 = vshll.u32 %v6604_v11, 16  ;;  %v221_v17 = vshrl.u32 %v6604_v11, 16  ;;  %v6627_v24 = vld [vmem:[%s6591_s28 + $0x1c] sm:$0xff]  }
  0x13   : > { %v2352_v18 = vld [vmem:[%s6591_s28 + $0xc] sm:$0xe]  ;;  %v2366_v20 = vrot.slane %v6607_v12, 1  ;;  %v6622_v21 = vld [vmem:[%s6591_s28 + $0x10] sm:$0xff]   ;;  %5553 = vmatpush3.bf16.msra.mxu1 %v6358_v6  ;;  %v2368_v29 = vrot.slane %v6627_v24, 1  ;;  %v6650_v39 = vld [vmem:[%s6591_s28 + $0x18] sm:$0xff]  }
  0x14   : > { %v210_v14 = vshrl.u32 %v6601_v10, 16  ;;  %v212_v15 = vshll.u32 %v6601_v10, 16  ;;  %v6618_v19 = vcombine.low %v2352_v18, %v6610_v13  ;;  %v219_v23 = vrot.slane %v217_v16, 1  ;;  %5793 = vmatpush3.bf16.msra.mxu0 %v6359_v7  ;;  %5566 = vmatprep.subr.bf16.mxu1 %v6367_v34  ;;  %v6656_v41 = vld [vmem:[%s6591_s28 + $0x24] sm:$0xff]   ;;  %v6666_v49 = vld [vmem:[%s6591_s28 + $0x2c] sm:$0xff]  }
  0x15   : > { %v225_v26 = vshll.u32 %v6622_v21, 16  ;;  %v2369_v37 = vsel %vm515_vm2, %v2366_v20, %v2368_v29  ;;  %5806 = vmatprep.subr.bf16.mxu0 %v6366_v30  ;;  %v229_v40 = vshrl.u32 %v6622_v21, 16  ;;  %v7900_v42 = vshll.u32 %v6607_v12, 16  ;;  %v6661_v46 = vld [vmem:[%s6591_s28 + $0x20] sm:$0xff]   ;;  %v6697_v0 = vld [vmem:[%s6591_s28 + $0x28] sm:$0xff]  }
  0x16   : > { %v214_v22 = vrot.slane %v212_v15, 1  ;;  %v2365_v25 = vrot.slane %v6618_v19, 1  ;;  %v223_v28 = vor.u32 %v221_v17, %v219_v23  ;;  %v233_v44 = vshll.u32 %v6650_v39, 16  ;;  %v6715_v15 = vld [vmem:[%s6591_s28 + $0x30] ss:$0 sps:$4 sm:$0x11]  }
  0x17   : > { %v227_v32 = vrot.slane %v225_v26, 1  ;;  %v691_v33 = vrot.slane %v225_v26, 2  ;;  %v690_v45 = vrot.slane %v229_v40, 1  ;;  %v237_v47 = vshrl.u32 %v6650_v39, 16 }
  0x18   : > { %v215_v27 = vor.u32 %v214_v22, %v210_v14  ;;  %v2367_v31 = vsel %vm515_vm2, %v2365_v25, %v2366_v20  ;;  %v2370_v48 = vrot.slane %v6656_v41, 1  ;;  %v235_v50 = vrot.slane %v233_v44, 1 }
  0x19   : > { %5794 = vmatprep.mubr.msk.bf16.mxu0 %vm285_vm0, %v2367_v31  ;;  %v228_v38 = vsel %vm208_vm1, %v223_v28, %v227_v32  ;;  %v231_v43 = vor.u32 %v229_v40, %v227_v32  ;;  %v241_v51 = vshll.u32 %v6661_v46, 16  ;;  %v6671_v52 = vor.u32 %v691_v33, %v690_v45  ;;  %v6380_v31 = vld [vmem:[%s7888_s1 + $0x18] sm:$0xff]  }
  0x1a   : > { %v220_v36 = vsel %vm208_vm1, %v215_v27, %v219_v23  ;;  %5795 = vmatmul.mubr.msk.bf16.vlgmr.msra.gmra.mrb[0].mxu0 %vm285_vm0, %v2369_v37  ;;  %v2371_v53 = vsel %vm515_vm2, %v2368_v29, %v2370_v48  ;;  %v7890_v54 = vrot.slane %v6666_v49, 1  ;;  %v239_v57 = vor.u32 %v237_v47, %v235_v50 }
  0x1b   : > { %5554 = vmatprep.mubr.msk.bf16.mxu1 %vm285_vm0, %v220_v36  ;;  %5807 = vmatpush3.bf16.msra.mxu0 %v6366_v30  ;;  %v236_v56 = vsel %vm208_vm1, %v231_v43, %v235_v50  ;;  %v243_v58 = vrot.slane %v241_v51, 1  ;;  %v245_v62 = vshrl.u32 %v6661_v46, 16  ;;  %v7899_v1 = vshrl.u32 %v6607_v12, 16  ;;  %v6379_v30 = vld [vmem:[%s7888_s1 + $0x1c0] sm:$0xff]   ;;  %v6381_v43 = vld [vmem:[%s7888_s1 + $0x1c8] sm:$0xff]  }
  0x1c   : > { %5555 = vmatmul.mubr.msk.bf16.vlgmr.msra.gmra.mrb[0].mxu1 %vm285_vm0, %v228_v38  ;;  %5808 = vmatprep.subr.bf16.mxu0 %v6368_v35  ;;  %v2373_v60 = vsel %vm515_vm2, %v2370_v48, %v7890_v54  ;;  %v2527_v2 = vshrl.u32 %v6618_v19, 16  ;;  %v2530_v4 = vshll.u32 %v6618_v19, 16  ;;  %v2535_v5 = vrot.slane %v7900_v42, 2  ;;  %v6382_v50 = vld [vmem:[%s7888_s1 + $0x40] sm:$0xff]  }
  0x1d   : > { %5567 = vmatpush3.bf16.msra.mxu1 %v6367_v34  ;;  %5798 = vmatprep.mubr.msk.bf16.mxu0 %vm285_vm0, %v2371_v53  ;;  %v244_v63 = vsel %vm208_vm1, %v239_v57, %v243_v58  ;;  %v247_v6 = vor.u32 %v245_v62, %v243_v58  ;;  %v249_v7 = vshll.u32 %v6697_v0, 16  ;;  %v2534_v14 = vrot.slane %v7899_v1, 1  ;;  %v7151_v1 = vld [vmem:[%s6591_s28 + $0x1c] sm:$0xf]  ;;  %v7154_v42 = vld [vmem:[%s6591_s28 + $0x20] sm:$0xf] }
  0x1e   : > { %5558 = vmatprep.mubr.msk.bf16.mxu1 %vm285_vm0, %v236_v56  ;;  %5568 = vmatprep.subr.bf16.mxu1 %v6374_v59  ;;  %v2529_v8 = vrot.slane %v2527_v2, 1  ;;  %v2532_v18 = vrot.slane %v2530_v4, 2  ;;  %v253_v19 = vshrl.u32 %v6697_v0, 16  ;;  %v7898_v20 = vshll.u32 %v6627_v24, 16  ;;  %v6383_v2 = vld [vmem:[%s7888_s1 + $0x1d0] sm:$0xff]  }
  0x1f   : > { %5809 = vmatpush3.bf16.msra.mxu0 %v6368_v35  ;;  %v7897_v22 = vshrl.u32 %v6627_v24, 16  ;;  %v251_v23 = vrot.slane %v249_v7, 1  ;;  %v2536_v25 = vor.u32 %v2535_v5, %v2534_v14  ;;  %v257_v26 = vshll.u32 %v6715_v15, 16 }
  0x20   : > { %5810 = vmatprep.subr.bf16.mxu0 %v6373_v55  ;;  %v2533_v27 = vor.u32 %v2532_v18, %v2529_v8  ;;  %v2539_v29 = vrot.slane %v7898_v20, 2  ;;  %v7896_v37 = vshll.u32 %v6656_v41, 16  ;;  %v7894_v38 = vshrl.u32 %v6656_v41, 16  ;;  %v2698_v8 = vld [vmem:[%s6591_s28 + $0xc] sm:$0xc] }
  0x21   : > { %5569 = vmatpush3.bf16.msra.mxu1 %v6374_v59  ;;  %v2538_v28 = vrot.slane %v7897_v22, 1  ;;  %v252_v32 = vsel %vm208_vm1, %v247_v6, %v251_v23  ;;  %v255_v33 = vor.u32 %v253_v19, %v251_v23  ;;  %v259_v34 = vrot.slane %v257_v26, 1 }
  0x22   : > { %5799 = vmatmul.mubr.msk.bf16.gmra.mrb[4].mxu0 %vm285_vm0, %v2373_v60  ;;  %5570 = vmatprep.subr.bf16.mxu1 %v6378_v3  ;;  %v2537_v35 = vsel %vm677_vm3, %v2533_v27, %v2536_v25  ;;  %v7895_v45 = vshll.u32 %v6666_v49, 16  ;;  %v7893_v48 = vshrl.u32 %v6666_v49, 16  ;;  %v2543_v56 = vrot.slane %v7896_v37, 2  ;;  %v6764_v60 = vld [vmem:[%s6591_s28 + $0x34] sm:$0xff]   ;;  %v6386_v27 = vld [vmem:[%s7888_s1 + $0x48] sm:$0xff]  }
  0x23   : > { %5811 = vmatpush3.bf16.msra.mxu0 %v6373_v55  ;;  %v2540_v36 = vor.u32 %v2539_v29, %v2538_v28  ;;  %5814 = vmatprep.mubr.msk.bf16.mxu0 %vm285_vm0, %v2537_v35  ;;  %v260_v40 = vsel %vm208_vm1, %v255_v33, %v259_v34  ;;  %v2542_v55 = vrot.slane %v7894_v38, 1  ;;  %v7892_v4 = vshll.u32 %v6764_v60, 16  ;;  %v6389_v33 = vld [vmem:[%s7888_s1 + $0x50] sm:$0xff]   ;;  %v502_v34 = vld [vmem:[%s6591_s28] sm:$0xe] }
  0x24   : > { %5559 = vmatmul.mubr.msk.bf16.gmra.mrb[4].mxu1 %vm285_vm0, %v244_v63  ;;  %5812 = vmatprep.subr.bf16.mxu0 %v6375_v61  ;;  %v2546_v57 = vrot.slane %v7893_v48, 1  ;;  %v2547_v58 = vrot.slane %v7895_v45, 2  ;;  %v7891_v5 = vshrl.u32 %v6764_v60, 16  ;;  %v5071_v28 = vcombine.low %v2698_v8, %v6610_v13  ;;  %v6394_v8 = vld [vmem:[%s7888_s1 + $0x60] sm:$0xff]  }
  0x25   : > { %5571 = vmatpush3.bf16.msra.mxu1 %v6378_v3  ;;  %5562 = vmatprep.mubr.msk.bf16.mxu1 %vm285_vm0, %v252_v32  ;;  %v2541_v53 = vsel %vm677_vm3, %v2536_v25, %v2540_v36  ;;  %v2544_v59 = vor.u32 %v2543_v56, %v2542_v55  ;;  %v2551_v23 = vrot.slane %v7892_v4, 2  ;;  %v2712_v13 = vrot.slane %v6607_v12, 2  ;;  %v6415_v38 = vld [vmem:[%s7888_s1 + $0x220] sm:$0xff]  }
  0x26   : > { %5572 = vmatprep.subr.bf16.mxu1 %v6380_v31  ;;  %v2548_v63 = vor.u32 %v2547_v58, %v2546_v57  ;;  %v2550_v18 = vrot.slane %v7891_v5, 1  ;;  %v2711_v35 = vrot.slane %v5071_v28, 2  ;;  %v2714_v55 = vrot.slane %v6627_v24, 2  ;;  %v6820_v58 = vld [vmem:[%s6591_s28 + $0x14] sm:$0xf] }
  0x27   : > { %5813 = vmatpush3.bf16.msra.mxu0 %v6375_v61  ;;  %v6767_v61 = vld [vmem:[%s6591_s28 + $0x3c] ss:$0 sps:$4 sm:$0x33]   ;;  %v2545_v3 = vsel %vm677_vm3, %v2540_v36, %v2544_v59  ;;  %v6390_v36 = vld [vmem:[%s7888_s1 + $0x1e0] sm:$0xff]   ;;  %v517_v57 = vrot.slane %v6604_v11, 1 }
  0x28   : > { %5826 = vmatprep.subr.bf16.mxu0 %v6379_v30  ;;  %v2558_v6 = vshll.u32 %v6767_v61, 16  ;;  %v2549_v14 = vsel %vm677_vm3, %v2544_v59, %v2548_v63  ;;  %v2552_v29 = vor.u32 %v2551_v23, %v2550_v18  ;;  %v6826_v59 = vld [vmem:[%s6591_s28 + $0x18] sm:$0xf]  ;;  %v2715_v18 = vsel %vm863_vm4, %v2712_v13, %v2714_v55 }
  0x29   : > { %5573 = vmatpush3.bf16.msra.mxu1 %v6380_v31 }
  0x2a   : > { %5815 = vmatmul.mubr.msk.bf16.vlgmr.msra.gmra.mrb[0].mxu0 %vm285_vm0, %v2541_v53  ;;  %5586 = vmatprep.subr.bf16.mxu1 %v6382_v50  ;;  %v2560_v26 = vrot.slane %v2558_v6, 2  ;;  %v2553_v31 = vsel %vm677_vm3, %v2548_v63, %v2552_v29  ;;  %v6391_v53 = vld [vmem:[%s7888_s1 + $0x58] sm:$0xff]   ;;  %v2716_v6 = vrot.slane %v6656_v41, 2 }
  0x2b   : > { %5827 = vmatpush3.bf16.msra.mxu0 %v6379_v30  ;;  %5818 = vmatprep.mubr.msk.bf16.mxu0 %vm285_vm0, %v2545_v3  ;;  %v6387_v30 = vld [vmem:[%s7888_s1 + $0x1d8] sm:$0xff]  }
  0x2c   : > { %5563 = vmatmul.mubr.msk.bf16.gmra.mrb[8].mxu1 %vm285_vm0, %v260_v40  ;;  %5828 = vmatprep.subr.bf16.mxu0 %v6381_v43  ;;  %v6807_v40 = vcombine.low %v502_v34, %v6598_v9  ;;  %v6830_v63 = vld [vmem:[%s6591_s28 + $0x1c] sm:$0xf]  ;;  %v2717_v28 = vsel %vm863_vm4, %v2714_v55, %v2716_v6  ;;  %v694_v34 = vrot.slane %v237_v47, 1  ;;  %v2859_v55 = vld [vmem:[%s6591_s28 + $0x10] sm:$0xc] }
  0x2d   : > { %5574 = vmatprep.mubr.msk.bf16.mxu1 %vm285_vm0, %v6601_v10  ;;  %v2555_v10 = vshrl.u32 %v6767_v61, 16  ;;  %v6896_v47 = vld [vmem:[%s6591_s28 + $0x34] sm:$0xf] }
  0x2e   : > { %v516_v56 = vrot.slane %v6807_v40, 1 }
  0x2f   : > { %5829 = vmatpush3.bf16.msra.mxu0 %v6381_v43  ;;  %v2557_v25 = vrot.slane %v2555_v10, 1  ;;  %v687_v10 = vrot.slane %v217_v16, 2  ;;  %v686_v16 = vrot.slane %v221_v17, 1 }
  0x30   : > { %5830 = vmatprep.subr.bf16.mxu0 %v6383_v2  ;;  %v518_v23 = vsel %vm515_vm2, %v516_v56, %v517_v57 }
  0x31   : > { %v2561_v32 = vor.u32 %v2560_v26, %v2557_v25  ;;  %v6848_v25 = vld [vmem:[%s6591_s28 + $0x24] sm:$0xf]  ;;  %v6853_v26 = vld [vmem:[%s6591_s28 + $0x28] sm:$0xf]  ;;  %v6869_v17 = vor.u32 %v687_v10, %v686_v16  ;;  %v6899_v10 = vld [vmem:[%s6591_s28 + $0x38] sm:$0xf] }
  0x32   : > { %5819 = vmatmul.mubr.msk.bf16.gmra.mrb[4].mxu0 %vm285_vm0, %v2549_v14  ;;  %v6425_v16 = vld [vmem:[%s7888_s1 + $0xb0] sm:$0xff]   ;;  %v7179_v14 = vld [vmem:[%s6591_s28 + $0x2c] sm:$0xf] }
  0x33   : > { %5831 = vmatpush3.bf16.msra.mxu0 %v6383_v2  ;;  %5822 = vmatprep.mubr.msk.bf16.mxu0 %vm285_vm0, %v2553_v31  ;;  %v2562_v43 = vsel %vm677_vm3, %v2552_v29, %v2561_v32  ;;  %v6833_v2 = vld [vmem:[%s6591_s28 + $0x20] sm:$0xf]  ;;  %v6860_v29 = vld [vmem:[%s6591_s28 + $0x2c] sm:$0xf]  ;;  %v6891_v56 = vsel %vm677_vm3, %v6869_v17, %v6671_v52  ;;  %v7165_v32 = vld [vmem:[%s6591_s28 + $0x24] sm:$0xf]  ;;  %v7230_v31 = vcombine.low %v7151_v1, %v7154_v42 }
  0x34   : > { %5575 = vmatmul.mubr.msk.bf16.vlgmr.msra.gmra.mrb[0].mxu1 %vm285_vm0, %v6604_v11  ;;  %5832 = vmatprep.subr.bf16.mxu0 %v6387_v30 }
  0x35   : > { %5587 = vmatpush3.bf16.msra.mxu1 %v6382_v50  ;;  %5578 = vmatprep.mubr.msk.bf16.mxu1 %vm285_vm0, %v6622_v21  ;;  %v2713_v50 = vsel %vm863_vm4, %v2711_v35, %v2712_v13  ;;  %v519_v13 = vrot.slane %v6622_v21, 1  ;;  %v695_v35 = vrot.slane %v233_v44, 2  ;;  %v698_v44 = vrot.slane %v245_v62, 1 }
  0x36   : > { %5588 = vmatprep.subr.bf16.mxu1 %v6386_v27 }
  0x37   : > { %5833 = vmatpush3.bf16.msra.mxu0 %v6387_v30  ;;  %v6863_v30 = vld [vmem:[%s6591_s28 + $0x30] sm:$0xf] }
  0x38   : > { %5846 = vmatprep.subr.bf16.mxu0 %v6390_v36 }
  0x39   : > { %5589 = vmatpush3.bf16.msra.mxu1 %v6386_v27  ;;  %v6392_v27 = vld [vmem:[%s7888_s1 + $0x1e8] sm:$0xff]  }
  0x3a   : > { %5590 = vmatprep.subr.bf16.mxu1 %v6389_v33  ;;  %5823 = vmatmul.mubr.msk.bf16.gmra.mrb[8].mxu0 %vm285_vm0, %v2562_v43  ;;  %v6395_v43 = vld [vmem:[%s7888_s1 + $0x1f0] sm:$0xff]  }
  0x3b   : > { %5834 = vmatprep.mubr.msk.bf16.mxu0 %vm285_vm0, %v2713_v50  ;;  %v521_v50 = vrot.slane %v6650_v39, 1 }
  0x3c   : > { %5579 = vmatmul.mubr.msk.bf16.gmra.mrb[4].mxu1 %vm285_vm0, %v6650_v39 }
  0x3d   : > { %5582 = vmatprep.mubr.msk.bf16.mxu1 %vm285_vm0, %v6661_v46  ;;  %5591 = vmatpush3.bf16.msra.mxu1 %v6389_v33  ;;  %v2718_v33 = vrot.slane %v6666_v49, 2 }
  0x3e   : > { %5592 = vmatprep.subr.bf16.mxu1 %v6391_v53 }
  0x41   : > { %5593 = vmatpush3.bf16.msra.mxu1 %v6391_v53  ;;  %v2720_v53 = vrot.slane %v6764_v60, 2 }
  0x42   : > { %5606 = vmatprep.subr.bf16.mxu1 %v6394_v8  ;;  %5835 = vmatmul.mubr.msk.bf16.vlgmr.msra.gmra.mrb[0].mxu0 %vm285_vm0, %v2715_v18  ;;  %v699_v18 = vrot.slane %v241_v51, 2  ;;  %v703_v51 = vrot.slane %v249_v7, 2 }
  0x43   : > { %5847 = vmatpush3.bf16.msra.mxu0 %v6390_v36  ;;  %5838 = vmatprep.mubr.msk.bf16.mxu0 %vm285_vm0, %v2717_v28  ;;  %v696_v36 = vor.u32 %v695_v35, %v694_v34  ;;  %v520_v28 = vsel %vm515_vm2, %v517_v57, %v519_v13  ;;  %v2719_v34 = vsel %vm863_vm4, %v2716_v6, %v2718_v33  ;;  %v6396_v57 = vld [vmem:[%s7888_s1 + $0x68] sm:$0xff]  }
  0x44   : > { %5583 = vmatmul.mubr.msk.bf16.gmra.mrb[8].mxu1 %vm285_vm0, %v6697_v0  ;;  %5848 = vmatprep.subr.bf16.mxu0 %v6392_v27  ;;  %v6914_v35 = vcombine.low %v2859_v55, %v6820_v58  ;;  %v700_v54 = vor.u32 %v699_v18, %v698_v44  ;;  %v2721_v6 = vsel %vm863_vm4, %v2718_v33, %v2720_v53  ;;  %v523_v55 = vrot.slane %v6661_v46, 1 }
  0x45   : > { %5594 = vmatprep.mubr.msk.bf16.mxu1 %vm285_vm0, %v518_v23  ;;  %v702_v23 = vrot.slane %v253_v19, 1  ;;  %v6910_v62 = vsel %vm677_vm3, %v6671_v52, %v696_v36  ;;  %v522_v19 = vsel %vm515_vm2, %v519_v13, %v521_v50  ;;  %v6924_v52 = vcombine.low %v6826_v59, %v6830_v63 }
  0x46   : > { %v6932_v7 = vsel %vm677_vm3, %v696_v36, %v700_v54  ;;  %v2722_v44 = vrot.slane %v6767_v61, 2  ;;  %v525_v18 = vrot.slane %v6697_v0, 1  ;;  %v2914_v33 = vrot.slane %v6914_v35, 2  ;;  %v6400_v36 = vld [vmem:[%s7888_s1 + $0x70] sm:$0xff]  }
  0x47   : > { %5849 = vmatpush3.bf16.msra.mxu0 %v6392_v27  ;;  %v6397_v27 = vld [vmem:[%s7888_s1 + $0x1f8] sm:$0xff]   ;;  %v6934_v13 = vor.u32 %v703_v51, %v702_v23  ;;  %v679_v23 = vshrl.u32 %v6807_v40, 16  ;;  %v2915_v61 = vrot.slane %v6924_v52, 2  ;;  %v3286_v20 = vrot.slane %v6924_v52, 3 }
  0x48   : > { %5850 = vmatprep.subr.bf16.mxu0 %v6395_v43  ;;  %v2723_v51 = vsel %vm863_vm4, %v2720_v53, %v2722_v44  ;;  %v6403_v53 = vld [vmem:[%s7888_s1 + $0x78] sm:$0xff]   ;;  %v869_v44 = vrot.slane %v6650_v39, 2  ;;  %v871_v39 = vrot.slane %v6661_v46, 2  ;;  %v6404_v46 = vld [vmem:[%s7888_s1 + $0x208] sm:$0xff]  }
  0x49   : > { %v681_v5 = vrot.slane %v679_v23, 1 }
  0x4a   : > { %5839 = vmatmul.mubr.msk.bf16.gmra.mrb[4].mxu0 %vm285_vm0, %v2719_v34  ;;  %v524_v34 = vsel %vm515_vm2, %v521_v50, %v523_v55  ;;  %v2916_v50 = vsel %vm863_vm4, %v2914_v33, %v2915_v61 }
  0x4b   : > { %5851 = vmatpush3.bf16.msra.mxu0 %v6395_v43  ;;  %5842 = vmatprep.mubr.msk.bf16.mxu0 %vm285_vm0, %v2721_v6  ;;  %v6402_v43 = vld [vmem:[%s7888_s1 + $0x200] sm:$0xff]   ;;  %v6963_v6 = vcombine.low %v6833_v2, %v6848_v25 }
  0x4c   : > { %5595 = vmatmul.mubr.msk.bf16.vlgmr.msra.gmra.mrb[0].mxu1 %vm285_vm0, %v520_v28  ;;  %v6949_v28 = vsel %vm677_vm3, %v700_v54, %v6934_v13  ;;  %5852 = vmatprep.subr.bf16.mxu0 %v6397_v27  ;;  %v865_v54 = vrot.slane %v6604_v11, 2  ;;  %v6972_v11 = vcombine.low %v6853_v26, %v6860_v29 }
  0x4d   : > { %5607 = vmatpush3.bf16.msra.mxu1 %v6394_v8  ;;  %5598 = vmatprep.mubr.msk.bf16.mxu1 %vm285_vm0, %v522_v19  ;;  %v682_v8 = vshll.u32 %v6807_v40, 16  ;;  %v526_v40 = vsel %vm515_vm2, %v523_v55, %v525_v18  ;;  %v850_v19 = vld [vmem:[%s6591_s28] sm:$0xc]  ;;  %v2917_v33 = vrot.slane %v6963_v6, 2 }
  0x4e   : > { %5608 = vmatprep.subr.bf16.mxu1 %v6396_v57  ;;  %v4859_v48 = vcombine.low %v850_v19, %v6598_v9  ;;  %v527_v9 = vrot.slane %v6715_v15, 1  ;;  %v2919_v15 = vrot.slane %v6972_v11, 2  ;;  %v7007_v19 = vcombine.low %v6863_v30, %v6896_v47 }
  0x4f   : > { %5853 = vmatpush3.bf16.msra.mxu0 %v6397_v27  ;;  %v684_v4 = vrot.slane %v682_v8, 2 }
  0x50   : > { %5866 = vmatprep.subr.bf16.mxu0 %v6402_v43  ;;  %v864_v27 = vrot.slane %v4859_v48, 2  ;;  %v6407_v48 = vld [vmem:[%s7888_s1 + $0x80] sm:$0xff]  }
  0x51   : > { %5609 = vmatpush3.bf16.msra.mxu1 %v6396_v57  ;;  %v867_v57 = vrot.slane %v6622_v21, 2  ;;  %v685_v21 = vor.u32 %v684_v4, %v681_v5  ;;  %v6999_v4 = vsel %vm863_vm4, %v869_v44, %v871_v39  ;;  %v873_v5 = vrot.slane %v6697_v0, 2 }
  0x52   : > { %5610 = vmatprep.subr.bf16.mxu1 %v6400_v36  ;;  %5843 = vmatmul.mubr.msk.bf16.gmra.mrb[8].mxu0 %vm285_vm0, %v2723_v51  ;;  %v6989_v23 = vsel %vm863_vm4, %v864_v27, %v865_v54  ;;  %v2870_v51 = vld [vmem:[%s6591_s28 + $0x3c] sm:$0xf]  ;;  %v3084_v27 = vshrl.u32 %v6924_v52, 16 }
  0x53   : > { %v6980_v55 = vsel %vm863_vm4, %v865_v54, %v867_v57  ;;  %5854 = vmatprep.mubr.msk.bf16.mxu0 %vm285_vm0, %v2916_v50  ;;  %v6993_v8 = vsel %vm863_vm4, %v867_v57, %v869_v44  ;;  %v2921_v54 = vrot.slane %v7007_v19, 2  ;;  %v6408_v50 = vld [vmem:[%s7888_s1 + $0x210] sm:$0xff]   ;;  %v3079_v57 = vshll.u32 %v6914_v35, 16 }
  0x54   : > { %5599 = vmatmul.mubr.msk.bf16.gmra.mrb[4].mxu1 %vm285_vm0, %v524_v34  ;;  %v528_v34 = vsel %vm515_vm2, %v525_v18, %v527_v9  ;;  %v2920_v18 = vsel %vm863_vm4, %v2917_v33, %v2919_v15  ;;  %v3087_v9 = vshll.u32 %v6924_v52, 16  ;;  %v7034_v44 = vld [vmem:[%s6591_s28 + $0x30] ss:$0 sps:$4 sm:$0x33]  }
  0x55   : > { %5602 = vmatprep.mubr.msk.bf16.mxu1 %vm285_vm0, %v526_v40  ;;  %5611 = vmatpush3.bf16.msra.mxu1 %v6400_v36  ;;  %v2918_v36 = vsel %vm863_vm4, %v2915_v61, %v2917_v33  ;;  %v689_v40 = vsel %vm677_vm3, %v685_v21, %v6869_v17  ;;  %v7016_v61 = vsel %vm863_vm4, %v871_v39, %v873_v5  ;;  %v6410_v21 = vld [vmem:[%s6591_s28 + $0x40] ss:$0 sps:$4 sm:$0x33]   ;;  %v6411_v39 = vld [vmem:[%s7888_s1 + $0x88] sm:$0xff]  }
  0x56   : > { %5612 = vmatprep.subr.bf16.mxu1 %v6403_v53  ;;  %v7020_v17 = vcombine.low %v6899_v10, %v2870_v51  ;;  %v2922_v33 = vsel %vm863_vm4, %v2919_v15, %v2921_v54  ;;  %v3081_v51 = vrot.slane %v3079_v57, 3  ;;  %v6412_v15 = vld [vmem:[%s7888_s1 + $0x218] sm:$0xff]   ;;  %v3096_v57 = vshll.u32 %v6963_v6, 16  ;;  %v6439_v52 = vld [vmem:[%s6591_s28 + $0x34] ss:$0 sps:$4 sm:$0x33]  }
  0x59   : > { %5613 = vmatpush3.bf16.msra.mxu1 %v6403_v53  ;;  %v3076_v53 = vshrl.u32 %v6914_v35, 16  ;;  %v3086_v35 = vrot.slane %v3084_v27, 2 }
  0x5a   : > { %5626 = vmatprep.subr.bf16.mxu1 %v6407_v48  ;;  %5855 = vmatmul.mubr.msk.bf16.vlgmr.msra.gmra.mrb[0].mxu0 %vm285_vm0, %v2918_v36  ;;  %v3089_v36 = vrot.slane %v3087_v9, 3 }
  0x5b   : > { %5867 = vmatpush3.bf16.msra.mxu0 %v6402_v43  ;;  %5858 = vmatprep.mubr.msk.bf16.mxu0 %vm285_vm0, %v2920_v18  ;;  %v2923_v43 = vrot.slane %v7020_v17, 2  ;;  %v710_v18 = vshll.u32 %v7034_v44, 16 }
  0x5c   : > { %5603 = vmatmul.mubr.msk.bf16.gmra.mrb[8].mxu1 %vm285_vm0, %v528_v34  ;;  %5868 = vmatprep.subr.bf16.mxu0 %v6404_v46  ;;  %v3078_v34 = vrot.slane %v3076_v53, 2  ;;  %v3093_v53 = vshrl.u32 %v6963_v6, 16 }
  0x5d   : > { %5614 = vmatprep.mubr.msk.bf16.mxu1 %vm285_vm0, %v689_v40  ;;  %v2924_v40 = vsel %vm863_vm4, %v2921_v54, %v2923_v43  ;;  %v6414_v54 = vld [vmem:[%s7888_s1 + $0x90] sm:$0xff]   ;;  %v712_v45 = vrot.slane %v710_v18, 2  ;;  %v7903_v18 = vshll.u32 %v7007_v19, 16 }
  0x5e   : > { %v3095_v37 = vrot.slane %v3093_v53, 2 }
  0x5f   : > { %5869 = vmatpush3.bf16.msra.mxu0 %v6404_v46  ;;  %v707_v46 = vshrl.u32 %v7034_v44, 16 }
  0x60   : > { %5870 = vmatprep.subr.bf16.mxu0 %v6408_v50 }
  0x62   : > { %5859 = vmatmul.mubr.msk.bf16.gmra.mrb[4].mxu0 %vm285_vm0, %v2922_v33  ;;  %v3082_v33 = vor.u32 %v3081_v51, %v3078_v34  ;;  %v3098_v34 = vrot.slane %v3096_v57, 3  ;;  %v6416_v51 = vld [vmem:[%s7888_s1 + $0x98] sm:$0xff]  }
  0x63   : > { %5871 = vmatpush3.bf16.msra.mxu0 %v6408_v50  ;;  %5862 = vmatprep.mubr.msk.bf16.mxu0 %vm285_vm0, %v2924_v40  ;;  %v3102_v50 = vshrl.u32 %v6972_v11, 16 }
  0x64   : > { %5615 = vmatmul.mubr.msk.bf16.vlgmr.msra.gmra.mrb[0].mxu1 %vm285_vm0, %v6891_v56  ;;  %v2925_v56 = vrot.slane %v6410_v21, 2  ;;  %5872 = vmatprep.subr.bf16.mxu0 %v6412_v15  ;;  %v709_v21 = vrot.slane %v707_v46, 1  ;;  %v7904_v46 = vshrl.u32 %v7007_v19, 16 }
  0x65   : > { %5627 = vmatpush3.bf16.msra.mxu1 %v6407_v48  ;;  %5618 = vmatprep.mubr.msk.bf16.mxu1 %vm285_vm0, %v6910_v62  ;;  %v3090_v48 = vor.u32 %v3089_v36, %v3086_v35  ;;  %v7905_v62 = vshll.u32 %v6972_v11, 16 }
  0x66   : > { %5628 = vmatprep.subr.bf16.mxu1 %v6411_v39  ;;  %v2926_v40 = vsel %vm863_vm4, %v2923_v43, %v2925_v56  ;;  %v713_v43 = vor.u32 %v712_v45, %v709_v21  ;;  %v7901_v45 = vshll.u32 %v7020_v17, 16 }
  0x67   : > { %5873 = vmatpush3.bf16.msra.mxu0 %v6412_v15  ;;  %v3091_v35 = vsel %vm1228_vm5, %v3082_v33, %v3090_v48  ;;  %v3107_v36 = vrot.slane %v7905_v62, 3  ;;  %v3099_v15 = vor.u32 %v3098_v34, %v3095_v37  ;;  %v7093_v33 = vld [vmem:[%s6591_s28 + $0x40] ss:$0 sps:$4 sm:$0x77]   ;;  %v3113_v34 = vrot.slane %v7904_v46, 2 }
  0x68   : > { %5886 = vmatprep.subr.bf16.mxu0 %v6415_v38  ;;  %v714_v37 = vsel %vm677_vm3, %v6934_v13, %v713_v43  ;;  %v3132_v13 = vshll.u32 %v7093_v33, 16 }
  0x69   : > { %5629 = vmatpush3.bf16.msra.mxu1 %v6411_v39  ;;  %v3104_v39 = vrot.slane %v3102_v50, 2  ;;  %v3100_v21 = vsel %vm1228_vm5, %v3090_v48, %v3099_v15 }
  0x6a   : > { %5630 = vmatprep.subr.bf16.mxu1 %v6414_v54  ;;  %5863 = vmatmul.mubr.msk.bf16.gmra.mrb[8].mxu0 %vm285_vm0, %v2926_v40  ;;  %v7902_v40 = vshrl.u32 %v7020_v17, 16  ;;  %v3134_v22 = vrot.slane %v3132_v13, 3  ;;  %v6423_v13 = vld [vmem:[%s7888_s1 + $0x238] sm:$0xff]  }
  0x6b   : > { %5874 = vmatprep.mubr.msk.bf16.mxu0 %vm285_vm0, %v3091_v35  ;;  %v3108_v56 = vor.u32 %v3107_v36, %v3104_v39  ;;  %v3116_v35 = vrot.slane %v7903_v18, 3  ;;  %v3129_v36 = vshrl.u32 %v7093_v33, 16 }
  0x6c   : > { %5619 = vmatmul.mubr.msk.bf16.gmra.mrb[4].mxu1 %vm285_vm0, %v6932_v7  ;;  %v6419_v7 = vld [vmem:[%s7888_s1 + $0xa0] sm:$0xff]   ;;  %v3122_v48 = vrot.slane %v7902_v40, 2 }
  0x6d   : > { %5622 = vmatprep.mubr.msk.bf16.mxu1 %vm285_vm0, %v6949_v28  ;;  %5631 = vmatpush3.bf16.msra.mxu1 %v6414_v54  ;;  %v3272_v28 = vld [vmem:[%s6591_s28 + $0x10] sm:$0x8]  ;;  %v6417_v54 = vld [vmem:[%s7888_s1 + $0x228] sm:$0xff]   ;;  %v3109_v39 = vsel %vm1228_vm5, %v3099_v15, %v3108_v56  ;;  %v3117_v15 = vor.u32 %v3116_v35, %v3113_v34 }
  0x6e   : > { %5632 = vmatprep.subr.bf16.mxu1 %v6416_v51  ;;  %v7112_v43 = vcombine.low %v3272_v28, %v6820_v58  ;;  %v6420_v28 = vld [vmem:[%s7888_s1 + $0x230] sm:$0xff]   ;;  %v6422_v34 = vld [vmem:[%s7888_s1 + $0xa8] sm:$0xff]  }
  0x6f   : > { %v7135_v35 = vld [vmem:[%s6591_s28 + $0xc] sm:$0xf] }
  0x71   : > { %5633 = vmatpush3.bf16.msra.mxu1 %v6416_v51  ;;  %v3125_v51 = vrot.slane %v7901_v45, 3 }
  0x72   : > { %5646 = vmatprep.subr.bf16.mxu1 %v6419_v7  ;;  %5875 = vmatmul.mubr.msk.bf16.vlgmr.msra.gmra.mrb[0].mxu0 %vm285_vm0, %v3100_v21  ;;  %v3285_v21 = vrot.slane %v7112_v43, 3 }
  0x73   : > { %5887 = vmatpush3.bf16.msra.mxu0 %v6415_v38  ;;  %5878 = vmatprep.mubr.msk.bf16.mxu0 %vm285_vm0, %v3109_v39  ;;  %v7129_v38 = vld [vmem:[%s6591_s28 + $0x8] sm:$0xf]  ;;  %v7138_v39 = vld [vmem:[%s6591_s28 + $0x10] sm:$0xf] }
  0x74   : > { %5623 = vmatmul.mubr.msk.bf16.gmra.mrb[8].mxu1 %vm285_vm0, %v714_v37  ;;  %5888 = vmatprep.subr.bf16.mxu0 %v6417_v54  ;;  %v3131_v37 = vrot.slane %v3129_v36, 2  ;;  %v3118_v36 = vsel %vm1228_vm5, %v3108_v56, %v3117_v15 }
  0x75   : > { %5634 = vmatprep.mubr.msk.bf16.mxu1 %vm285_vm0, %v6989_v23  ;;  %v3126_v23 = vor.u32 %v3125_v51, %v3122_v48  ;;  %v7145_v48 = vld [vmem:[%s6591_s28 + $0x14] sm:$0xf]  ;;  %v7148_v51 = vld [vmem:[%s6591_s28 + $0x18] sm:$0xf] }
  0x77   : > { %5889 = vmatpush3.bf16.msra.mxu0 %v6417_v54  ;;  %v3127_v56 = vsel %vm1228_vm5, %v3117_v15, %v3126_v23  ;;  %v6426_v54 = vld [vmem:[%s7888_s1 + $0x240] sm:$0xff]   ;;  %v3135_v15 = vor.u32 %v3134_v22, %v3131_v37  ;;  %v3287_v37 = vsel %vm1439_vm6, %v3285_v21, %v3286_v20 }
  0x78   : > { %5890 = vmatprep.subr.bf16.mxu0 %v6420_v28 }
  0x79   : > { %v3136_v22 = vsel %vm1228_vm5, %v3126_v23, %v3135_v15  ;;  %v875_v23 = vrot.slane %v7034_v44, 2  ;;  %v6432_v15 = vld [vmem:[%s7888_s1 + $0xc0] sm:$0xff]  }
  0x7a   : > { %5879 = vmatmul.mubr.msk.bf16.gmra.mrb[4].mxu0 %vm285_vm0, %v3118_v36  ;;  %v6436_v36 = vld [vmem:[%s7888_s1 + $0xc8] sm:$0xff]  }
  0x7b   : > { %5891 = vmatpush3.bf16.msra.mxu0 %v6420_v28  ;;  %5882 = vmatprep.mubr.msk.bf16.mxu0 %vm285_vm0, %v3127_v56  ;;  %v7195_v28 = vcombine.low %v7135_v35, %v7138_v39  ;;  %v6427_v56 = vld [vmem:[%s7888_s1 + $0xb8] sm:$0xff]  }
  0x7c   : > { %5635 = vmatmul.mubr.msk.bf16.vlgmr.msra.gmra.mrb[0].mxu1 %vm285_vm0, %v6980_v55  ;;  %v7174_v55 = vld [vmem:[%s6591_s28 + $0x28] sm:$0xf]  ;;  %5892 = vmatprep.subr.bf16.mxu0 %v6423_v13 }
  0x7d   : > { %5647 = vmatpush3.bf16.msra.mxu1 %v6419_v7  ;;  %5638 = vmatprep.mubr.msk.bf16.mxu1 %vm285_vm0, %v6993_v8  ;;  %v1012_v7 = vld [vmem:[%s6591_s28 + $0x4] sm:$0xc] }
  0x7e   : > { %5648 = vmatprep.subr.bf16.mxu1 %v6422_v34  ;;  %v7191_v8 = vcombine.low %v1012_v7, %v7129_v38 }
  0x7f   : > { %5893 = vmatpush3.bf16.msra.mxu0 %v6423_v13  ;;  %v1068_v13 = vrot.slane %v7195_v28, 2 }
  0x80   : > { %5906 = vmatprep.subr.bf16.mxu0 %v6426_v54  ;;  %v1067_v21 = vrot.slane %v7191_v8, 2  ;;  %v1230_v62 = vshrl.u32 %v7191_v8, 16 }
  0x81   : > { %5649 = vmatpush3.bf16.msra.mxu1 %v6422_v34  ;;  %v3288_v34 = vrot.slane %v6963_v6, 3  ;;  %v6442_v6 = vld [vmem:[%s7888_s1 + $0xd8] sm:$0xff]  }
  0x82   : > { %5650 = vmatprep.subr.bf16.mxu1 %v6425_v16  ;;  %5883 = vmatmul.mubr.msk.bf16.gmra.mrb[8].mxu0 %vm285_vm0, %v3136_v22  ;;  %v1069_v7 = vsel %vm863_vm4, %v1067_v21, %v1068_v13  ;;  %v6428_v22 = vld [vmem:[%s7888_s1 + $0x248] sm:$0xff]   ;;  %v1072_v21 = vrot.slane %v7230_v31, 2 }
  0x83   : > { %5894 = vmatprep.mubr.msk.bf16.mxu0 %vm285_vm0, %v3287_v37  ;;  %v3289_v44 = vsel %vm1439_vm6, %v3286_v20, %v3288_v34  ;;  %v7237_v20 = vld [vmem:[%s6591_s28 + $0x30] sm:$0xf] }
  0x84   : > { %5639 = vmatmul.mubr.msk.bf16.gmra.mrb[4].mxu1 %vm285_vm0, %v6999_v4  ;;  %v3290_v4 = vrot.slane %v6972_v11, 3 }
  0x85   : > { %5642 = vmatprep.mubr.msk.bf16.mxu1 %vm285_vm0, %v7016_v61  ;;  %5651 = vmatpush3.bf16.msra.mxu1 %v6425_v16  ;;  %v7217_v61 = vcombine.low %v7145_v48, %v7148_v51  ;;  %v876_v16 = vsel %vm863_vm4, %v873_v5, %v875_v23  ;;  %v3292_v5 = vrot.slane %v7007_v19, 3  ;;  %v3447_v23 = vshrl.u32 %v7112_v43, 16 }
  0x86   : > { %5652 = vmatprep.subr.bf16.mxu1 %v6427_v56  ;;  %v3291_v37 = vsel %vm1439_vm6, %v3288_v34, %v3290_v4  ;;  %v6433_v34 = vld [vmem:[%s7888_s1 + $0x250] sm:$0xff]  }
  0x87   : > { %v1070_v0 = vrot.slane %v7217_v61, 2  ;;  %v3293_v3 = vsel %vm1439_vm6, %v3290_v4, %v3292_v5  ;;  %v3449_v40 = vrot.slane %v3447_v23, 3  ;;  %v6440_v23 = vld [vmem:[%s7888_s1 + $0xd0] sm:$0xff]  }
  0x89   : > { %5653 = vmatpush3.bf16.msra.mxu1 %v6427_v56  ;;  %v7243_v56 = vcombine.low %v7165_v32, %v7174_v55 }
  0x8a   : > { %5666 = vmatprep.subr.bf16.mxu1 %v6432_v15  ;;  %5895 = vmatmul.mubr.msk.bf16.vlgmr.msra.gmra.mrb[0].mxu0 %vm285_vm0, %v3289_v44  ;;  %v7254_v44 = vcombine.low %v7179_v14, %v7237_v20 }
  0x8b   : > { %5907 = vmatpush3.bf16.msra.mxu0 %v6426_v54  ;;  %5898 = vmatprep.mubr.msk.bf16.mxu0 %vm285_vm0, %v3291_v37  ;;  %v3294_v54 = vrot.slane %v7020_v17, 3  ;;  %v3296_v37 = vrot.slane %v7093_v33, 3  ;;  %v1074_v45 = vrot.slane %v7243_v56, 2  ;;  %v1073_v33 = vsel %vm863_vm4, %v1070_v0, %v1072_v21 }
  0x8c   : > { %5643 = vmatmul.mubr.msk.bf16.gmra.mrb[8].mxu1 %vm285_vm0, %v876_v16  ;;  %5908 = vmatprep.subr.bf16.mxu0 %v6428_v22  ;;  %v3450_v16 = vshll.u32 %v7112_v43, 16  ;;  %v6437_v43 = vld [vmem:[%s7888_s1 + $0x258] sm:$0xff]   ;;  %v1076_v46 = vrot.slane %v7254_v44, 2 }
  0x8d   : > { %5654 = vmatprep.mubr.msk.bf16.mxu1 %vm285_vm0, %v1069_v7  ;;  %v1071_v7 = vsel %vm863_vm4, %v1068_v13, %v1070_v0  ;;  %v3454_v13 = vrot.slane %v3084_v27, 3  ;;  %v3295_v4 = vsel %vm1439_vm6, %v3292_v5, %v3294_v54  ;;  %v1233_v27 = vshll.u32 %v7191_v8, 16  ;;  %v6441_v8 = vld [vmem:[%s7888_s1 + $0x260] sm:$0xff]  }
  0x8e   : > { %v3452_v18 = vrot.slane %v3450_v16, 4  ;;  %v1241_v0 = vshll.u32 %v7195_v28, 16 }
  0x8f   : > { %5909 = vmatpush3.bf16.msra.mxu0 %v6428_v22  ;;  %v3455_v22 = vrot.slane %v3087_v9, 4  ;;  %v1238_v9 = vshrl.u32 %v7195_v28, 16 }
  0x90   : > { %5910 = vmatprep.subr.bf16.mxu0 %v6433_v34  ;;  %v3453_v5 = vor.u32 %v3452_v18, %v3449_v40  ;;  %v3297_v18 = vsel %vm1439_vm6, %v3294_v54, %v3296_v37  ;;  %v1077_v40 = vsel %vm863_vm4, %v1074_v45, %v1076_v46  ;;  %v1247_v37 = vshrl.u32 %v7217_v61, 16 }
  0x91   : > { %v3456_v16 = vor.u32 %v3455_v22, %v3454_v13 }
  0x92   : > { %5899 = vmatmul.mubr.msk.bf16.gmra.mrb[4].mxu0 %vm285_vm0, %v3293_v3  ;;  %v1075_v3 = vsel %vm863_vm4, %v1072_v21, %v1074_v45  ;;  %v1240_v21 = vrot.slane %v1238_v9, 2  ;;  %v1078_v45 = vrot.slane %v6439_v52, 2  ;;  %v7906_v52 = vshll.u32 %v7230_v31, 16 }
  0x93   : > { %5911 = vmatpush3.bf16.msra.mxu0 %v6433_v34  ;;  %5902 = vmatprep.mubr.msk.bf16.mxu0 %vm285_vm0, %v3295_v4  ;;  %v3459_v34 = vrot.slane %v3096_v57, 4  ;;  %v3457_v13 = vsel %vm1601_vm7, %v3453_v5, %v3456_v16  ;;  %v7908_v57 = vshll.u32 %v6972_v11, 16  ;;  %v1256_v11 = vshrl.u32 %v7230_v31, 16  ;;  %v7319_v5 = vld [vmem:[%s6591_s28 + $0x40] sm:$0xf] }
  0x94   : > { %5655 = vmatmul.mubr.msk.bf16.vlgmr.msra.gmra.mrb[0].mxu1 %vm285_vm0, %v1071_v7  ;;  %5912 = vmatprep.subr.bf16.mxu0 %v6437_v43  ;;  %v1232_v7 = vrot.slane %v1230_v62, 2 }
  0x95   : > { %5667 = vmatpush3.bf16.msra.mxu1 %v6432_v15  ;;  %5658 = vmatprep.mubr.msk.bf16.mxu1 %vm285_vm0, %v1073_v33  ;;  %v3458_v15 = vrot.slane %v3093_v53, 3  ;;  %v1235_v33 = vrot.slane %v1233_v27, 3  ;;  %v3462_v53 = vrot.slane %v3102_v50, 3  ;;  %v3463_v62 = vrot.slane %v7908_v57, 4  ;;  %v6444_v27 = vld [vmem:[%s7888_s1 + $0xe0] sm:$0xff]  }
  0x96   : > { %5668 = vmatprep.subr.bf16.mxu1 %v6436_v36  ;;  %v1261_v57 = vrot.slane %v7906_v52, 3 }
  0x97   : > { %5913 = vmatpush3.bf16.msra.mxu0 %v6437_v43  ;;  %v3460_v54 = vor.u32 %v3459_v34, %v3458_v15  ;;  %v1250_v43 = vshll.u32 %v7217_v61, 16  ;;  %v1236_v50 = vor.u32 %v1235_v33, %v1232_v7  ;;  %v3464_v4 = vor.u32 %v3463_v62, %v3462_v53 }
  0x98   : > { %5926 = vmatprep.subr.bf16.mxu0 %v6441_v8  ;;  %v7910_v34 = vshll.u32 %v7007_v19, 16  ;;  %v1079_v7 = vsel %vm863_vm4, %v1076_v46, %v1078_v45  ;;  %v7911_v46 = vshrl.u32 %v7020_v17, 16  ;;  %v7912_v62 = vshll.u32 %v7020_v17, 16 }
  0x99   : > { %5669 = vmatpush3.bf16.msra.mxu1 %v6436_v36  ;;  %v1243_v36 = vrot.slane %v1241_v0, 3  ;;  %v3461_v33 = vsel %vm1601_vm7, %v3456_v16, %v3460_v54  ;;  %v5153_v16 = vcombine.low %v7319_v5, %v7319_v5  ;;  %v3465_v53 = vsel %vm1601_vm7, %v3460_v54, %v3464_v4 }
  0x9a   : > { %5670 = vmatprep.subr.bf16.mxu1 %v6440_v23  ;;  %5903 = vmatmul.mubr.msk.bf16.gmra.mrb[8].mxu0 %vm285_vm0, %v3297_v18  ;;  %v6443_v18 = vld [vmem:[%s7888_s1 + $0x268] sm:$0xff]   ;;  %v1265_v45 = vshrl.u32 %v7243_v56, 16  ;;  %v1274_v54 = vshrl.u32 %v7254_v44, 16 }
  0x9b   : > { %5914 = vmatprep.mubr.msk.bf16.mxu0 %vm285_vm0, %v3457_v13  ;;  %v1244_v22 = vor.u32 %v1243_v36, %v1240_v21  ;;  %v1252_v21 = vrot.slane %v1250_v43, 3  ;;  %v3470_v13 = vrot.slane %v7911_v46, 3  ;;  %v3475_v46 = vshrl.u32 %v5153_v16, 16 }
  0x9c   : > { %5659 = vmatmul.mubr.msk.bf16.gmra.mrb[4].mxu1 %vm285_vm0, %v1075_v3  ;;  %v7909_v3 = vshrl.u32 %v7007_v19, 16  ;;  %v1258_v19 = vrot.slane %v1256_v11, 2 }
  0x9d   : > { %5662 = vmatprep.mubr.msk.bf16.mxu1 %vm285_vm0, %v1077_v40  ;;  %5671 = vmatpush3.bf16.msra.mxu1 %v6440_v23  ;;  %v3467_v23 = vrot.slane %v7910_v34, 4  ;;  %v1249_v40 = vrot.slane %v1247_v37, 2  ;;  %v1245_v36 = vsel %vm1228_vm5, %v1236_v50, %v1244_v22  ;;  %v1268_v50 = vshll.u32 %v7243_v56, 16 }
  0x9e   : > { %5672 = vmatprep.subr.bf16.mxu1 %v6442_v6  ;;  %v3466_v15 = vrot.slane %v7909_v3, 3  ;;  %v7907_v34 = vshll.u32 %v7254_v44, 16  ;;  %v1262_v52 = vor.u32 %v1261_v57, %v1258_v19 }
  0x9f   : > { %v1253_v3 = vor.u32 %v1252_v21, %v1249_v40  ;;  %v1267_v40 = vrot.slane %v1265_v45, 2 }
  0xa0   : > { %v3468_v17 = vor.u32 %v3467_v23, %v3466_v15  ;;  %v6447_v15 = vld [vmem:[%s7888_s1 + $0xe8] sm:$0xff]   ;;  %v1276_v23 = vrot.slane %v1274_v54, 2  ;;  %v1279_v19 = vrot.slane %v7907_v34, 3 }
  0xa1   : > { %5673 = vmatpush3.bf16.msra.mxu1 %v6442_v6  ;;  %v3471_v6 = vrot.slane %v7912_v62, 4  ;;  %v6445_v62 = vld [vmem:[%s7888_s1 + $0x270] sm:$0xff]   ;;  %v1254_v21 = vsel %vm1228_vm5, %v1244_v22, %v1253_v3  ;;  %v1263_v57 = vsel %vm1228_vm5, %v1253_v3, %v1262_v52  ;;  %v6448_v22 = vld [vmem:[%s7888_s1 + $0x278] sm:$0xff]  }
  0xa2   : > { %5686 = vmatprep.subr.bf16.mxu1 %v6444_v27  ;;  %5915 = vmatmul.mubr.msk.bf16.vlgmr.msra.gmra.mrb[0].mxu0 %vm285_vm0, %v3461_v33  ;;  %v7358_v33 = vld [vmem:[%s6591_s28 + $0x34] ss:$0 sps:$4 sm:$0x77]   ;;  %v1280_v34 = vor.u32 %v1279_v19, %v1276_v23 }
  0xa3   : > { %5927 = vmatpush3.bf16.msra.mxu0 %v6441_v8  ;;  %5918 = vmatprep.mubr.msk.bf16.mxu0 %vm285_vm0, %v3465_v53  ;;  %v1270_v8 = vrot.slane %v1268_v50, 3  ;;  %v1286_v3 = vshll.u32 %v7358_v33, 16 }
  0xa4   : > { %5663 = vmatmul.mubr.msk.bf16.gmra.mrb[8].mxu1 %vm285_vm0, %v1079_v7  ;;  %v3478_v7 = vshll.u32 %v5153_v16, 16  ;;  %5928 = vmatprep.subr.bf16.mxu0 %v6443_v18  ;;  %v3477_v16 = vrot.slane %v3475_v46, 3  ;;  %v1283_v46 = vshrl.u32 %v7358_v33, 16 }
  0xa5   : > { %5674 = vmatprep.mubr.msk.bf16.mxu1 %vm285_vm0, %v1245_v36  ;;  %v3472_v36 = vor.u32 %v3471_v6, %v3470_v13  ;;  %v3469_v13 = vsel %vm1601_vm7, %v3464_v4, %v3468_v17  ;;  %v1271_v4 = vor.u32 %v1270_v8, %v1267_v40  ;;  %v1288_v8 = vrot.slane %v1286_v3, 3  ;;  %v7429_v3 = vld [vmem:[%s6591_s28 + $0x38] sm:$0xff]  }
  0xa6   : > { %v3480_v53 = vrot.slane %v3478_v7, 4  ;;  %v1285_v40 = vrot.slane %v1283_v46, 2  ;;  %v7421_v46 = vld [vmem:[%s6591_s28 + $0x28] sm:$0xff]  }
  0xa7   : > { %5929 = vmatpush3.bf16.msra.mxu0 %v6443_v18  ;;  %v3473_v6 = vsel %vm1601_vm7, %v3468_v17, %v3472_v36  ;;  %v6451_v18 = vld [vmem:[%s7888_s1 + $0xf0] sm:$0xff]   ;;  %v6453_v17 = vld [vmem:[%s7888_s1 + $0x280] sm:$0xff]   ;;  %v1281_v23 = vsel %vm1228_vm5, %v1271_v4, %v1280_v34 }
  0xa8   : > { %5930 = vmatprep.subr.bf16.mxu0 %v6445_v62  ;;  %v3481_v7 = vor.u32 %v3480_v53, %v3477_v16  ;;  %v7410_v53 = vld [vmem:[%s6591_s28 + $0x1c] sm:$0xf] }
  0xaa   : > { %5919 = vmatmul.mubr.msk.bf16.gmra.mrb[4].mxu0 %vm285_vm0, %v3469_v13  ;;  %v7913_v13 = vcombine.low %v6820_v58, %v6826_v59 }
  0xab   : > { %5931 = vmatpush3.bf16.msra.mxu0 %v6445_v62  ;;  %5922 = vmatprep.mubr.msk.bf16.mxu0 %vm285_vm0, %v3473_v6  ;;  %v3482_v62 = vsel %vm1601_vm7, %v3472_v36, %v3481_v7  ;;  %v1289_v36 = vor.u32 %v1288_v8, %v1285_v40  ;;  %v6459_v6 = vld [vmem:[%s7888_s1 + $0x100] sm:$0xff]   ;;  %v6455_v40 = vld [vmem:[%s7888_s1 + $0x288] sm:$0xff]  }
  0xac   : > { %5675 = vmatmul.mubr.msk.bf16.vlgmr.msra.gmra.mrb[0].mxu1 %vm285_vm0, %v1254_v21  ;;  %v1426_v21 = vld [vmem:[%s6591_s28 + $0x4] sm:$0x8]  ;;  %5932 = vmatprep.subr.bf16.mxu0 %v6448_v22 }
  0xad   : > { %5687 = vmatpush3.bf16.msra.mxu1 %v6444_v27  ;;  %5678 = vmatprep.mubr.msk.bf16.mxu1 %vm285_vm0, %v1263_v57  ;;  %v1272_v27 = vsel %vm1228_vm5, %v1262_v52, %v1271_v4  ;;  %v7395_v19 = vcombine.low %v1426_v21, %v7129_v38  ;;  %v6454_v52 = vld [vmem:[%s7888_s1 + $0xf8] sm:$0xff]   ;;  %v7413_v57 = vld [vmem:[%s6591_s28 + $0x20] sm:$0xff]   ;;  %v1290_v59 = vsel %vm1228_vm5, %v1280_v34, %v1289_v36  ;;  %v1443_v36 = vrot.slane %v7217_v61, 3 }
  0xae   : > { %5688 = vmatprep.subr.bf16.mxu1 %v6447_v15  ;;  %v4556_v58 = vrot.slane %v7413_v57, 2 }
  0xaf   : > { %5933 = vmatpush3.bf16.msra.mxu0 %v6448_v22  ;;  %v1440_v16 = vrot.slane %v7395_v19, 3  ;;  %v4542_v22 = vld [vmem:[%s6591_s28 + $0x18] sm:$0xc] }
  0xb0   : > { %5946 = vmatprep.subr.bf16.mxu0 %v6453_v17  ;;  %v5283_v4 = vcombine.low %v4542_v22, %v7410_v53  ;;  %v7915_v22 = vcombine.low %v6848_v25, %v6853_v26 }
  0xb1   : > { %5689 = vmatpush3.bf16.msra.mxu1 %v6447_v15  ;;  %v1441_v15 = vrot.slane %v7195_v28, 3 }
  0xb2   : > { %5690 = vmatprep.subr.bf16.mxu1 %v6451_v18  ;;  %5923 = vmatmul.mubr.msk.bf16.gmra.mrb[8].mxu0 %vm285_vm0, %v3482_v62  ;;  %v4555_v7 = vrot.slane %v5283_v4, 2  ;;  %v4562_v62 = vrot.slane %v7429_v3, 2  ;;  %v7462_v4 = vld [vmem:[%s6591_s28 + $0x40] sm:$0xff]  }
  0xb3   : > { %5934 = vmatprep.mubr.msk.bf16.mxu0 %vm285_vm0, %v7913_v13  ;;  %v1442_v21 = vsel %vm1439_vm6, %v1440_v16, %v1441_v15 }
  0xb4   : > { %5679 = vmatmul.mubr.msk.bf16.gmra.mrb[4].mxu1 %vm285_vm0, %v1272_v27  ;;  %v4558_v27 = vrot.slane %v7421_v46, 2  ;;  %v7437_v8 = vsel %vm863_vm4, %v4555_v7, %v4556_v58  ;;  %v7916_v7 = vcombine.low %v6860_v29, %v6863_v30  ;;  %v7917_v29 = vcombine.low %v6896_v47, %v6899_v10  ;;  %v6468_v30 = vld [vmem:[%s7888_s1 + $0x2a0] sm:$0xff]  }
  0xb5   : > { %5682 = vmatprep.mubr.msk.bf16.mxu1 %vm285_vm0, %v1281_v23  ;;  %5691 = vmatpush3.bf16.msra.mxu1 %v6451_v18  ;;  %v7426_v18 = vld [vmem:[%s6591_s28 + $0x30] sm:$0xff]  }
  0xb6   : > { %5692 = vmatprep.subr.bf16.mxu1 %v6454_v52  ;;  %v4560_v34 = vrot.slane %v7426_v18, 2  ;;  %v7443_v23 = vsel %vm863_vm4, %v4556_v58, %v4558_v27  ;;  %v4564_v58 = vrot.slane %v7462_v4, 2 }
  0xb8   : > { %v7452_v13 = vsel %vm863_vm4, %v4558_v27, %v4560_v34  ;;  %v7455_v16 = vsel %vm863_vm4, %v4560_v34, %v4562_v62  ;;  %v7473_v25 = vsel %vm863_vm4, %v4562_v62, %v4564_v58  ;;  %v1449_v27 = vrot.slane %v7254_v44, 3 }
  0xb9   : > { %5693 = vmatpush3.bf16.msra.mxu1 %v6454_v52  ;;  %v7914_v52 = vcombine.low %v6830_v63, %v6833_v2  ;;  %v6460_v63 = vld [vmem:[%s7888_s1 + $0x290] sm:$0xff]   ;;  %v1445_v2 = vrot.slane %v7230_v31, 3  ;;  %v1603_v34 = vshrl.u32 %v7395_v19, 16  ;;  %v1606_v62 = vshll.u32 %v7395_v19, 16  ;;  %v6465_v19 = vld [vmem:[%s6591_s28 + $0x18] sm:$0xff]  }
  0xba   : > { %5706 = vmatprep.subr.bf16.mxu1 %v6459_v6 }
  0xbb   : > { %5935 = vmatmul.mubr.msk.bf16.vlgmr.msra.gmra.mrb[0].mxu0 %vm285_vm0, %v7914_v52  ;;  %v1446_v26 = vsel %vm1439_vm6, %v1443_v36, %v1445_v2  ;;  %v6526_v52 = vld [vmem:[%s6591_s28 + $0x3c] sm:$0xf]  ;;  %v1605_v47 = vrot.slane %v1603_v34, 3  ;;  %v1608_v10 = vrot.slane %v1606_v62, 4  ;;  %v6470_v34 = vld [vmem:[%s7888_s1 + $0x2a8] sm:$0xff]   ;;  %v7918_v62 = vshll.u32 %v7230_v31, 16 }
  0xbc   : > { %5683 = vmatmul.mubr.msk.bf16.gmra.mrb[8].mxu1 %vm285_vm0, %v1290_v59  ;;  %5947 = vmatpush3.bf16.msra.mxu0 %v6453_v17  ;;  %v1444_v59 = vsel %vm1439_vm6, %v1441_v15, %v1443_v36  ;;  %v6463_v17 = vld [vmem:[%s7888_s1 + $0x108] sm:$0xff]   ;;  %v6464_v15 = vld [vmem:[%s7888_s1 + $0x298] sm:$0xff]   ;;  %v5177_v36 = vcombine.low %v6526_v52, %v7319_v5  ;;  %v6474_v31 = vld [vmem:[%s7888_s1 + $0x2b0] sm:$0xff]  }
  0xbd   : > { %5694 = vmatprep.mubr.msk.bf16.mxu1 %vm285_vm0, %v1442_v21  ;;  %5938 = vmatprep.mubr.msk.bf16.mxu0 %vm285_vm0, %v7915_v22  ;;  %v1447_v21 = vrot.slane %v7243_v56, 3  ;;  %v6469_v5 = vld [vmem:[%s7888_s1 + $0x118] sm:$0xff]   ;;  %v1609_v28 = vor.u32 %v1608_v10, %v1605_v47  ;;  %v1626_v47 = vrot.slane %v1274_v54, 3  ;;  %v7919_v10 = vshll.u32 %v7254_v44, 16 }
  0xbe   : > { %5948 = vmatprep.subr.bf16.mxu0 %v6455_v40  ;;  %v6478_v54 = vld [vmem:[%s7888_s1 + $0x2b8] sm:$0xff]  }
  0xbf   : > { %v1450_v22 = vsel %vm1439_vm6, %v1447_v21, %v1449_v27 }
  0xc0   : > { %5949 = vmatpush3.bf16.msra.mxu0 %v6455_v40  ;;  %v6466_v40 = vld [vmem:[%s7888_s1 + $0x110] sm:$0xff]  }
  0xc1   : > { %5950 = vmatprep.subr.bf16.mxu0 %v6460_v63 }
  0xc3   : > { %5939 = vmatmul.mubr.msk.bf16.gmra.mrb[4].mxu0 %vm285_vm0, %v7916_v7  ;;  %v1614_v7 = vrot.slane %v1247_v37, 3  ;;  %v1619_v37 = vrot.slane %v7918_v62, 4 }
  0xc4   : > { %5695 = vmatmul.mubr.msk.bf16.vlgmr.msra.gmra.mrb[0].mxu1 %vm285_vm0, %v1444_v59  ;;  %5951 = vmatpush3.bf16.msra.mxu0 %v6460_v63  ;;  %v1610_v63 = vrot.slane %v1238_v9, 3  ;;  %v1611_v59 = vrot.slane %v1241_v0, 4  ;;  %v6473_v0 = vld [vmem:[%s7888_s1 + $0x120] sm:$0xff]  }
  0xc5   : > { %5707 = vmatpush3.bf16.msra.mxu1 %v6459_v6  ;;  %5698 = vmatprep.mubr.msk.bf16.mxu1 %vm285_vm0, %v1446_v26  ;;  %v1448_v6 = vsel %vm1439_vm6, %v1445_v2, %v1447_v21  ;;  %v1451_v2 = vrot.slane %v7358_v33, 3  ;;  %v3954_v26 = vld [vmem:[%s6591_s28 + $0x18] sm:$0xf]  ;;  %v1615_v33 = vrot.slane %v1250_v43, 4 }
  0xc6   : > { %5942 = vmatprep.mubr.msk.bf16.mxu0 %vm285_vm0, %v7917_v29  ;;  %5708 = vmatprep.subr.bf16.mxu1 %v6463_v17  ;;  %v1612_v9 = vor.u32 %v1611_v59, %v1610_v63  ;;  %v5220_v61 = vcombine.low %v3954_v26, %v7410_v53  ;;  %v7544_v29 = vld [vmem:[%s6591_s28 + $0x34] sm:$0xf]  ;;  %v1627_v63 = vrot.slane %v7919_v10, 4 }
  0xc7   : > { %5952 = vmatprep.subr.bf16.mxu0 %v6464_v15  ;;  %v1616_v43 = vor.u32 %v1615_v33, %v1614_v7 }
  0xc8   : > { %5953 = vmatpush3.bf16.msra.mxu0 %v6464_v15  ;;  %v6467_v15 = vld [vmem:[%s6591_s28 + $0x20] sm:$0xff]   ;;  %v1613_v21 = vsel %vm1601_vm7, %v1609_v28, %v1612_v9  ;;  %v4010_v56 = vshrl.u32 %v5220_v61, 16  ;;  %v1628_v26 = vor.u32 %v1627_v63, %v1626_v47  ;;  %v4037_v63 = vshrl.u32 %v7426_v18, 16 }
  0xc9   : > { %5709 = vmatpush3.bf16.msra.mxu1 %v6463_v17  ;;  %5966 = vmatprep.subr.bf16.mxu0 %v6468_v30  ;;  %v1452_v17 = vsel %vm1439_vm6, %v1449_v27, %v1451_v2  ;;  %v1618_v27 = vrot.slane %v1256_v11, 3  ;;  %v1617_v52 = vsel %vm1601_vm7, %v1612_v9, %v1616_v43  ;;  %v4017_v2 = vshll.u32 %v7413_v57, 16 }
  0xca   : > { %5710 = vmatprep.subr.bf16.mxu1 %v6466_v40 }
  0xcb   : > { %5943 = vmatmul.mubr.msk.bf16.gmra.mrb[8].mxu0 %vm285_vm0, %v5177_v36  ;;  %v1620_v11 = vor.u32 %v1619_v37, %v1618_v27  ;;  %v6472_v36 = vld [vmem:[%s6591_s28 + $0x30] sm:$0xff]   ;;  %v4019_v7 = vrot.slane %v4017_v2, 1  ;;  %v4025_v27 = vshll.u32 %v7421_v46, 16  ;;  %v4021_v37 = vshrl.u32 %v7413_v57, 16 }
  0xcc   : > { %5699 = vmatmul.mubr.msk.bf16.gmra.mrb[4].mxu1 %vm285_vm0, %v1448_v6  ;;  %5954 = vmatprep.mubr.msk.bf16.mxu0 %vm285_vm0, %v6465_v19  ;;  %v4012_v6 = vshll.u32 %v5220_v61, 16  ;;  %v4941_v19 = vcombine.low %v7544_v29, %v7544_v29 }
  0xcd   : > { %5702 = vmatprep.mubr.msk.bf16.mxu1 %vm285_vm0, %v1450_v22  ;;  %5711 = vmatpush3.bf16.msra.mxu1 %v6466_v40  ;;  %v6471_v40 = vld [vmem:[%s6591_s28 + $0x28] sm:$0xff]   ;;  %v1622_v22 = vrot.slane %v1265_v45, 3  ;;  %v1621_v59 = vsel %vm1601_vm7, %v1616_v43, %v1620_v11  ;;  %v6485_v43 = vld [vmem:[%s7888_s1 + $0x138] sm:$0xff]  }
  0xce   : > { %5712 = vmatprep.subr.bf16.mxu1 %v6469_v5  ;;  %v6477_v45 = vld [vmem:[%s7888_s1 + $0x128] sm:$0xff]   ;;  %v1631_v28 = vshrl.u32 %v4941_v19, 16  ;;  %v1634_v9 = vshll.u32 %v4941_v19, 16  ;;  %v6491_v19 = vld [vmem:[%s7888_s1 + $0x140] sm:$0xff]  }
  0xd1   : > { %5713 = vmatpush3.bf16.msra.mxu1 %v6469_v5  ;;  %v6475_v5 = vld [vmem:[%s6591_s28 + $0x38] sm:$0xff]  }
  0xd2   : > { %5726 = vmatprep.subr.bf16.mxu1 %v6473_v0 }
  0xd3   : > { %5955 = vmatmul.mubr.msk.bf16.vlgmr.msra.gmra.mrb[0].mxu0 %vm285_vm0, %v6467_v15 }
  0xd4   : > { %5703 = vmatmul.mubr.msk.bf16.gmra.mrb[8].mxu1 %vm285_vm0, %v1452_v17  ;;  %5967 = vmatpush3.bf16.msra.mxu0 %v6468_v30  ;;  %v1623_v30 = vrot.slane %v1268_v50, 4  ;;  %v4014_v50 = vrot.slane %v4012_v6, 1  ;;  %v6482_v17 = vld [vmem:[%s7888_s1 + $0x130] sm:$0xff]  }
  0xd5   : > { %5714 = vmatprep.mubr.msk.bf16.mxu1 %vm285_vm0, %v1613_v21  ;;  %5958 = vmatprep.mubr.msk.bf16.mxu0 %vm285_vm0, %v6471_v40  ;;  %v6476_v21 = vld [vmem:[%s6591_s28 + $0x40] sm:$0xff]   ;;  %v1633_v40 = vrot.slane %v1631_v28, 3 }
  0xd6   : > { %5968 = vmatprep.subr.bf16.mxu0 %v6470_v34  ;;  %v1624_v44 = vor.u32 %v1623_v30, %v1622_v22  ;;  %v4015_v15 = vor.u32 %v4014_v50, %v4010_v56  ;;  %v4045_v56 = vshrl.u32 %v7429_v3, 16  ;;  %v4049_v50 = vshll.u32 %v7462_v4, 16 }
  0xd8   : > { %5969 = vmatpush3.bf16.msra.mxu0 %v6470_v34  ;;  %v1625_v33 = vsel %vm1601_vm7, %v1620_v11, %v1624_v44  ;;  %v1636_v34 = vrot.slane %v1634_v9, 4  ;;  %v1629_v62 = vsel %vm1601_vm7, %v1624_v44, %v1628_v26  ;;  %v4020_v61 = vsel %vm208_vm1, %v4015_v15, %v4019_v7  ;;  %v7630_v9 = vld [vmem:[%s6591_s28 + $0x48] ss:$0 sps:$4 sm:$0x11]  }
  0xd9   : > { %5970 = vmatprep.subr.bf16.mxu0 %v6474_v31  ;;  %v4033_v11 = vshll.u32 %v7426_v18, 16 }
  0xda   : > { %v1637_v6 = vor.u32 %v1636_v34, %v1633_v40  ;;  %v7921_v40 = vcombine.low %v7138_v39, %v7145_v48 }
  0xdb   : > { %5959 = vmatmul.mubr.msk.bf16.gmra.mrb[4].mxu0 %vm285_vm0, %v6472_v36  ;;  %v4023_v36 = vor.u32 %v4021_v37, %v4019_v7  ;;  %v4035_v30 = vrot.slane %v4033_v11, 1  ;;  %v4053_v7 = vshrl.u32 %v7462_v4, 16 }
  0xdc   : > { %5715 = vmatmul.mubr.msk.bf16.vlgmr.msra.gmra.mrb[0].mxu1 %vm285_vm0, %v1617_v52  ;;  %5971 = vmatpush3.bf16.msra.mxu0 %v6474_v31  ;;  %v4029_v31 = vshrl.u32 %v7421_v46, 16  ;;  %v4027_v52 = vrot.slane %v4025_v27, 1  ;;  %v1638_v47 = vsel %vm1601_vm7, %v1628_v26, %v1637_v6  ;;  %v6492_v26 = vld [vmem:[%s7888_s1 + $0x2d0] sm:$0xff]   ;;  %v4210_v6 = vrot.slane %v7413_v57, 1 }
  0xdd   : > { %5727 = vmatpush3.bf16.msra.mxu1 %v6473_v0  ;;  %5718 = vmatprep.mubr.msk.bf16.mxu1 %vm285_vm0, %v1621_v59  ;;  %v6484_v0 = vld [vmem:[%s7888_s1 + $0x2c0] sm:$0xff]   ;;  %v4041_v59 = vshll.u32 %v7429_v3, 16  ;;  %v4039_v44 = vor.u32 %v4037_v63, %v4035_v30  ;;  %v6516_v57 = vld [vmem:[%s7888_s1 + $0x170] sm:$0xff]  }
  0xde   : > { %5962 = vmatprep.mubr.msk.bf16.mxu0 %vm285_vm0, %v6475_v5  ;;  %5728 = vmatprep.subr.bf16.mxu1 %v6477_v45  ;;  %v4031_v22 = vor.u32 %v4029_v31, %v4027_v52  ;;  %v4028_v10 = vsel %vm208_vm1, %v4023_v36, %v4027_v52  ;;  %v6486_v5 = vld [vmem:[%s7888_s1 + $0x2c8] sm:$0xff]   ;;  %v6504_v36 = vld [vmem:[%s7888_s1 + $0x158] sm:$0xff]  }
  0xdf   : > { %5972 = vmatprep.subr.bf16.mxu0 %v6478_v54  ;;  %v4043_v28 = vrot.slane %v4041_v59, 1 }
  0xe0   : > { %5973 = vmatpush3.bf16.msra.mxu0 %v6478_v54  ;;  %v7920_v54 = vcombine.low %v7129_v38, %v7135_v35  ;;  %v4051_v35 = vrot.slane %v4049_v50, 1 }
  0xe1   : > { %5729 = vmatpush3.bf16.msra.mxu1 %v6477_v45  ;;  %5986 = vmatprep.subr.bf16.mxu0 %v6484_v0  ;;  %v4036_v45 = vsel %vm208_vm1, %v4031_v22, %v4035_v30  ;;  %v4047_v38 = vor.u32 %v4045_v56, %v4043_v28  ;;  %v4044_v15 = vsel %vm208_vm1, %v4039_v44, %v4043_v28  ;;  %v2110_v44 = vld [vmem:[%s6591_s28 + $0xc] sm:$0xf]  ;;  %v6507_v28 = vld [vmem:[%s6591_s28 + $0x14] sm:$0xff]  }
  0xe2   : > { %5730 = vmatprep.subr.bf16.mxu1 %v6482_v17  ;;  %v4055_v39 = vor.u32 %v4053_v7, %v4051_v35  ;;  %v7923_v22 = vcombine.low %v7154_v42, %v7165_v32  ;;  %v7924_v30 = vcombine.low %v7174_v55, %v7179_v14  ;;  %v6508_v42 = vld [vmem:[%s7888_s1 + $0x160] sm:$0xff]   ;;  %v4965_v32 = vcombine.low %v7237_v20, %v7544_v29  ;;  %v6505_v55 = vld [vmem:[%s7888_s1 + $0x2e8] sm:$0xff]   ;;  %v6509_v29 = vld [vmem:[%s7888_s1 + $0x2f0] sm:$0xff]  }
  0xe3   : > { %5963 = vmatmul.mubr.msk.bf16.gmra.mrb[8].mxu0 %vm285_vm0, %v6476_v21  ;;  %v4052_v34 = vsel %vm208_vm1, %v4047_v38, %v4051_v35  ;;  %v4216_v20 = vrot.slane %v7429_v3, 1  ;;  %v6510_v35 = vld [vmem:[%s6591_s28 + $0x1c] sm:$0xff]   ;;  %v4395_v3 = vrot.slane %v4049_v50, 2  ;;  %v6521_v50 = vld [vmem:[%s7888_s1 + $0x310] sm:$0xff]  }
  0xe4   : > { %5719 = vmatmul.mubr.msk.bf16.gmra.mrb[4].mxu1 %vm285_vm0, %v1625_v33  ;;  %5974 = vmatprep.mubr.msk.bf16.mxu0 %vm285_vm0, %v4020_v61  ;;  %v6497_v33 = vld [vmem:[%s7888_s1 + $0x148] sm:$0xff]   ;;  %v7922_v61 = vcombine.low %v7148_v51, %v7151_v1  ;;  %v6503_v1 = vld [vmem:[%s7888_s1 + $0x2e0] sm:$0xff]  }
  0xe5   : > { %5722 = vmatprep.mubr.msk.bf16.mxu1 %vm285_vm0, %v1629_v62  ;;  %5731 = vmatpush3.bf16.msra.mxu1 %v6482_v17  ;;  %v4196_v17 = vld [vmem:[%s6591_s28 + $0x18] sm:$0xe] }
  0xe6   : > { %5732 = vmatprep.subr.bf16.mxu1 %v6485_v43  ;;  %v5245_v21 = vcombine.low %v4196_v17, %v7410_v53  ;;  %v6498_v62 = vld [vmem:[%s7888_s1 + $0x2d8] sm:$0xff]   ;;  %v6502_v53 = vld [vmem:[%s7888_s1 + $0x150] sm:$0xff]  }
  0xe7   : > { %v6527_v17 = vld [vmem:[%s6591_s28 + $0x10] sm:$0xf] }
  0xe9   : > { %5733 = vmatpush3.bf16.msra.mxu1 %v6485_v43  ;;  %v4209_v43 = vrot.slane %v5245_v21, 1 }
  0xea   : > { %5746 = vmatprep.subr.bf16.mxu1 %v6491_v19 }
  0xeb   : > { %5975 = vmatmul.mubr.msk.bf16.vlgmr.msra.gmra.mrb[0].mxu0 %vm285_vm0, %v4028_v10  ;;  %v4211_v52 = vsel %vm515_vm2, %v4209_v43, %v4210_v6  ;;  %v6506_v10 = vld [vmem:[%s6591_s28 + $0xc] sm:$0xff]   ;;  %v6511_v43 = vld [vmem:[%s6591_s28 + $0x24] sm:$0xff]  }
  0xec   : > { %5723 = vmatmul.mubr.msk.bf16.gmra.mrb[8].mxu1 %vm285_vm0, %v1638_v47  ;;  %5987 = vmatpush3.bf16.msra.mxu0 %v6484_v0  ;;  %v4057_v0 = vshll.u32 %v7630_v9, 16  ;;  %v4214_v47 = vrot.slane %v7426_v18, 1 }
  0xed   : > { %5734 = vmatprep.mubr.msk.bf16.mxu1 %vm285_vm0, %v7920_v54  ;;  %5978 = vmatprep.mubr.msk.bf16.mxu0 %vm285_vm0, %v4036_v45  ;;  %v4371_v45 = vshrl.u32 %v5245_v21, 16  ;;  %v4374_v54 = vshll.u32 %v5245_v21, 16  ;;  %v4378_v21 = vrot.slane %v4021_v37, 1  ;;  %v4220_v37 = vrot.slane %v7630_v9, 1  ;;  %v6514_v9 = vld [vmem:[%s6591_s28 + $0x2c] sm:$0xff]  }
  0xee   : > { %5988 = vmatprep.subr.bf16.mxu0 %v6486_v5  ;;  %v4059_v48 = vrot.slane %v4057_v0, 1  ;;  %v4217_v38 = vsel %vm515_vm2, %v4214_v47, %v4216_v20  ;;  %v6512_v0 = vld [vmem:[%s7888_s1 + $0x168] sm:$0xff]  }
  0xf0   : > { %5989 = vmatpush3.bf16.msra.mxu0 %v6486_v5  ;;  %v4060_v51 = vsel %vm208_vm1, %v4055_v39, %v4059_v48 }
  0xf1   : > { %5990 = vmatprep.subr.bf16.mxu0 %v6492_v26 }
  0xf3   : > { %5979 = vmatmul.mubr.msk.bf16.gmra.mrb[4].mxu0 %vm285_vm0, %v4044_v15  ;;  %v5008_v15 = vcombine.low %v2110_v44, %v6527_v17 }
  0xf4   : > { %5735 = vmatmul.mubr.msk.bf16.vlgmr.msra.gmra.mrb[0].mxu1 %vm285_vm0, %v7921_v40  ;;  %5991 = vmatpush3.bf16.msra.mxu0 %v6492_v26  ;;  %v4218_v26 = vrot.slane %v7462_v4, 1  ;;  %v4376_v40 = vrot.slane %v4374_v54, 2  ;;  %v7927_v54 = vshll.u32 %v6627_v24, 16 }
  0xf5   : > { %5747 = vmatpush3.bf16.msra.mxu1 %v6491_v19  ;;  %5738 = vmatprep.mubr.msk.bf16.mxu1 %vm285_vm0, %v7922_v61  ;;  %v4212_v19 = vrot.slane %v7421_v46, 1  ;;  %v6513_v61 = vld [vmem:[%s7888_s1 + $0x2f8] sm:$0xff]  }
  0xf6   : > { %5982 = vmatprep.mubr.msk.bf16.mxu0 %vm285_vm0, %v4052_v34  ;;  %5748 = vmatprep.subr.bf16.mxu1 %v6497_v33  ;;  %v4379_v34 = vrot.slane %v4017_v2, 2  ;;  %v2168_v2 = vshll.u32 %v5008_v15, 16  ;;  %v2183_v44 = vrot.slane %v7927_v54, 1 }
  0xf7   : > { %5992 = vmatprep.subr.bf16.mxu0 %v6498_v62  ;;  %v4213_v14 = vsel %vm515_vm2, %v4210_v6, %v4212_v19  ;;  %v4215_v5 = vsel %vm515_vm2, %v4212_v19, %v4214_v47  ;;  %v4382_v6 = vrot.slane %v4029_v31, 1  ;;  %v4386_v31 = vrot.slane %v4037_v63, 1 }
  0xf8   : > { %5993 = vmatpush3.bf16.msra.mxu0 %v6498_v62  ;;  %v4219_v62 = vsel %vm515_vm2, %v4216_v20, %v4218_v26  ;;  %v4380_v48 = vor.u32 %v4379_v34, %v4378_v21  ;;  %v4387_v19 = vrot.slane %v4033_v11, 2  ;;  %v7925_v47 = vshll.u32 %v6607_v12, 16 }
  0xf9   : > { %5749 = vmatpush3.bf16.msra.mxu1 %v6497_v33  ;;  %6006 = vmatprep.subr.bf16.mxu0 %v6503_v1  ;;  %v4373_v33 = vrot.slane %v4371_v45, 1 }
  0xfa   : > { %5750 = vmatprep.subr.bf16.mxu1 %v6502_v53  ;;  %v4388_v63 = vor.u32 %v4387_v19, %v4386_v31 }
  0xfb   : > { %5983 = vmatmul.mubr.msk.bf16.gmra.mrb[8].mxu0 %vm285_vm0, %v4060_v51  ;;  %v4377_v39 = vor.u32 %v4376_v40, %v4373_v33  ;;  %v4383_v51 = vrot.slane %v4025_v27, 2 }
  0xfc   : > { %5739 = vmatmul.mubr.msk.bf16.gmra.mrb[4].mxu1 %vm285_vm0, %v7923_v22  ;;  %5994 = vmatprep.mubr.msk.bf16.mxu0 %vm285_vm0, %v4211_v52  ;;  %v2166_v52 = vshrl.u32 %v5008_v15, 16 }
  0xfd   : > { %5742 = vmatprep.mubr.msk.bf16.mxu1 %vm285_vm0, %v7924_v30  ;;  %5751 = vmatpush3.bf16.msra.mxu1 %v6502_v53  ;;  %v6517_v53 = vld [vmem:[%s7888_s1 + $0x300] sm:$0xff]   ;;  %v4381_v22 = vsel %vm677_vm3, %v4377_v39, %v4380_v48  ;;  %v6518_v30 = vld [vmem:[%s7888_s1 + $0x178] sm:$0xff]   ;;  %v4384_v46 = vor.u32 %v4383_v51, %v4382_v6  ;;  %v7933_v6 = vshll.u32 %v6764_v60, 16 }
  0xfe   : > { %5752 = vmatprep.subr.bf16.mxu1 %v6504_v36  ;;  %v6525_v39 = vld [vmem:[%s6591_s28 + $0x3c] ss:$0 sps:$4 sm:$0x11]  }
  0xff   : > { %v4385_v18 = vsel %vm677_vm3, %v4380_v48, %v4384_v46  ;;  %v4389_v20 = vsel %vm677_vm3, %v4384_v46, %v4388_v63  ;;  %v2213_v51 = vshll.u32 %v6525_v39, 16  ;;  %v6531_v46 = vld [vmem:[%s6591_s28 + $0x34] sm:$0xff]  }
 0x101   : > { %5753 = vmatpush3.bf16.msra.mxu1 %v6504_v36  ;;  %v2170_v36 = vrot.slane %v2168_v2, 1  ;;  %v2215_v19 = vrot.slane %v2213_v51, 1 }
 0x102   : > { %5766 = vmatprep.subr.bf16.mxu1 %v6508_v42 }
 0x103   : > { %5995 = vmatmul.mubr.msk.bf16.vlgmr.msra.gmra.mrb[0].mxu0 %vm285_vm0, %v4213_v14  ;;  %v2171_v27 = vor.u32 %v2170_v36, %v2166_v52  ;;  %v4391_v14 = vrot.slane %v4041_v59, 2  ;;  %v7926_v59 = vshrl.u32 %v6607_v12, 16  ;;  %v7928_v12 = vshrl.u32 %v6627_v24, 16  ;;  %v6523_v24 = vld [vmem:[%s7888_s1 + $0x318] sm:$0xff]  }
 0x104   : > { %5743 = vmatmul.mubr.msk.bf16.gmra.mrb[8].mxu1 %vm285_vm0, %v4965_v32  ;;  %6007 = vmatpush3.bf16.msra.mxu0 %v6503_v1  ;;  %v4221_v1 = vsel %vm515_vm2, %v4218_v26, %v4220_v37  ;;  %v6515_v32 = vld [vmem:[%s6591_s28 + $0x34] sm:$0xff]  }
 0x105   : > { %5754 = vmatprep.mubr.msk.bf16.mxu1 %vm285_vm0, %v6506_v10  ;;  %5998 = vmatprep.mubr.msk.bf16.mxu0 %vm285_vm0, %v4215_v5  ;;  %v4390_v10 = vrot.slane %v4045_v56, 1  ;;  %v6519_v5 = vld [vmem:[%s7888_s1 + $0x308] sm:$0xff]   ;;  %v4394_v56 = vrot.slane %v4053_v7, 1 }
 0x106   : > { %6008 = vmatprep.subr.bf16.mxu0 %v6505_v55 }
 0x107   : > { %v4396_v15 = vor.u32 %v4395_v3, %v4394_v56 }
 0x108   : > { %6009 = vmatpush3.bf16.msra.mxu0 %v6505_v55  ;;  %v7763_v55 = vld [vmem:[%s6591_s28 + $0x48] ss:$0 sps:$4 sm:$0x33]   ;;  %s6343_s28 = smul.u32 96, %s7937_s10 }
 0x109   : > { %6010 = vmatprep.subr.bf16.mxu0 %v6509_v29  ;;  %v4399_v26 = vshrl.u32 %v7763_v55, 16  ;;  %v4402_v7 = vshll.u32 %v7763_v55, 16 }
 0x10a   : > { %s7858_s24 = scalar_lea.vmem %s7889_s2, %s6343_s28 }
 0x10b   : > { %5999 = vmatmul.mubr.msk.bf16.gmra.mrb[4].mxu0 %vm285_vm0, %v4217_v38  ;;  %v2187_v38 = vor.u32 %v7928_v12, %v2183_v44  ;;  %v4401_v40 = vrot.slane %v4399_v26, 1  ;;  %v4404_v21 = vrot.slane %v4402_v7, 2 }
 0x10c   : > { %5755 = vmatmul.mubr.msk.bf16.vlgmr.msra.gmra.mrb[0].mxu1 %vm285_vm0, %v6507_v28  ;;  %6011 = vmatpush3.bf16.msra.mxu0 %v6509_v29  ;;  %v6528_v29 = vld [vmem:[%s7888_s1 + $0x180] sm:$0xff]   ;;  %v4392_v28 = vor.u32 %v4391_v14, %v4390_v10 }
 0x10d   : > { %5767 = vmatpush3.bf16.msra.mxu1 %v6508_v42  ;;  %5758 = vmatprep.mubr.msk.bf16.mxu1 %vm285_vm0, %v6510_v35  ;;  %v2175_v42 = vrot.slane %v7925_v47, 1  ;;  %v7929_v35 = vshll.u32 %v6656_v41, 16  ;;  %v4405_v48 = vor.u32 %v4404_v21, %v4401_v40  ;;  %v6532_v47 = vld [vmem:[%s7888_s1 + $0x198] sm:$0xff]  }
 0x10e   : > { %6002 = vmatprep.mubr.msk.bf16.mxu0 %vm285_vm0, %v4219_v62  ;;  %5768 = vmatprep.subr.bf16.mxu1 %v6512_v0  ;;  %v4393_v33 = vsel %vm677_vm3, %v4388_v63, %v4392_v28  ;;  %v4397_v62 = vsel %vm677_vm3, %v4392_v28, %v4396_v15  ;;  %v7935_v63 = vrot.slane %v6666_v49, 1 }
 0x10f   : > { %6012 = vmatprep.subr.bf16.mxu0 %v6513_v61  ;;  %v2176_v11 = vsel %vm208_vm1, %v2171_v27, %v2175_v42  ;;  %v2179_v45 = vor.u32 %v7926_v59, %v2175_v42  ;;  %v2191_v17 = vrot.slane %v7929_v35, 1  ;;  %v4406_v52 = vsel %vm677_vm3, %v4396_v15, %v4405_v48 }
 0x110   : > { %6013 = vmatpush3.bf16.msra.mxu0 %v6513_v61  ;;  %v7930_v61 = vshll.u32 %v6666_v49, 16  ;;  %v2374_v27 = vrot.slane %v6531_v46, 1 }
 0x111   : > { %5769 = vmatpush3.bf16.msra.mxu1 %v6512_v0  ;;  %6026 = vmatprep.subr.bf16.mxu0 %v6517_v53  ;;  %v2184_v0 = vsel %vm208_vm1, %v2179_v45, %v2183_v44  ;;  %v2192_v34 = vsel %vm208_vm1, %v2187_v38, %v2191_v17 }
 0x112   : > { %5770 = vmatprep.subr.bf16.mxu1 %v6516_v57  ;;  %v2199_v37 = vrot.slane %v7930_v61, 1 }
 0x113   : > { %6003 = vmatmul.mubr.msk.bf16.gmra.mrb[8].mxu0 %vm285_vm0, %v4221_v1  ;;  %v6529_v1 = vld [vmem:[%s7888_s1 + $0x188] sm:$0xff]  }
 0x114   : > { %5759 = vmatmul.mubr.msk.bf16.gmra.mrb[4].mxu1 %vm285_vm0, %v6511_v43  ;;  %6014 = vmatprep.mubr.msk.bf16.mxu0 %vm285_vm0, %v4381_v22  ;;  %v6530_v22 = vld [vmem:[%s7888_s1 + $0x190] sm:$0xff]  }
 0x115   : > { %5762 = vmatprep.mubr.msk.bf16.mxu1 %vm285_vm0, %v6514_v9  ;;  %5771 = vmatpush3.bf16.msra.mxu1 %v6516_v57  ;;  %v7931_v57 = vshrl.u32 %v6656_v41, 16  ;;  %v2207_v9 = vrot.slane %v7933_v6, 1 }
 0x116   : > { %5772 = vmatprep.subr.bf16.mxu1 %v6518_v30 }
 0x117   : > { %v2195_v2 = vor.u32 %v7931_v57, %v2191_v17 }
 0x119   : > { %5773 = vmatpush3.bf16.msra.mxu1 %v6518_v30  ;;  %v2200_v41 = vsel %vm208_vm1, %v2195_v2, %v2199_v37  ;;  %v7934_v30 = vshrl.u32 %v6764_v60, 16  ;;  %v2375_v60 = vsel %vm515_vm2, %v7935_v63, %v2374_v27 }
 0x11a   : > { %6046 = vmatprep.subr.bf16.mxu1 %v6528_v29 }
 0x11b   : > { %6015 = vmatmul.mubr.msk.bf16.vlgmr.msra.gmra.mrb[0].mxu0 %vm285_vm0, %v4385_v18  ;;  %v2211_v31 = vor.u32 %v7934_v30, %v2207_v9 }
 0x11c   : > { %5763 = vmatmul.mubr.msk.bf16.gmra.mrb[8].mxu1 %vm285_vm0, %v6515_v32  ;;  %6027 = vmatpush3.bf16.msra.mxu0 %v6517_v53  ;;  %v7932_v53 = vshrl.u32 %v6666_v49, 16  ;;  %v4566_v49 = vrot.slane %v7763_v55, 2 }
 0x11d   : > { %5774 = vmatprep.mubr.msk.bf16.mxu1 %vm285_vm0, %v2176_v11  ;;  %6018 = vmatprep.mubr.msk.bf16.mxu0 %vm285_vm0, %v4389_v20  ;;  %v2216_v42 = vsel %vm208_vm1, %v2211_v31, %v2215_v19 }
 0x11e   : > { %6028 = vmatprep.subr.bf16.mxu0 %v6519_v5  ;;  %v2203_v43 = vor.u32 %v7932_v53, %v2199_v37 }
 0x120   : > { %6029 = vmatpush3.bf16.msra.mxu0 %v6519_v5  ;;  %v2208_v36 = vsel %vm208_vm1, %v2203_v43, %v2207_v9 }
 0x121   : > { %6030 = vmatprep.subr.bf16.mxu0 %v6521_v50 }
 0x123   : > { %6019 = vmatmul.mubr.msk.bf16.gmra.mrb[4].mxu0 %vm285_vm0, %v4393_v33 }
 0x124   : > { %5775 = vmatmul.mubr.msk.bf16.vlgmr.msra.gmra.mrb[0].mxu1 %vm285_vm0, %v2184_v0  ;;  %6031 = vmatpush3.bf16.msra.mxu0 %v6521_v50 }
 0x125   : > { %6050 = vmatpush3.bf16.msra.mxu1 %v6528_v29  ;;  %5778 = vmatprep.mubr.msk.bf16.mxu1 %vm285_vm0, %v2192_v34 }
 0x126   : > { %6022 = vmatprep.mubr.msk.bf16.mxu0 %vm285_vm0, %v4397_v62  ;;  %6032 = vmatprep.subr.bf16.mxu0 %v6523_v24 }
 0x127   : > { %6047 = vmatprep.subr.bf16.mxu1 %v6529_v1 }
 0x128   : > { %6033 = vmatpush3.bf16.msra.mxu0 %v6523_v24 }
 0x129   : > { %6051 = vmatpush3.bf16.msra.mxu1 %v6529_v1 }
 0x12a   : > { %6048 = vmatprep.subr.bf16.mxu1 %v6530_v22 }
 0x12b   : > { %6023 = vmatmul.mubr.msk.bf16.gmra.mrb[8].mxu0 %vm285_vm0, %v4406_v52 }
 0x12c   : > { %5779 = vmatmul.mubr.msk.bf16.gmra.mrb[4].mxu1 %vm285_vm0, %v2200_v41  ;;  %6034 = vmatprep.mubr.msk.bf16.mxu0 %vm285_vm0, %v7437_v8  ;;  %v2376_v8 = vrot.slane %v6525_v39, 1 }
 0x12d   : > { %5782 = vmatprep.mubr.msk.bf16.mxu1 %vm285_vm0, %v2208_v36  ;;  %6052 = vmatpush3.bf16.msra.mxu1 %v6530_v22 }
 0x12e   : > { %6049 = vmatprep.subr.bf16.mxu1 %v6532_v47  ;;  %v2377_v32 = vsel %vm515_vm2, %v2374_v27, %v2376_v8 }
 0x131   : > { %6053 = vmatpush3.bf16.msra.mxu1 %v6532_v47 }
 0x133   : > { %6035 = vmatmul.mubr.msk.bf16.vlgmr.msra.gmra.mrb[0].mxu0 %vm285_vm0, %v7443_v23  ;;  %v4567_v23 = vsel %vm863_vm4, %v4564_v58, %v4566_v49 }
 0x134   : > { %5783 = vmatmul.mubr.msk.bf16.gmra.mrb[8].mxu1 %vm285_vm0, %v2216_v42  ;;  %6038 = vmatprep.mubr.msk.bf16.mxu0 %vm285_vm0, %v7452_v13 }
 0x135   : > { %5802 = vmatprep.mubr.msk.bf16.mxu1 %vm285_vm0, %v2375_v60 }
 0x13b   : > { %6039 = vmatmul.mubr.msk.bf16.gmra.mrb[4].mxu0 %vm285_vm0, %v7455_v16 }
 0x13c   : > { %6042 = vmatprep.mubr.msk.bf16.mxu0 %vm285_vm0, %v7473_v25 }
 0x140   : > { %5803 = vmatmul.mubr.msk.bf16.vlgmr.msra.gmra.mrb[8].mxu1 %vm285_vm0, %v2377_v32 }
 0x143   : > { %6043 = vmatmul.mubr.msk.bf16.gmra.mrb[8].mxu0 %vm285_vm0, %v4567_v23 }
 0x1f7   : > { %v5776_v13 = vpop.f32.mrb[0].mxu1 }
 0x1f8   : > { %v2293_v18 = vpop.f32.mrb[1].mxu1 }
 0x1f9   : > { %v5777_v11 = vpop.f32.mrb[2].mxu1 }
 0x1fa   : > { %v2296_v10 = vpop.f32.mrb[3].mxu1 }
 0x1ff   : > { %v5780_v16 = vpop.f32.mrb[4].mxu1 }
 0x200   : > { %v2309_v14 = vpop.f32.mrb[5].mxu1 }
 0x201   : > { %v5781_v5 = vpop.f32.mrb[6].mxu1 }
 0x202   : > { %v2312_v20 = vpop.f32.mrb[7].mxu1 }
 0x206   : > { %v6036_v4 = vpop.f32.mrb[0].mxu0 }
 0x207   : > { %v6054_v58 = vadd.f32 %v6036_v4, %v5776_v13  ;;  %v4644_v25 = vpop.f32.mrb[1].mxu0 }
 0x208   : > { %v6055_v55 = vadd.f32 %v4644_v25, %v2293_v18  ;;  %v6037_v29 = vpop.f32.mrb[2].mxu0 }
 0x209   : > { %4706 = vst.msk [vmem:[%s7858_s24 + $0x10] sm:$0xff] %vm4703_vm8, %v6054_v58  ;;  %v6056_v56 = vadd.f32 %v6037_v29, %v5777_v11  ;;  %v4647_v3 = vpop.f32.mrb[3].mxu0 }
 0x20a   : > { %4704 = vst.msk [vmem:[%s7858_s24] sm:$0xff] %vm4703_vm8, %v6055_v55  ;;  %v6057_v59 = vadd.f32 %v4647_v3, %v2296_v10 }
 0x20b   : > { %4707 = vst.msk [vmem:[%s7858_s24 + $0x18] sm:$0xff] %vm4703_vm8, %v6056_v56 }
 0x20c   : > { %4705 = vst.msk [vmem:[%s7858_s24 + $0x8] sm:$0xff] %vm4703_vm8, %v6057_v59 }
 0x20e   : > { %v6040_v45 = vpop.f32.mrb[4].mxu0 }
 0x20f   : > { %v6058_v54 = vadd.f32 %v6040_v45, %v5780_v16  ;;  %v4660_v44 = vpop.f32.mrb[5].mxu0 }
 0x210   : > { %v6059_v28 = vadd.f32 %v4660_v44, %v2309_v14  ;;  %v6041_v26 = vpop.f32.mrb[6].mxu0 }
 0x211   : > { %4710 = vst.msk [vmem:[%s7858_s24 + $0x30] sm:$0xff] %vm4703_vm8, %v6058_v54  ;;  %v6060_v7 = vadd.f32 %v6041_v26, %v5781_v5  ;;  %v4663_v50 = vpop.f32.mrb[7].mxu0 }
 0x212   : > { %4708 = vst.msk [vmem:[%s7858_s24 + $0x20] sm:$0xff] %vm4703_vm8, %v6059_v28  ;;  %v6061_v38 = vadd.f32 %v4663_v50, %v2312_v20 }
 0x213   : > { %v5804_v12 = vpop.f32.mrb[8].mxu1  ;;  %4711 = vst.msk [vmem:[%s7858_s24 + $0x38] sm:$0xff] %vm4703_vm8, %v6060_v7 }
 0x214   : > { %v2486_v35 = vpop.f32.mrb[9].mxu1  ;;  %4709 = vst.msk [vmem:[%s7858_s24 + $0x28] sm:$0xff] %vm4703_vm8, %v6061_v38 }
 0x215   : > { %v5805_v17 = vpop.f32.mrb[10].mxu1 }
 0x216   : > { %v2489_v15 = vpop.f32.mrb[11].mxu1  ;;  %v6044_v0 = vpop.f32.mrb[8].mxu0 }
 0x217   : > { %v6062_v33 = vadd.f32 %v6044_v0, %v5804_v12  ;;  %v4676_v40 = vpop.f32.mrb[9].mxu0 }
 0x218   : > { %v6063_v21 = vadd.f32 %v4676_v40, %v2486_v35  ;;  %v6045_v34 = vpop.f32.mrb[10].mxu0 }
 0x219   : > { %4714 = vst.msk [vmem:[%s7858_s24 + $0x50] sm:$0xff] %vm4703_vm8, %v6062_v33  ;;  %v6064_v24 = vadd.f32 %v6045_v34, %v5805_v17  ;;  %v4679_v62 = vpop.f32.mrb[11].mxu0 }
 0x21a   : > { %4712 = vst.msk [vmem:[%s7858_s24 + $0x40] sm:$0xff] %vm4703_vm8, %v6063_v21  ;;  %v6065_v61 = vadd.f32 %v4679_v62, %v2489_v15 }
 0x21b   : > { %4715 = vst.msk [vmem:[%s7858_s24 + $0x58] sm:$0xff] %vm4703_vm8, %v6064_v24 }
 0x21c   : > { %4713 = vst.msk [vmem:[%s7858_s24 + $0x48] sm:$0xff] %vm4703_vm8, %v6065_v61 }
 0x21d PF: > { %s12_s9 = sadd.s32 1, %s6539_s9  }
 0x21e   : > { %p9_p4 = scmp.ge.s32.totalorder %s12_s9, 4  }
 0x220   :  { %11 = sbr.rel (!%p9_p4) target bundleno = 1 (0x1), region = 82 }

</bundles_post_ra>
